<compile_context>
chip_gen: v7x
topology: tpu7x:2x2x1
jax: 0.10.0
libtpu: 0.0.40
codegen_flags: <defaults>
</compile_context>

<pallas_src>
import functools

import jax
import jax.numpy as jnp
from jax.experimental import pallas as pl
from jax.experimental.pallas import tpu as pltpu

_EPS = 1e-5


# --------------------------------------------------------------------------
# conv3x3 (+ optional fused preceding BN+ReLU) + per-image channel statistics
# --------------------------------------------------------------------------
def _conv_stats_kernel(x_ref, w_ref, scale_ref, shift_ref,
                       y_ref, sum_ref, ssq_ref,
                       pad_ref, *, H, W, HALO, apply_pre):
    HW = H * W
    CP = x_ref.shape[-1]

    # Zero only the halo strips (interior is fully overwritten every step).
    # No reliance on step 0 => safe with a "parallel" batch grid axis.
    pad_ref[0:HALO, :] = jnp.zeros((HALO, CP), pad_ref.dtype)
    pad_ref[HALO + HW:HALO + HW + HALO, :] = jnp.zeros((HALO, CP), pad_ref.dtype)

    if apply_pre:                                          # fused bn1 + relu
        a = x_ref[0].astype(jnp.float32)
        a = jnp.maximum(a * scale_ref[...] + shift_ref[...], 0.0)
        pad_ref[HALO:HALO + HW, :] = a.astype(pad_ref.dtype)
    else:                                                  # bf16 passthrough
        pad_ref[HALO:HALO + HW, :] = x_ref[0]

    # In-kernel column-validity masks (f32, applied post-MXU so no bf16
    # elementwise widening on v5e).  Row shift dy*W+dx reads the zero halo for
    # H overflow; W overflow (row wrap) is killed by these masks.
    col = jax.lax.broadcasted_iota(jnp.int32, (HW, 1), 0) % W
    mask_l = (col >= 1).astype(jnp.float32)                # valid for dx = -1
    mask_r = (col <= W - 2).astype(jnp.float32)            # valid for dx = +1

    # Direct accumulation over the 9 taps: window slices of the zero-halo slab
    # feed the MXU directly (no im2col scratch, no extra slab stores).
    acc = None
    t = 0
    for dy in (-1, 0, 1):
        for dx in (-1, 0, 1):
            o = dy * W + dx
            win = pad_ref[HALO + o:HALO + o + HW, :]       # (HW, CP) bf16
            contrib = jnp.dot(win, w_ref[t * CP:(t + 1) * CP, :],
                              preferred_element_type=jnp.float32)
            if dx == -1:
                contrib = contrib * mask_l
            elif dx == 1:
                contrib = contrib * mask_r
            acc = contrib if acc is None else acc + contrib
            t += 1

    y_ref[0] = acc.astype(y_ref.dtype)                     # bf16 intermediate
    # Per-image channel sum / sum-of-squares (f32), reduced across N in glue.
    sum_ref[0] = jnp.sum(acc, axis=0, keepdims=True)
    ssq_ref[0] = jnp.sum(acc * acc, axis=0, keepdims=True)


def _conv_stats(x_p, w2d, scale, shift, *, H, W, apply_pre):
    N, HW, CP = x_p.shape
    HALO = ((W + 1 + 7) // 8) * 8                          # >= W+1, 8-aligned
    kernel = functools.partial(_conv_stats_kernel, H=H, W=W, HALO=HALO,
                               apply_pre=apply_pre)

    slab_rows = HW + 2 * HALO
    vmem_needed = (
        2 * HW * CP * 2          # x block, double-buffered bf16
        + 2 * 9 * CP * CP * 2    # weights, double-buffered bf16
        + 2 * HW * CP * 2        # y block, double-buffered bf16
        + slab_rows * CP * 2     # zero-halo slab scratch (bf16)
        + HW * CP * 4            # live f32 accumulator value
        + 16 * CP * 4            # scale/shift/sum/ssq blocks
    )
    vmem_limit = int(min(max(2 * vmem_needed, 32 * 1024 * 1024),
                         100 * 1024 * 1024))

    return pl.pallas_call(
        kernel,
        out_shape=(
            jax.ShapeDtypeStruct((N, HW, CP), jnp.bfloat16),  # conv output
            jax.ShapeDtypeStruct((N, 1, CP), jnp.float32),    # partial sums
            jax.ShapeDtypeStruct((N, 1, CP), jnp.float32),    # partial sumsq
        ),
        grid=(N,),
        in_specs=[
            pl.BlockSpec((1, HW, CP), lambda n: (n, 0, 0)),
            pl.BlockSpec((9 * CP, CP), lambda n: (0, 0)),
            pl.BlockSpec((1, CP), lambda n: (0, 0)),
            pl.BlockSpec((1, CP), lambda n: (0, 0)),
        ],
        out_specs=(
            pl.BlockSpec((1, HW, CP), lambda n: (n, 0, 0)),
            pl.BlockSpec((1, 1, CP), lambda n: (n, 0, 0)),
            pl.BlockSpec((1, 1, CP), lambda n: (n, 0, 0)),
        ),
        scratch_shapes=[
            pltpu.VMEM((slab_rows, CP), jnp.bfloat16),        # zero-halo slab
        ],
        compiler_params=pltpu.CompilerParams(
            dimension_semantics=("parallel",),                # megacore OK
            vmem_limit_bytes=vmem_limit),
    )(x_p, w2d, scale, shift)


# --------------------------------------------------------------------------
# bn2 + residual + relu, elementwise over lane-dense (rows, 128) bf16 slabs
# --------------------------------------------------------------------------
def _bn_add_relu_kernel(y_ref, r_ref, scale_ref, shift_ref, o_ref):
    o_ref[...] = jnp.maximum(
        y_ref[...].astype(jnp.float32) * scale_ref[...] + shift_ref[...]
        + r_ref[...].astype(jnp.float32), 0.0).astype(o_ref.dtype)


def _bn_add_relu(y_flat, r_flat, scale, shift):
    R, CP = y_flat.shape
    row_block = min(2048, R)                               # decoupled from HW
    Rp = ((R + row_block - 1) // row_block) * row_block
    if Rp != R:                                            # tail guard via pad
        pad = ((0, Rp - R), (0, 0))
        y_flat = jnp.pad(y_flat, pad)
        r_flat = jnp.pad(r_flat, pad)
    out = pl.pallas_call(
        _bn_add_relu_kernel,
        out_shape=jax.ShapeDtypeStruct((Rp, CP), jnp.bfloat16),
        grid=(Rp // row_block,),
        in_specs=[
            pl.BlockSpec((row_block, CP), lambda i: (i, 0)),
            pl.BlockSpec((row_block, CP), lambda i: (i, 0)),
            pl.BlockSpec((1, CP), lambda i: (0, 0)),
            pl.BlockSpec((1, CP), lambda i: (0, 0)),
        ],
        out_specs=pl.BlockSpec((row_block, CP), lambda i: (i, 0)),
        compiler_params=pltpu.CompilerParams(
            dimension_semantics=("parallel",)),
    )(y_flat, r_flat, scale, shift)
    return out[:R]


# --------------------------------------------------------------------------
# glue
# --------------------------------------------------------------------------
def _fold_bn(gamma_p, beta_p, sums, ssqs, count):
    # NOTE: E[x^2]-E[x]^2 in f32 is fine at these sizes; use Welford/two-pass
    # for very large N*H*W if stats precision matters.
    s = jnp.sum(sums, axis=0)                               # (1, CP)
    ss = jnp.sum(ssqs, axis=0)
    mean = s / count
    var = jnp.maximum(ss / count - mean * mean, 0.0)        # biased (train mode)
    scale = gamma_p / jnp.sqrt(var + _EPS)
    shift = beta_p - mean * scale
    return scale, shift


def residual_block_forward(x_nchw, params):
    N, C, H, W = x_nchw.shape
    CP = ((C + 127) // 128) * 128                           # lane-dense channels
    HW = H * W
    count = float(N * HW)

    # NCHW -> (N, H*W, C) -> pad channels to CP; bf16 HBM activations.
    x = jnp.transpose(x_nchw, (0, 2, 3, 1)).reshape(N, HW, C)
    x_p = jnp.pad(x, ((0, 0), (0, 0), (0, CP - C))).astype(jnp.bfloat16)

    def prep_w(w):                                          # (3,3,C,C) HWIO
        wp = jnp.zeros((3, 3, CP, CP), jnp.float32).at[:, :, :C, :C].set(w)
        return wp.reshape(9 * CP, CP).astype(jnp.bfloat16)  # per-tap weights

    def pad_vec(v):
        return jnp.pad(v.reshape(-1), (0, CP - C)).reshape(1, CP).astype(jnp.float32)

    w1, w2 = prep_w(params["w1"]), prep_w(params["w2"])
    g1, be1 = pad_vec(params["gamma1"]), pad_vec(params["beta1"])
    g2, be2 = pad_vec(params["gamma2"]), pad_vec(params["beta2"])
    # conv biases b1/b2 are intentionally NOT used in the kernel path: they are
    # exactly cancelled by the following BatchNorm's mean subtraction.

    ones = jnp.ones((1, CP), jnp.float32)
    zeros = jnp.zeros((1, CP), jnp.float32)

    # conv1 + bn1 statistics
    y1, s1, q1 = _conv_stats(x_p, w1, ones, zeros, H=H, W=W, apply_pre=False)
    scale1, shift1 = _fold_bn(g1, be1, s1, q1, count)

    # relu(bn1(.)) fused as pre-transform of conv2 + bn2 statistics
    y2, s2, q2 = _conv_stats(y1, w2, scale1, shift1, H=H, W=W, apply_pre=True)
    scale2, shift2 = _fold_bn(g2, be2, s2, q2, count)

    # bn2 + residual + relu over flattened lane-dense bf16 slabs
    out_flat = _bn_add_relu(y2.reshape(N * HW, CP), x_p.reshape(N * HW, CP),
                            scale2, shift2)

    out = out_flat.reshape(N, H, W, CP)[..., :C]
    return jnp.transpose(out, (0, 3, 1, 2)).astype(jnp.float32)   # NCHW


# --------------------------------------------------------------------------
# pure-JAX reference (f32, PyTorch train-mode BN semantics, with conv bias)
# --------------------------------------------------------------------------
def reference_forward(x_nchw, params):
    x = jnp.transpose(x_nchw, (0, 2, 3, 1)).astype(jnp.float32)

    def conv(a, w, b):
        return jax.lax.conv_general_dilated(
            a, w, window_strides=(1, 1), padding="SAME",
            dimension_numbers=("NHWC", "HWIO", "NHWC")) + b.reshape(1, 1, 1, -1)

    def bn(a, gamma, beta):
        m = jnp.mean(a, axis=(0, 1, 2))
        v = jnp.mean((a - m) ** 2, axis=(0, 1, 2))
        return ((a - m) / jnp.sqrt(v + _EPS)) * gamma.reshape(1, 1, 1, -1) \
            + beta.reshape(1, 1, 1, -1)

    out = jax.nn.relu(bn(conv(x, params["w1"], params["b1"]),
                         params["gamma1"], params["beta1"]))
    out = bn(conv(out, params["w2"], params["b2"]),
             params["gamma2"], params["beta2"])
    out = jax.nn.relu(out + x)
    return jnp.transpose(out, (0, 3, 1, 2))


def make_params(key, channels):
    ks = jax.random.split(key, 8)
    C = channels
    return {
        "w1": 0.2 * jax.random.normal(ks[0], (3, 3, C, C), jnp.float32),
        "b1": 0.1 * jax.random.normal(ks[1], (1, C), jnp.float32),
        "w2": 0.2 * jax.random.normal(ks[2], (3, 3, C, C), jnp.float32),
        "b2": 0.1 * jax.random.normal(ks[3], (1, C), jnp.float32),
        "gamma1": 1.0 + 0.1 * jax.random.normal(ks[4], (1, C), jnp.float32),
        "beta1": 0.05 * jax.random.normal(ks[5], (1, C), jnp.float32),
        "gamma2": 1.0 + 0.1 * jax.random.normal(ks[6], (1, C), jnp.float32),
        "beta2": 0.05 * jax.random.normal(ks[7], (1, C), jnp.float32),
    }


if __name__ == "__main__":
    key = jax.random.PRNGKey(0)
    k_x, k_p = jax.random.split(key)

    N, C, H, W = 2, 4, 16, 16
    x = jax.random.normal(k_x, (N, C, H, W), jnp.float32)   # NCHW like PyTorch
    params = make_params(k_p, C)

    out = jax.block_until_ready(residual_block_forward(x, params))
    ref = jax.block_until_ready(reference_forward(x, params))

    assert out.shape == (N, C, H, W), out.shape
    # Kernel path is bf16 end-to-end (bf16 input/intermediates/residual on the
    # MXU with f32 accumulation and f32 BN stats); compare against the f32
    # reference with a bf16-appropriate tolerance.
    assert jnp.allclose(out, ref, atol=4e-2, rtol=4e-2), \
        float(jnp.max(jnp.abs(out - ref)))

    print("KERNEL_OK")
</pallas_src>

<mosaic_0001>
module attributes {stable_mosaic.version = 11 : i64} {
  func.func @_conv_stats_kernel(%arg0: i32, %arg1: memref<1x256x128xbf16, #tpu.memory_space<vmem>>, %arg2: memref<1152x128xbf16, #tpu.memory_space<vmem>>, %arg3: memref<1x128xf32, #tpu.memory_space<vmem>>, %arg4: memref<1x128xf32, #tpu.memory_space<vmem>>, %arg5: memref<1x256x128xbf16, #tpu.memory_space<vmem>>, %arg6: memref<1x1x128xf32, #tpu.memory_space<vmem>>, %arg7: memref<1x1x128xf32, #tpu.memory_space<vmem>>, %arg8: memref<304x128xbf16, #tpu.memory_space<vmem>>) attributes {dimension_semantics = [#tpu.dimension_semantics<parallel>], iteration_bounds = array<i64: 2>, scalar_prefetch = 0 : i64, scratch_operands = 1 : i64, tpu.core_type = #tpu.core_type<tc>, window_params = [{transform_indices = @transform_0, window_bounds = array<i64: 1, 256, 128>}, {pipeline_mode = #tpu.pipeline_mode<synchronous>, transform_indices = @transform_1, window_bounds = array<i64: 1152, 128>}, {pipeline_mode = #tpu.pipeline_mode<synchronous>, transform_indices = @transform_2, window_bounds = array<i64: 1, 128>}, {pipeline_mode = #tpu.pipeline_mode<synchronous>, transform_indices = @transform_3, window_bounds = array<i64: 1, 128>}, {transform_indices = @transform_4, window_bounds = array<i64: 1, 256, 128>}, {transform_indices = @transform_5, window_bounds = array<i64: 1, 1, 128>}, {transform_indices = @transform_6, window_bounds = array<i64: 1, 1, 128>}]} {
    %cst = arith.constant 0.000000e+00 : bf16
    %0 = vector.broadcast %cst : bf16 to vector<24x128xbf16>
    %c0 = arith.constant 0 : index
    %c0_0 = arith.constant 0 : index
    %1 = vector.load %arg8[%c0, %c0_0] : memref<304x128xbf16, #tpu.memory_space<vmem>>, vector<24x128xbf16>
    tpu.vector_store %arg8[%c0, %c0_0], %0 {strides = array<i32>} : memref<304x128xbf16, #tpu.memory_space<vmem>>, vector<24x128xbf16>,
    %cst_1 = arith.constant 0.000000e+00 : bf16
    %2 = vector.broadcast %cst_1 : bf16 to vector<24x128xbf16>
    %c280 = arith.constant 280 : index
    %c0_2 = arith.constant 0 : index
    %3 = vector.load %arg8[%c280, %c0_2] : memref<304x128xbf16, #tpu.memory_space<vmem>>, vector<24x128xbf16>
    tpu.vector_store %arg8[%c280, %c0_2], %2 {strides = array<i32>} : memref<304x128xbf16, #tpu.memory_space<vmem>>, vector<24x128xbf16>,
    %c0_3 = arith.constant 0 : index
    %c0_4 = arith.constant 0 : index
    %c0_5 = arith.constant 0 : index
    %4 = vector.load %arg1[%c0_3, %c0_4, %c0_5] : memref<1x256x128xbf16, #tpu.memory_space<vmem>>, vector<1x256x128xbf16>
    %5 = vector.shape_cast %4 : vector<1x256x128xbf16> to vector<256x128xbf16>
    %c24 = arith.constant 24 : index
    %c0_6 = arith.constant 0 : index
    %6 = vector.load %arg8[%c24, %c0_6] : memref<304x128xbf16, #tpu.memory_space<vmem>>, vector<256x128xbf16>
    tpu.vector_store %arg8[%c24, %c0_6], %5 {strides = array<i32>} : memref<304x128xbf16, #tpu.memory_space<vmem>>, vector<256x128xbf16>,
    %7 = tpu.iota {dimensions = array<i32: 0>} : vector<256x1xi32>
    %c16_i32 = arith.constant 16 : i32
    %c0_i32 = arith.constant 0 : i32
    %8 = arith.cmpi eq, %c16_i32, %c0_i32 : i32
    %c1_i32 = arith.constant 1 : i32
    %9 = arith.select %8, %c1_i32, %c16_i32 : i32
    %10 = vector.broadcast %9 : i32 to vector<256x1xi32>
    %11 = arith.remsi %7, %10 : vector<256x1xi32>
    %c0_i32_7 = arith.constant 0 : i32
    %12 = vector.broadcast %c0_i32_7 : i32 to vector<256x1xi32>
    %13 = arith.cmpi ne, %11, %12 : vector<256x1xi32>
    %c0_i32_8 = arith.constant 0 : i32
    %14 = vector.broadcast %c0_i32_8 : i32 to vector<256x1xi32>
    %15 = arith.cmpi slt, %11, %14 : vector<256x1xi32>
    %c0_i32_9 = arith.constant 0 : i32
    %16 = arith.cmpi slt, %9, %c0_i32_9 : i32
    %17 = vector.broadcast %16 : i1 to vector<256x1xi1>
    %18 = vector.broadcast %17 : vector<256x1xi1> to vector<256x1xi1>
    %19 = arith.xori %15, %18 : vector<256x1xi1>
    %20 = arith.andi %19, %13 : vector<256x1xi1>
    %21 = vector.broadcast %9 : i32 to vector<256x1xi32>
    %22 = arith.addi %11, %21 : vector<256x1xi32>
    %23 = arith.select %20, %22, %11 : vector<256x1xi1>, vector<256x1xi32>
    %c1_i32_10 = arith.constant 1 : i32
    %24 = vector.broadcast %c1_i32_10 : i32 to vector<256x1xi32>
    %25 = arith.cmpi sge, %23, %24 : vector<256x1xi32>
    %26 = arith.extui %25 : vector<256x1xi1> to vector<256x1xi32>
    %27 = arith.sitofp %26 : vector<256x1xi32> to vector<256x1xf32>
    %c14_i32 = arith.constant 14 : i32
    %28 = vector.broadcast %c14_i32 : i32 to vector<256x1xi32>
    %29 = arith.cmpi sle, %23, %28 : vector<256x1xi32>
    %30 = arith.extui %29 : vector<256x1xi1> to vector<256x1xi32>
    %31 = arith.sitofp %30 : vector<256x1xi32> to vector<256x1xf32>
    %c7 = arith.constant 7 : index
    %c0_11 = arith.constant 0 : index
    %32 = vector.load %arg8[%c7, %c0_11] : memref<304x128xbf16, #tpu.memory_space<vmem>>, vector<256x128xbf16>
    %c0_12 = arith.constant 0 : index
    %c0_13 = arith.constant 0 : index
    %33 = vector.load %arg2[%c0_12, %c0_13] : memref<1152x128xbf16, #tpu.memory_space<vmem>>, vector<128x128xbf16>
    %cst_14 = arith.constant dense<0.000000e+00> : vector<256x128xf32>
    %34 = tpu.matmul %32, %33, %cst_14 {dimension_numbers = #tpu.dot_dimension_numbers<[1], [0], [0], [1], [0, 0, 1, 1], [], []>} : vector<256x128xbf16>, vector<128x128xbf16>, vector<256x128xf32> -> vector<256x128xf32>
    %35 = vector.broadcast %27 : vector<256x1xf32> to vector<256x128xf32>
    %36 = arith.mulf %34, %35 : vector<256x128xf32>
    %c8 = arith.constant 8 : index
    %c0_15 = arith.constant 0 : index
    %37 = vector.load %arg8[%c8, %c0_15] : memref<304x128xbf16, #tpu.memory_space<vmem>>, vector<256x128xbf16>
    %c128 = arith.constant 128 : index
    %c0_16 = arith.constant 0 : index
    %38 = vector.load %arg2[%c128, %c0_16] : memref<1152x128xbf16, #tpu.memory_space<vmem>>, vector<128x128xbf16>
    %cst_17 = arith.constant dense<0.000000e+00> : vector<256x128xf32>
    %39 = tpu.matmul %37, %38, %cst_17 {dimension_numbers = #tpu.dot_dimension_numbers<[1], [0], [0], [1], [0, 0, 1, 1], [], []>} : vector<256x128xbf16>, vector<128x128xbf16>, vector<256x128xf32> -> vector<256x128xf32>
    %40 = arith.addf %36, %39 : vector<256x128xf32>
    %c9 = arith.constant 9 : index
    %c0_18 = arith.constant 0 : index
    %41 = vector.load %arg8[%c9, %c0_18] : memref<304x128xbf16, #tpu.memory_space<vmem>>, vector<256x128xbf16>
    %c256 = arith.constant 256 : index
    %c0_19 = arith.constant 0 : index
    %42 = vector.load %arg2[%c256, %c0_19] : memref<1152x128xbf16, #tpu.memory_space<vmem>>, vector<128x128xbf16>
    %cst_20 = arith.constant dense<0.000000e+00> : vector<256x128xf32>
    %43 = tpu.matmul %41, %42, %cst_20 {dimension_numbers = #tpu.dot_dimension_numbers<[1], [0], [0], [1], [0, 0, 1, 1], [], []>} : vector<256x128xbf16>, vector<128x128xbf16>, vector<256x128xf32> -> vector<256x128xf32>
    %44 = vector.broadcast %31 : vector<256x1xf32> to vector<256x128xf32>
    %45 = arith.mulf %43, %44 : vector<256x128xf32>
    %46 = arith.addf %40, %45 : vector<256x128xf32>
    %c23 = arith.constant 23 : index
    %c0_21 = arith.constant 0 : index
    %47 = vector.load %arg8[%c23, %c0_21] : memref<304x128xbf16, #tpu.memory_space<vmem>>, vector<256x128xbf16>
    %c384 = arith.constant 384 : index
    %c0_22 = arith.constant 0 : index
    %48 = vector.load %arg2[%c384, %c0_22] : memref<1152x128xbf16, #tpu.memory_space<vmem>>, vector<128x128xbf16>
    %cst_23 = arith.constant dense<0.000000e+00> : vector<256x128xf32>
    %49 = tpu.matmul %47, %48, %cst_23 {dimension_numbers = #tpu.dot_dimension_numbers<[1], [0], [0], [1], [0, 0, 1, 1], [], []>} : vector<256x128xbf16>, vector<128x128xbf16>, vector<256x128xf32> -> vector<256x128xf32>
    %50 = vector.broadcast %27 : vector<256x1xf32> to vector<256x128xf32>
    %51 = arith.mulf %49, %50 : vector<256x128xf32>
    %52 = arith.addf %46, %51 : vector<256x128xf32>
    %c24_24 = arith.constant 24 : index
    %c0_25 = arith.constant 0 : index
    %53 = vector.load %arg8[%c24_24, %c0_25] : memref<304x128xbf16, #tpu.memory_space<vmem>>, vector<256x128xbf16>
    %c512 = arith.constant 512 : index
    %c0_26 = arith.constant 0 : index
    %54 = vector.load %arg2[%c512, %c0_26] : memref<1152x128xbf16, #tpu.memory_space<vmem>>, vector<128x128xbf16>
    %cst_27 = arith.constant dense<0.000000e+00> : vector<256x128xf32>
    %55 = tpu.matmul %53, %54, %cst_27 {dimension_numbers = #tpu.dot_dimension_numbers<[1], [0], [0], [1], [0, 0, 1, 1], [], []>} : vector<256x128xbf16>, vector<128x128xbf16>, vector<256x128xf32> -> vector<256x128xf32>
    %56 = arith.addf %52, %55 : vector<256x128xf32>
    %c25 = arith.constant 25 : index
    %c0_28 = arith.constant 0 : index
    %57 = vector.load %arg8[%c25, %c0_28] : memref<304x128xbf16, #tpu.memory_space<vmem>>, vector<256x128xbf16>
    %c640 = arith.constant 640 : index
    %c0_29 = arith.constant 0 : index
    %58 = vector.load %arg2[%c640, %c0_29] : memref<1152x128xbf16, #tpu.memory_space<vmem>>, vector<128x128xbf16>
    %cst_30 = arith.constant dense<0.000000e+00> : vector<256x128xf32>
    %59 = tpu.matmul %57, %58, %cst_30 {dimension_numbers = #tpu.dot_dimension_numbers<[1], [0], [0], [1], [0, 0, 1, 1], [], []>} : vector<256x128xbf16>, vector<128x128xbf16>, vector<256x128xf32> -> vector<256x128xf32>
    %60 = vector.broadcast %31 : vector<256x1xf32> to vector<256x128xf32>
    %61 = arith.mulf %59, %60 : vector<256x128xf32>
    %62 = arith.addf %56, %61 : vector<256x128xf32>
    %c39 = arith.constant 39 : index
    %c0_31 = arith.constant 0 : index
    %63 = vector.load %arg8[%c39, %c0_31] : memref<304x128xbf16, #tpu.memory_space<vmem>>, vector<256x128xbf16>
    %c768 = arith.constant 768 : index
    %c0_32 = arith.constant 0 : index
    %64 = vector.load %arg2[%c768, %c0_32] : memref<1152x128xbf16, #tpu.memory_space<vmem>>, vector<128x128xbf16>
    %cst_33 = arith.constant dense<0.000000e+00> : vector<256x128xf32>
    %65 = tpu.matmul %63, %64, %cst_33 {dimension_numbers = #tpu.dot_dimension_numbers<[1], [0], [0], [1], [0, 0, 1, 1], [], []>} : vector<256x128xbf16>, vector<128x128xbf16>, vector<256x128xf32> -> vector<256x128xf32>
    %66 = vector.broadcast %27 : vector<256x1xf32> to vector<256x128xf32>
    %67 = arith.mulf %65, %66 : vector<256x128xf32>
    %68 = arith.addf %62, %67 : vector<256x128xf32>
    %c40 = arith.constant 40 : index
    %c0_34 = arith.constant 0 : index
    %69 = vector.load %arg8[%c40, %c0_34] : memref<304x128xbf16, #tpu.memory_space<vmem>>, vector<256x128xbf16>
    %c896 = arith.constant 896 : index
    %c0_35 = arith.constant 0 : index
    %70 = vector.load %arg2[%c896, %c0_35] : memref<1152x128xbf16, #tpu.memory_space<vmem>>, vector<128x128xbf16>
    %cst_36 = arith.constant dense<0.000000e+00> : vector<256x128xf32>
    %71 = tpu.matmul %69, %70, %cst_36 {dimension_numbers = #tpu.dot_dimension_numbers<[1], [0], [0], [1], [0, 0, 1, 1], [], []>} : vector<256x128xbf16>, vector<128x128xbf16>, vector<256x128xf32> -> vector<256x128xf32>
    %72 = arith.addf %68, %71 : vector<256x128xf32>
    %c41 = arith.constant 41 : index
    %c0_37 = arith.constant 0 : index
    %73 = vector.load %arg8[%c41, %c0_37] : memref<304x128xbf16, #tpu.memory_space<vmem>>, vector<256x128xbf16>
    %c1024 = arith.constant 1024 : index
    %c0_38 = arith.constant 0 : index
    %74 = vector.load %arg2[%c1024, %c0_38] : memref<1152x128xbf16, #tpu.memory_space<vmem>>, vector<128x128xbf16>
    %cst_39 = arith.constant dense<0.000000e+00> : vector<256x128xf32>
    %75 = tpu.matmul %73, %74, %cst_39 {dimension_numbers = #tpu.dot_dimension_numbers<[1], [0], [0], [1], [0, 0, 1, 1], [], []>} : vector<256x128xbf16>, vector<128x128xbf16>, vector<256x128xf32> -> vector<256x128xf32>
    %76 = vector.broadcast %31 : vector<256x1xf32> to vector<256x128xf32>
    %77 = arith.mulf %75, %76 : vector<256x128xf32>
    %78 = arith.addf %72, %77 : vector<256x128xf32>
    %79 = arith.truncf %78 : vector<256x128xf32> to vector<256x128xbf16>
    %c0_40 = arith.constant 0 : index
    %c0_41 = arith.constant 0 : index
    %c0_42 = arith.constant 0 : index
    %80 = vector.load %arg5[%c0_40, %c0_41, %c0_42] : memref<1x256x128xbf16, #tpu.memory_space<vmem>>, vector<1x256x128xbf16>
    %81 = vector.shape_cast %80 : vector<1x256x128xbf16> to vector<256x128xbf16>
    %82 = vector.shape_cast %79 : vector<256x128xbf16> to vector<1x256x128xbf16>
    tpu.vector_store %arg5[%c0_40, %c0_41, %c0_42], %82 {strides = array<i32>} : memref<1x256x128xbf16, #tpu.memory_space<vmem>>, vector<1x256x128xbf16>,
    %cst_43 = arith.constant dense<0.000000e+00> : vector<128xf32>
    %83 = vector.multi_reduction <add>, %78, %cst_43 [0] : vector<256x128xf32> to vector<128xf32>
    %84 = vector.shape_cast %83 : vector<128xf32> to vector<1x128xf32>
    %c0_44 = arith.constant 0 : index
    %c0_45 = arith.constant 0 : index
    %c0_46 = arith.constant 0 : index
    %85 = vector.load %arg6[%c0_44, %c0_45, %c0_46] : memref<1x1x128xf32, #tpu.memory_space<vmem>>, vector<1x1x128xf32>
    %86 = vector.shape_cast %85 : vector<1x1x128xf32> to vector<1x128xf32>
    %87 = vector.shape_cast %84 : vector<1x128xf32> to vector<1x1x128xf32>
    tpu.vector_store %arg6[%c0_44, %c0_45, %c0_46], %87 {strides = array<i32>} : memref<1x1x128xf32, #tpu.memory_space<vmem>>, vector<1x1x128xf32>,
    %88 = arith.mulf %78, %78 : vector<256x128xf32>
    %cst_47 = arith.constant dense<0.000000e+00> : vector<128xf32>
    %89 = vector.multi_reduction <add>, %88, %cst_47 [0] : vector<256x128xf32> to vector<128xf32>
    %90 = vector.shape_cast %89 : vector<128xf32> to vector<1x128xf32>
    %c0_48 = arith.constant 0 : index
    %c0_49 = arith.constant 0 : index
    %c0_50 = arith.constant 0 : index
    %91 = vector.load %arg7[%c0_48, %c0_49, %c0_50] : memref<1x1x128xf32, #tpu.memory_space<vmem>>, vector<1x1x128xf32>
    %92 = vector.shape_cast %91 : vector<1x1x128xf32> to vector<1x128xf32>
    %93 = vector.shape_cast %90 : vector<1x128xf32> to vector<1x1x128xf32>
    tpu.vector_store %arg7[%c0_48, %c0_49, %c0_50], %93 {strides = array<i32>} : memref<1x1x128xf32, #tpu.memory_space<vmem>>, vector<1x1x128xf32>,
    return
  }
  func.func @transform_0(%arg0: i32) -> (i32, i32, i32) {
    %c0_i32 = arith.constant 0 : i32
    %c0_i32_0 = arith.constant 0 : i32
    %c0_i32_1 = arith.constant 0 : i32
    return %arg0, %c0_i32, %c0_i32_0 : i32, i32, i32
  }
  func.func @transform_1(%arg0: i32) -> (i32, i32) {
    %c0_i32 = arith.constant 0 : i32
    %c0_i32_0 = arith.constant 0 : i32
    %c0_i32_1 = arith.constant 0 : i32
    return %c0_i32, %c0_i32_0 : i32, i32
  }
  func.func @transform_2(%arg0: i32) -> (i32, i32) {
    %c0_i32 = arith.constant 0 : i32
    %c0_i32_0 = arith.constant 0 : i32
    %c0_i32_1 = arith.constant 0 : i32
    return %c0_i32, %c0_i32_0 : i32, i32
  }
  func.func @transform_3(%arg0: i32) -> (i32, i32) {
    %c0_i32 = arith.constant 0 : i32
    %c0_i32_0 = arith.constant 0 : i32
    %c0_i32_1 = arith.constant 0 : i32
    return %c0_i32, %c0_i32_0 : i32, i32
  }
  func.func @transform_4(%arg0: i32) -> (i32, i32, i32) {
    %c0_i32 = arith.constant 0 : i32
    %c0_i32_0 = arith.constant 0 : i32
    %c0_i32_1 = arith.constant 0 : i32
    return %arg0, %c0_i32, %c0_i32_0 : i32, i32, i32
  }
  func.func @transform_5(%arg0: i32) -> (i32, i32, i32) {
    %c0_i32 = arith.constant 0 : i32
    %c0_i32_0 = arith.constant 0 : i32
    %c0_i32_1 = arith.constant 0 : i32
    return %arg0, %c0_i32, %c0_i32_0 : i32, i32, i32
  }
  func.func @transform_6(%arg0: i32) -> (i32, i32, i32) {
    %c0_i32 = arith.constant 0 : i32
    %c0_i32_0 = arith.constant 0 : i32
    %c0_i32_1 = arith.constant 0 : i32
    return %arg0, %c0_i32, %c0_i32_0 : i32, i32, i32
  }
}

</mosaic_0001>

<bundles_post_ra>
// kernel: tpu_custom_call.1
= control target key start
LH: loop header
LB: loop body
LE: loop exit
PB: predicated region body
PF: predicated region fallthrough
CT: control target
= control target key end

     0   :  { %12 = vsyncpa [#allocation4], 0  ;;  %s8344_s0 = inlined_call_operand.hbm [shape: bf16[2,256,128], index: 0, kind: input, shape index: {}]   ;;  %s8345_s1 = inlined_call_operand.hbm [shape: bf16[1152,128], index: 1, kind: input, shape index: {}]   ;;  %s8346_s2 = inlined_call_operand.vmem [shape: f32[1,128], index: 2, kind: input, shape index: {}]   ;;  %s8347_s3 = inlined_call_operand.vmem [shape: f32[1,128], index: 3, kind: input, shape index: {}]   ;;  %s8348_s4 = inlined_call_operand.hbm [shape: bf16[2,256,128], index: 4, kind: output, shape index: {0}]   ;;  %s8349_s5 = inlined_call_operand.hbm [shape: f32[2,1,128], index: 5, kind: output, shape index: {1}]   ;;  %s8350_s6 = inlined_call_operand.hbm [shape: f32[2,1,128], index: 6, kind: output, shape index: {2}]  }
   0x1   :  { %14 = vsyncpa [#allocation4 + $0x1], 0 }
   0x2   :  { %15 = vsyncpa [#allocation7], 0 }
   0x3   :  { %16 = vsyncpa [#allocation5], 0 }
   0x4   :  { %18 = vsyncpa [#allocation5 + $0x1], 0 }
   0x5   :  { %19 = vsyncpa [#allocation10], 0 }
   0x6   :  { %21 = vsyncpa [#allocation10 + $0x1], 0  ;;  %s6395_s2 = smov 0   ;;  %s6397_s21 = smov 0  }
   0x7   :  { %s6399_s3 = smov 0   ;;  %s6401_s22 = smov 0  }
   0x8 LB: > { %s6416_s23 = sadd.s32 4294967295, %s6347_s22   ;;  %s5028_s24 = sadd.s32 4294967294, %s6347_s22   ;;  %s6347_s22 = sphi %s6401_s22, %s8659_s22   ;;  %s6343_s3 = sphi %s6399_s3, %s8658_s3   ;;  %s6339_s21 = sphi %s6397_s21, %s8657_s21   ;;  %s6335_s2 = sphi %s6395_s2, %s8656_s2  }
   0x9   : > { %p47_p0 = scmp.ne.s32.totalorder %s6339_s21, %s6335_s2  ;;  %p8351_p1 = scmp.eq.s32.totalorder %s6416_s23, 0 }
   0xa   : > { %p140_p3 = scmp.eq.s32.totalorder %s5028_s24, 1  ;;  %p5029_p5 = scmp.ge.s32.totalorder %s6347_s22, 1 }
   0xb   : > { %p6427_p4 = por %p8351_p1, %p47_p0  ;;  %p199_p7 = scmp.lt.s32.totalorder %s6347_s22, 3 }
   0xc   : > { %p6432_p6 = por %p140_p3, %p47_p0  ;;  %s6349_s28 = smov [#allocation6]  }
   0xd   : > { %s8447_s25 = scalar_select %p6427_p4, 1, 0 }
   0xe   : > { %s8448_s26 = scalar_select %p6432_p6, 1, 0 }
   0xf   : > { %p6437_p8 = pnand %p5029_p5, %p199_p7  ;;  %s211_s29 = sshll.u32 %s6349_s28, 4  ;;  %s6441_s29 = int_to_ptr.vmem [resolvable:$true] %s211_s29 }
  0x10   : > { %s6453_s7 = sadd.s32 1, %s6347_s22   ;;  %s34_s8 = sadd.s32 1, %s6343_s3 }
  0x11   : > { %s8449_s27 = scalar_select %p6437_p8, 1, 0 }
  0x12   : > { %p6004_p9 = pneg %p6437_p8  ;;  %s31_s9 = ssub.s32 %s6347_s22, %s6453_s7 }
  0x13   : > { %s6159_s12 = scalar_lea.hbm %s8345_s1, 9216 }
  0x14   : > { %p6448_p11 = pnand %p6004_p9, %p8351_p1  ;;  %p6160_p12 = scmp.ne.s32.totalorder %s8345_s1, %s6159_s12 }
  0x15   : > { %p6166_p5 = scmp.lt.u32.totalorder %s6159_s12, %s8345_s1 }
  0x16   : > { %p6161_p13 = pneg %p6448_p11 }
  0x18   : > { %p6162_p0 = pnand %p6161_p13, %p6160_p12 }
  0x1a   : > { %p6163_p3 = pneg %p6162_p0 }
  0x1c   : > { %p6168_p7 = pnand %p6166_p5, %p6163_p3 }
  0x1e   : > { %6171 = shalt.err (!%p6168_p7)
}
  0x1f   : > { %s6172_s17 = scalar_lea.vmem %s6441_s29, 9216  ;;  %p6180_p2 = scmp.lt.s32.totalorder %s6441_s29, %s6441_s29 }
  0x20   : > { %p6173_p9 = scmp.ne.s32.totalorder %s6441_s29, %s6172_s17  ;;  %p6181_p6 = scmp.lt.s32.totalorder %s6172_s17, %s6172_s17 }
  0x22   : > { %p6175_p10 = pnand %p6173_p9, %p6161_p13  ;;  %p6182_p4 = por %p6181_p6, %p6180_p2 }
  0x24   : > { %p6176_p1 = pneg %p6175_p10 }
  0x26   : > { %p6183_p8 = pnand %p6182_p4, %p6176_p1 }
  0x28   : > { %6186 = shalt.err (!%p6183_p8)
}
  0x29   : > { %s6350_s18 = smov 64   ;;  %s6351_s19 = smov 4  }
  0x2a   : > { %6007 = dma.hbm_to_vmem [thread:$0]  (!%p6448_p11), %s8345_s1, 9216, %s6441_s29, [#allocation7], %s6350_s18, %s6350_s18, %s6351_s19  }
  0x2b   : > { %p32_p1 = scmp.eq.s32.totalorder %s31_s9, 0  ;;  %p41_p2 = scmp.ne.s32.totalorder %s6343_s3, %s6339_s21 }
  0x2c   : > { %p42_p4 = scmp.eq.s32.totalorder %s6347_s22, 0  ;;  %p6023_p6 = scmp.lt.s32.totalorder %s6347_s22, 2 }
  0x2d   : > { %s6487_s10 = scalar_select %p32_p1, %s6343_s3, %s34_s8  }
  0x2e   : > { %p43_p8 = por %p42_p4, %p41_p2  ;;  %p8451_p10 = scmp.eq.s32.totalorder %s6416_s23, 1 }
  0x2f   : > { %s231_s30 = sand.u32 1, %s6343_s3   ;;  %s5199_s12 = sshll.u32 %s6347_s22, 11 }
  0x30   : > { %p6491_p12 = por %p8451_p10, %p41_p2  ;;  %s5032_s13 = sshll.u32 %s231_s30, 7 }
  0x31   : > { %s6500_s16 = scalar_lea.hbm %s8344_s0, %s5199_s12  ;;  %s235_s29 = scalar_lea.vmem [#allocation3], %s5032_s13 }
  0x32   : > { %s242_s8 = sshll.u32 %s235_s29, 4  ;;  %p6502_p11 = pnand %p6023_p6, %p43_p8  ;;  %s6506_s8 = int_to_ptr.vmem [resolvable:$true] %s242_s8 }
  0x33   : > { %s6508_s17 = scalar_lea.sflag [#allocation4], %s231_s30  ;;  %s6187_s20 = scalar_lea.hbm %s6500_s16, 2048 }
  0x34   : > { %p6188_p13 = scmp.ne.s32.totalorder %s6500_s16, %s6187_s20  ;;  %p6189_p0 = pneg %p6502_p11 }
  0x35   : > { %s6192_s13 = scalar_lea.hbm %s8344_s0, 4096  ;;  %p6193_p7 = scmp.lt.u32.totalorder %s6500_s16, %s8344_s0 }
  0x36   : > { %p6190_p3 = pnand %p6189_p0, %p6188_p13  ;;  %p6194_p9 = scmp.lt.u32.totalorder %s6192_s13, %s6187_s20 }
  0x37   : > { %p6196_p2 = scmp.lt.u32.totalorder %s6187_s20, %s6500_s16 }
  0x38   : > { %p6191_p5 = pneg %p6190_p3  ;;  %p6195_p1 = por %p6194_p9, %p6193_p7 }
  0x3a   : > { %p6197_p4 = por %p6196_p2, %p6195_p1 }
  0x3c   : > { %p6198_p6 = pnand %p6197_p4, %p6191_p5 }
  0x3e   : > { %6201 = shalt.err (!%p6198_p6)
}
  0x3f   : > { %s6202_s30 = scalar_lea.vmem %s6506_s8, 2048  ;;  %s6352_s29 = smov [#allocation3]  }
  0x40   : > { %p6203_p8 = scmp.ne.s32.totalorder %s6506_s8, %s6202_s30  ;;  %s6207_s28 = sshll.u32 %s6352_s29, 4  ;;  %s6208_s28 = int_to_ptr.vmem [resolvable:$false] %s6207_s28 }
  0x41   : > { %s6209_s12 = scalar_lea.vmem %s6208_s28, 4096  ;;  %p6210_p3 = scmp.lt.s32.totalorder %s6506_s8, %s6208_s28 }
  0x42   : > { %p6205_p10 = pnand %p6203_p8, %p6189_p0  ;;  %p6211_p7 = scmp.lt.s32.totalorder %s6209_s12, %s6202_s30 }
  0x44   : > { %p6206_p13 = pneg %p6205_p10  ;;  %p6212_p9 = por %p6211_p7, %p6210_p3 }
  0x46   : > { %p6213_p1 = pnand %p6212_p9, %p6206_p13 }
  0x48   : > { %6216 = shalt.err (!%p6213_p1)
}
  0x49   : > { %6011 = dma.hbm_to_vmem [thread:$0]  (!%p6502_p11), %s6500_s16, 2048, %s6506_s8, %s6508_s17, %s6350_s18, %s6350_s18, %s6351_s19  }
  0x4a   : > { %p8454_p0 = scmp.ne.s32.totalorder %s8449_s27, 0 }
  0x4c   : > { %254 = sbr.rel (%p8454_p0) target bundleno = 690 (0x2b2), region = 36 }
  0x53   : > { %s6542_s20 = sand.u32 1, %s6339_s21   ;;  %p8455_p5 = scmp.ne.s32.totalorder %s8447_s25, 0 }
  0x54   : > { %s5036_s13 = sshll.u32 %s6542_s20, 7  ;;  %s257_s14 = scalar_lea.sflag [#allocation4], %s6542_s20 }
  0x55   : > { %s6548_s9 = scalar_lea.vmem [#allocation3], %s5036_s13 }
  0x56   : > { %6318 = dma.done.wait (%p8455_p5), %s257_s14, 2048  }
  0x57   : > { %6320 = vsyncadd (%p8455_p5), %s257_s14, 4294965248  ;;  %p8456_p11 = scmp.eq.s32.totalorder %s6416_s23, 0 }
  0x59   : > { %6322 = dma.done.wait (%p8456_p11), [#allocation7], 9216   ;;  %p8457_p2 = pmov %p8456_p11 }
  0x5a   : > { %v6353_v0 = vmov 0   ;;  %v6065_v1 = vld [vmem:[#allocation6] sm:$0xff]   ;;  %v6066_v2 = vld [vmem:[#allocation6 + $0x8] sm:$0xff]   ;;  %v6067_v3 = vld [vmem:[#allocation6 + $0x10] sm:$0xff]   ;;  %vm1095_vm0 = vsmask.f32 4352 }
  0x5b   : > { %6324 = vsyncadd (%p8457_p2), [#allocation7], 4294958080  ;;  %302 = vst [vmem:[#allocation2] sm:$0xff] %v6353_v0  ;;  %5544 = vmatprep.subr.bf16.mxu0 %v6065_v1  ;;  %5976 = vmatprep.subr.bf16.mxu1 %v6065_v1  ;;  %v6068_v4 = vld [vmem:[#allocation6 + $0x18] sm:$0xff]   ;;  %v6073_v5 = vld [vmem:[%s6548_s9] ss:$0 sps:$4 sm:$0xff]  }
  0x5c   : > { %303 = vst [vmem:[#allocation2 + $0x8] sm:$0xf] %v6353_v0  ;;  %304 = vst [vmem:[#allocation2 + $0x88] sm:$0xf0] %v6353_v0  ;;  %5545 = vmatpush3.bf16.msra.mxu0 %v6065_v1  ;;  %5984 = vmatpush3.bf16.msra.mxu1 %v6065_v1  ;;  %v6069_v7 = vld [vmem:[#allocation6 + $0x20] sm:$0xff]   ;;  %v6560_v8 = vld [vmem:[%s6548_s9 + $0x34] sm:$0xff]  }
  0x5d   : > { %305 = vst [vmem:[#allocation2 + $0x90] sm:$0xff] %v6353_v0  ;;  %5546 = vmatprep.subr.bf16.mxu0 %v6066_v2  ;;  %5977 = vmatprep.subr.bf16.mxu1 %v6066_v2  ;;  %436 = vst [vmem:[#allocation2 + $0x8] sm:$0xf0] %v6073_v5  ;;  %v6563_v11 = vld [vmem:[%s6548_s9 + $0x3c] sm:$0xff]   ;;  %v6566_v12 = vld [vmem:[%s6548_s9 + $0x4] sm:$0xff]   ;;  %v1168_v13 = vshrl.u32 %v6560_v8, 16 }
  0x5e   : > { %443 = vst [vmem:[#allocation2 + $0x40] sm:$0xff] %v6560_v8  ;;  %v1171_v14 = vshll.u32 %v6560_v8, 16  ;;  %444 = vst [vmem:[#allocation2 + $0x48] sm:$0xff] %v6563_v11  ;;  %v1177_v15 = vshrl.u32 %v6563_v11, 16  ;;  %v1180_v16 = vshll.u32 %v6563_v11, 16  ;;  %v6576_v17 = vld [vmem:[%s6548_s9 + $0x44] sm:$0xff]  }
  0x5f   : > { %437 = vst [vmem:[#allocation2 + $0x10] sm:$0xff] %v6566_v12  ;;  %v6070_v18 = vld [vmem:[#allocation6 + $0x28] sm:$0xff]   ;;  %v1170_v19 = vrot.slane %v1168_v13, 3  ;;  %v1114_v23 = vshrl.u32 %v6566_v12, 16  ;;  %v1117_v24 = vshll.u32 %v6566_v12, 16  ;;  %445 = vst [vmem:[#allocation2 + $0x50] sm:$0xff] %v6576_v17 }
  0x60   : > { %5547 = vmatpush3.bf16.msra.mxu0 %v6066_v2  ;;  %5985 = vmatpush3.bf16.msra.mxu1 %v6066_v2  ;;  %v1173_v20 = vrot.slane %v1171_v14, 4  ;;  %v1179_v21 = vrot.slane %v1177_v15, 3  ;;  %v1182_v22 = vrot.slane %v1180_v16, 4  ;;  %v1186_v30 = vshrl.u32 %v6576_v17, 16  ;;  %v6071_v31 = vld [vmem:[#allocation6 + $0x30] sm:$0xff]   ;;  %v6072_v43 = vld [vmem:[#allocation6 + $0x38] sm:$0xff]  }
  0x61   : > { %5548 = vmatprep.subr.bf16.mxu0 %v6067_v3  ;;  %5978 = vmatprep.subr.bf16.mxu1 %v6067_v3  ;;  %v1189_v34 = vshll.u32 %v6576_v17, 16  ;;  %v1116_v36 = vrot.slane %v1114_v23, 3  ;;  %v1119_v37 = vrot.slane %v1117_v24, 4  ;;  %v6613_v42 = vld [vmem:[%s6548_s9 + $0xc] sm:$0xff]   ;;  %v6624_v49 = vld [vmem:[%s6548_s9 + $0x14] sm:$0xff]   ;;  %v6078_v0 = vld [vmem:[#allocation6 + $0x40] sm:$0xff]  }
  0x62   : > { %v1062_v6 = vld [vmem:[#allocation2] sm:$0xf8]  ;;  %v6589_v27 = vor.u32 %v1173_v20, %v1170_v19  ;;  %v6593_v29 = vor.u32 %v1182_v22, %v1179_v21  ;;  %v1188_v41 = vrot.slane %v1186_v30, 3  ;;  %438 = vst [vmem:[#allocation2 + $0x18] sm:$0xff] %v6613_v42  ;;  %v1123_v47 = vshrl.u32 %v6613_v42, 16  ;;  %v6627_v50 = vld [vmem:[%s6548_s9 + $0x54] sm:$0xff]  }
  0x63   : > { %v1097_v9 = vshrl.u32 %v1062_v6, 16  ;;  %v1100_v10 = vshll.u32 %v1062_v6, 16  ;;  %v1191_v45 = vrot.slane %v1189_v34, 4  ;;  %v6618_v46 = vld [vmem:[%s6548_s9 + $0x4c] sm:$0xff]   ;;  %v1126_v48 = vshll.u32 %v6613_v42, 16  ;;  %439 = vst [vmem:[#allocation2 + $0x20] sm:$0xff] %v6624_v49 }
  0x64   : > { %5549 = vmatpush3.bf16.msra.mxu0 %v6067_v3  ;;  %5986 = vmatpush3.bf16.msra.mxu1 %v6067_v3  ;;  %v6591_v28 = vld [vmem:[#allocation2 + $0x8] sm:$0xff]  ;;  %v1184_v35 = vsel %vm1095_vm0, %v6589_v27, %v6593_v29  ;;  %446 = vst [vmem:[#allocation2 + $0x58] sm:$0xff] %v6618_v46  ;;  %v8361_v52 = vshrl.u32 %v6618_v46, 16  ;;  %v8358_v53 = vshll.u32 %v6618_v46, 16  ;;  %v1125_v54 = vrot.slane %v1123_v47, 3  ;;  %447 = vst [vmem:[#allocation2 + $0x60] sm:$0xff] %v6627_v50 }
  0x65   : > { %5550 = vmatprep.subr.bf16.mxu0 %v6068_v4  ;;  %5979 = vmatprep.subr.bf16.mxu1 %v6068_v4  ;;  %v1099_v25 = vrot.slane %v1097_v9, 3  ;;  %v1102_v26 = vrot.slane %v1100_v10, 4  ;;  %v1105_v32 = vshrl.u32 %v6591_v28, 16  ;;  %v1108_v33 = vshll.u32 %v6591_v28, 16  ;;  %v6079_v1 = vld [vmem:[#allocation6 + $0x80] sm:$0xff]   ;;  %v6080_v5 = vld [vmem:[#allocation6 + $0x48] sm:$0xff]  }
  0x66   : > { %5576 = vmatprep.mubr.bf16.mxu1 %v1184_v35  ;;  %v1128_v55 = vrot.slane %v1126_v48, 4  ;;  %v1132_v56 = vshrl.u32 %v6624_v49, 16  ;;  %v1135_v57 = vshll.u32 %v6624_v49, 16  ;;  %v1197_v58 = vrot.slane %v8361_v52, 3  ;;  %v6081_v6 = vld [vmem:[#allocation6 + $0x88] sm:$0xff]   ;;  %v6662_v20 = vld [vmem:[%s6548_s9 + $0x1c] sm:$0xff]  }
  0x67   : > { %v1103_v38 = vor.u32 %v1102_v26, %v1099_v25  ;;  %v1107_v39 = vrot.slane %v1105_v32, 3  ;;  %v1110_v40 = vrot.slane %v1108_v33, 4  ;;  %v1200_v59 = vrot.slane %v8358_v53, 4  ;;  %v6665_v21 = vld [vmem:[%s6548_s9 + $0x5c] sm:$0xff]   ;;  %440 = vst [vmem:[#allocation2 + $0x28] sm:$0xff] %v6662_v20  ;;  %v6675_v35 = vld [vmem:[%s6548_s9 + $0x24] sm:$0xff]  }
  0x68   : > { %5551 = vmatpush3.bf16.msra.mxu0 %v6068_v4  ;;  %5987 = vmatpush3.bf16.msra.mxu1 %v6068_v4  ;;  %v8367_v60 = vshrl.u32 %v6627_v50, 16  ;;  %v8366_v61 = vshll.u32 %v6627_v50, 16  ;;  %v6647_v62 = vor.u32 %v1119_v37, %v1116_v36  ;;  %v1192_v63 = vor.u32 %v1191_v45, %v1188_v41  ;;  %448 = vst [vmem:[#allocation2 + $0x68] sm:$0xff] %v6665_v21  ;;  %v6086_v45 = vld [vmem:[#allocation6 + $0x50] sm:$0xff]   ;;  %s8163_s25 = scalar_lea.vmem [#allocation8], %s5036_s13  ;;  %s5232_s27 = sshll.u32 %s6416_s23, 11 }
  0x69   : > { %5552 = vmatprep.subr.bf16.mxu0 %v6069_v7  ;;  %5980 = vmatprep.subr.bf16.mxu1 %v6069_v7  ;;  %v1111_v44 = vor.u32 %v1110_v40, %v1107_v39  ;;  %v1129_v2 = vor.u32 %v1128_v55, %v1125_v54  ;;  %v1134_v3 = vrot.slane %v1132_v56, 3  ;;  %v1137_v4 = vrot.slane %v1135_v57, 4  ;;  %441 = vst [vmem:[#allocation2 + $0x30] sm:$0xff] %v6675_v35  ;;  %s4866_s18 = sshll.u32 %s8163_s25, 4  ;;  %s8226_s8 = scalar_lea.hbm %s8348_s4, %s5232_s27  ;;  %s8228_s18 = int_to_ptr.vmem [resolvable:$true] %s4866_s18 }
  0x6a   : > { %v1206_v9 = vrot.slane %v8367_v60, 3  ;;  %v1209_v10 = vrot.slane %v8366_v61, 4  ;;  %v1193_v19 = vsel %vm1095_vm0, %v6593_v29, %v1192_v63  ;;  %v1141_v26 = vshrl.u32 %v6662_v20, 16  ;;  %v6678_v29 = vld [vmem:[%s6548_s9 + $0x64] sm:$0xff]   ;;  %s4845_s17 = scalar_lea.sflag [#allocation5], %s6542_s20  ;;  %s6217_s15 = scalar_lea.vmem %s8228_s18, 2048 }
  0x6b   : > { %v1112_v51 = vsel %vm1095_vm0, %v1103_v38, %v1111_v44  ;;  %v6669_v22 = vsel %vm1095_vm0, %v6647_v62, %v1129_v2  ;;  %v1138_v25 = vor.u32 %v1137_v4, %v1134_v3  ;;  %v8357_v38 = vshrl.u32 %v6665_v21, 16  ;;  %449 = vst [vmem:[#allocation2 + $0x70] sm:$0xff] %v6678_v29  ;;  %p6218_p4 = scmp.ne.s32.totalorder %s8228_s18, %s6217_s15  ;;  %s6355_s30 = smov [#allocation8]  }
  0x6c   : > { %5553 = vmatpush3.bf16.msra.mxu0 %v6069_v7  ;;  %5988 = vmatpush3.bf16.msra.mxu1 %v6069_v7  ;;  %v1201_v7 = vor.u32 %v1200_v59, %v1197_v58  ;;  %v1210_v37 = vor.u32 %v1209_v10, %v1206_v9  ;;  %v8356_v39 = vshll.u32 %v6665_v21, 16  ;;  %v1143_v40 = vrot.slane %v1141_v26, 3  ;;  %s6221_s29 = sshll.u32 %s6355_s30, 4  ;;  %s6222_s29 = int_to_ptr.vmem [resolvable:$false] %s6221_s29 }
  0x6d   : > { %5554 = vmatprep.subr.bf16.mxu0 %v6070_v18  ;;  %5981 = vmatprep.subr.bf16.mxu1 %v6070_v18  ;;  %v1215_v54 = vrot.slane %v8357_v38, 3  ;;  %v8355_v58 = vshrl.u32 %v6678_v29, 16  ;;  %v8354_v59 = vshll.u32 %v6678_v29, 16  ;;  %v6706_v9 = vsel %vm1095_vm0, %v1129_v2, %v1138_v25  ;;  %p6219_p6 = pnand %p6218_p4, %p6491_p12  ;;  %s6223_s28 = scalar_lea.vmem %s6222_s29, 4096 }
  0x6e   : > { %5560 = vmatprep.mubr.bf16.mxu0 %v1112_v51  ;;  %v1202_v36 = vsel %vm1095_vm0, %v1192_v63, %v1201_v7  ;;  %v6087_v51 = vld [vmem:[#allocation6 + $0x90] sm:$0xff]   ;;  %v1218_v55 = vrot.slane %v8356_v39, 4  ;;  %v6088_v63 = vld [vmem:[#allocation6 + $0x58] sm:$0xff]   ;;  %v1211_v10 = vsel %vm1095_vm0, %v1201_v7, %v1210_v37  ;;  %v6097_v39 = vld [vmem:[#allocation6 + $0xa8] sm:$0xff]   ;;  %vm1539_vm1 = vcmask 1043456   ;;  %p6224_p10 = scmp.lt.s32.totalorder %s8228_s18, %s6222_s29  ;;  %p6225_p13 = scmp.lt.s32.totalorder %s6223_s28, %s6217_s15 }
  0x6f   : > { %v6723_v7 = vld [vmem:[%s6548_s9 + $0x6c] sm:$0xff]   ;;  %vm1847_vm2 = vsmask.f32 3328  ;;  %p6220_p8 = pneg %p6219_p6 }
  0x70   : > { %5555 = vmatpush3.bf16.msra.mxu0 %v6070_v18  ;;  %5989 = vmatpush3.bf16.msra.mxu1 %v6070_v18  ;;  %v1121_v18 = vsel %vm1095_vm0, %v1111_v44, %v6647_v62  ;;  %v8364_v44 = vshll.u32 %v6675_v35, 16  ;;  %450 = vst [vmem:[#allocation2 + $0x78] sm:$0xff] %v6723_v7  ;;  %p6226_p3 = por %p6225_p13, %p6224_p10 }
  0x71   : > { %5556 = vmatprep.subr.bf16.mxu0 %v6071_v31  ;;  %5982 = vmatprep.subr.bf16.mxu1 %v6071_v31 }
  0x72   : > { %v1155_v4 = vrot.slane %v8364_v44, 4  ;;  %p6227_p7 = pnand %p6226_p3, %p6220_p8 }
  0x74   : > { %5557 = vmatpush3.bf16.msra.mxu0 %v6071_v31  ;;  %5990 = vmatpush3.bf16.msra.mxu1 %v6071_v31  ;;  %v8368_v31 = vshll.u32 %v6662_v20, 16 }
  0x75   : > { %5558 = vmatprep.subr.bf16.mxu0 %v6072_v43  ;;  %5983 = vmatprep.subr.bf16.mxu1 %v6072_v43 }
  0x76   : > { %v1146_v41 = vrot.slane %v8368_v31, 4 }
  0x78   : > { %5559 = vmatpush3.bf16.msra.mxu0 %v6072_v43  ;;  %5991 = vmatpush3.bf16.msra.mxu1 %v6072_v43  ;;  %v8365_v43 = vshrl.u32 %v6675_v35, 16 }
  0x79   : > { %5592 = vmatprep.subr.bf16.mxu1 %v6078_v0  ;;  %5640 = vmatprep.subr.bf16.mxu0 %v6079_v1 }
  0x7a   : > { %v1152_v3 = vrot.slane %v8365_v43, 3  ;;  %v1864_v43 = vrot.slane %v1123_v47, 4 }
  0x7b   : > { %5561 = vmatmul.mubr.bf16.vlgmr.msra.gmra.mrb[0].mxu0 %v1121_v18  ;;  %5577 = vmatmul.mubr.bf16.vlgmr.msra.gmra.mrb[0].mxu1 %v1193_v19  ;;  %v1224_v18 = vrot.slane %v8355_v58, 3  ;;  %v1227_v19 = vrot.slane %v8354_v59, 4  ;;  %v6729_v58 = vld [vmem:[%s6548_s9 + $0x74] sm:$0xff]  }
  0x7c   : > { %5593 = vmatpush3.bf16.msra.mxu1 %v6078_v0  ;;  %5641 = vmatpush3.bf16.msra.mxu0 %v6079_v1  ;;  %v1147_v0 = vor.u32 %v1146_v41, %v1143_v40  ;;  %v6699_v1 = vor.u32 %v1218_v55, %v1215_v54  ;;  %v6714_v40 = vld [vmem:[%s6548_s9 + $0x2c] sm:$0xff]   ;;  %v1156_v41 = vor.u32 %v1155_v4, %v1152_v3  ;;  %v6095_v55 = vld [vmem:[#allocation6 + $0xa0] sm:$0xff]  }
  0x7d   : > { %5594 = vmatprep.subr.bf16.mxu1 %v6080_v5  ;;  %5642 = vmatprep.subr.bf16.mxu0 %v6081_v6  ;;  %v1228_v54 = vor.u32 %v1227_v19, %v1224_v18  ;;  %442 = vst [vmem:[#allocation2 + $0x38] sm:$0xff] %v6714_v40  ;;  %v8363_v59 = vshrl.u32 %v6714_v40, 16  ;;  %451 = vst [vmem:[#allocation2 + $0x80] sm:$0xff] %v6729_v58  ;;  %v6096_v3 = vld [vmem:[#allocation6 + $0x68] sm:$0xff]  }
  0x7e   : > { %5564 = vmatprep.mubr.bf16.mxu0 %v6669_v22  ;;  %5580 = vmatprep.mubr.bf16.mxu1 %v1202_v36  ;;  %v6089_v36 = vld [vmem:[#allocation6 + $0x98] sm:$0xff]   ;;  %v6718_v2 = vsel %vm1095_vm0, %v1138_v25, %v1147_v0  ;;  %v8359_v25 = vshrl.u32 %v6723_v7, 16  ;;  %v6745_v19 = vsel %vm1095_vm0, %v1147_v0, %v1156_v41  ;;  %v1856_v0 = vrot.slane %v1105_v32, 4  ;;  %v6101_v32 = vld [vmem:[#allocation6 + $0x70] sm:$0xff]  }
  0x80   : > { %5595 = vmatpush3.bf16.msra.mxu1 %v6080_v5  ;;  %5643 = vmatpush3.bf16.msra.mxu0 %v6081_v6  ;;  %v1220_v5 = vsel %vm1095_vm0, %v1210_v37, %v6699_v1  ;;  %v6094_v6 = vld [vmem:[#allocation6 + $0x60] sm:$0xff]   ;;  %v8360_v37 = vshll.u32 %v6723_v7, 16  ;;  %v1233_v4 = vrot.slane %v8359_v25, 3  ;;  %v1505_v25 = vld [vmem:[#allocation2] sm:$0xf0] }
  0x81   : > { %5596 = vmatprep.subr.bf16.mxu1 %v6086_v45  ;;  %5644 = vmatprep.subr.bf16.mxu0 %v6087_v51 }
  0x82   : > { %v1236_v18 = vrot.slane %v8360_v37, 4  ;;  %v6759_v37 = vrot.slane %v6566_v12, 4  ;;  %v6103_v12 = vld [vmem:[#allocation6 + $0x78] sm:$0xff]  }
  0x83   : > { %5565 = vmatmul.mubr.bf16.gmra.mrb[4].mxu0 %v6706_v9  ;;  %5581 = vmatmul.mubr.bf16.gmra.mrb[4].mxu1 %v1211_v10  ;;  %v8362_v10 = vshll.u32 %v6714_v40, 16 }
  0x84   : > { %5597 = vmatpush3.bf16.msra.mxu1 %v6086_v45  ;;  %5645 = vmatpush3.bf16.msra.mxu0 %v6087_v51  ;;  %v1161_v45 = vrot.slane %v8363_v59, 3  ;;  %v6753_v53 = vor.u32 %v1236_v18, %v1233_v4  ;;  %v1852_v4 = vshll.u32 %v1505_v25, 16  ;;  %v1857_v18 = vrot.slane %v1108_v33, 5  ;;  %v6102_v59 = vld [vmem:[#allocation6 + $0xb0] sm:$0xff]  }
  0x85   : > { %5598 = vmatprep.subr.bf16.mxu1 %v6088_v63  ;;  %5646 = vmatprep.subr.bf16.mxu0 %v6089_v36  ;;  %v1164_v51 = vrot.slane %v8362_v10, 4  ;;  %v6773_v10 = vld [vmem:[#allocation2 + $0x80] sm:$0xf]  ;;  %v1860_v33 = vrot.slane %v1114_v23, 4 }
  0x86   : > { %5568 = vmatprep.mubr.bf16.mxu0 %v6718_v2  ;;  %5584 = vmatprep.mubr.bf16.mxu1 %v1220_v5  ;;  %v6749_v5 = vsel %vm1095_vm0, %v6699_v1, %v1228_v54  ;;  %v1854_v44 = vrot.slane %v1852_v4, 5  ;;  %v1865_v4 = vrot.slane %v1126_v48, 5  ;;  %v1868_v48 = vrot.slane %v1132_v56, 4 }
  0x87   : > { %v6751_v38 = vor.u32 %v1164_v51, %v1161_v45  ;;  %v6769_v51 = vsel %vm1095_vm0, %v1228_v54, %v6753_v53  ;;  %v1243_v54 = vshll.u32 %v6773_v10, 16 }
  0x88   : > { %5599 = vmatpush3.bf16.msra.mxu1 %v6088_v63  ;;  %5647 = vmatpush3.bf16.msra.mxu0 %v6089_v36  ;;  %v1541_v63 = vrot.slane %v6591_v28, 4  ;;  %v1849_v36 = vshrl.u32 %v1505_v25, 16  ;;  %v6107_v28 = vld [vmem:[#allocation6 + $0xc8] sm:$0xff]  }
  0x89   : > { %5600 = vmatprep.subr.bf16.mxu1 %v6094_v6  ;;  %5648 = vmatprep.subr.bf16.mxu0 %v6095_v55  ;;  %v6765_v45 = vsel %vm1095_vm0, %v1156_v41, %v6751_v38  ;;  %v1240_v41 = vshrl.u32 %v6773_v10, 16  ;;  %v1175_v61 = vsel %vm1095_vm0, %v6751_v38, %v6589_v27  ;;  %v1245_v31 = vrot.slane %v1243_v54, 4 }
  0x8a   : > { %v1851_v52 = vrot.slane %v1849_v36, 4  ;;  %v1858_v36 = vor.u32 %v1857_v18, %v1856_v0  ;;  %v6104_v0 = vld [vmem:[#allocation6 + $0xb8] sm:$0xff]   ;;  %v1892_v54 = vrot.slane %v1186_v30, 4  ;;  %v1872_v30 = vrot.slane %v1141_v26, 4 }
  0x8b   : > { %5569 = vmatmul.mubr.bf16.gmra.mrb[8].mxu0 %v6745_v19  ;;  %5585 = vmatmul.mubr.bf16.gmra.mrb[8].mxu1 %v6749_v5  ;;  %v1242_v60 = vrot.slane %v1240_v41, 3 }
  0x8c   : > { %5601 = vmatpush3.bf16.msra.mxu1 %v6094_v6  ;;  %5649 = vmatpush3.bf16.msra.mxu0 %v6095_v55  ;;  %v1861_v6 = vrot.slane %v1117_v24, 5  ;;  %v1540_v55 = vrot.slane %v1505_v25, 4  ;;  %v1855_v23 = vor.u32 %v1854_v44, %v1851_v52  ;;  %v1545_v24 = vrot.slane %v6613_v42, 4  ;;  %v6105_v52 = vld [vmem:[#allocation6 + $0xc0] sm:$0xff]  }
  0x8d   : > { %5602 = vmatprep.subr.bf16.mxu1 %v6096_v3  ;;  %5650 = vmatprep.subr.bf16.mxu0 %v6097_v39  ;;  %v1246_v25 = vor.u32 %v1245_v31, %v1242_v60  ;;  %v6800_v44 = vor.u32 %v1865_v4, %v1864_v43  ;;  %v1884_v60 = vrot.slane %v1168_v13, 4  ;;  %v1885_v31 = vrot.slane %v1171_v14, 5  ;;  %v6106_v43 = vld [vmem:[#allocation6 + $0x100] sm:$0xff]   ;;  %v6108_v4 = vld [vmem:[#allocation6 + $0x108] sm:$0xff]  }
  0x8e   : > { %5572 = vmatprep.mubr.bf16.mxu0 %v6765_v45  ;;  %5588 = vmatprep.mubr.bf16.mxu1 %v6769_v51  ;;  %v6791_v47 = vor.u32 %v1861_v6, %v1860_v33  ;;  %v1542_v27 = vsel %vm1539_vm1, %v1540_v55, %v1541_v63  ;;  %v1888_v13 = vrot.slane %v1177_v15, 4  ;;  %v1889_v14 = vrot.slane %v1180_v16, 5  ;;  %v6114_v42 = vld [vmem:[#allocation6 + $0x120] sm:$0xff]  }
  0x8f   : > { %v1247_v56 = vsel %vm1095_vm0, %v6753_v53, %v1246_v25  ;;  %v6811_v18 = vor.u32 %v1885_v31, %v1884_v60  ;;  %v1893_v15 = vrot.slane %v1189_v34, 5  ;;  %v1561_v6 = vrot.slane %v6618_v46, 4 }
  0x90   : > { %5603 = vmatpush3.bf16.msra.mxu1 %v6096_v3  ;;  %5651 = vmatpush3.bf16.msra.mxu0 %v6097_v39  ;;  %v1869_v39 = vrot.slane %v1135_v57, 5  ;;  %v1859_v57 = vsel %vm1847_vm2, %v1855_v23, %v1858_v36  ;;  %v1557_v3 = vrot.slane %v6563_v11, 4  ;;  %v6832_v11 = vsel %vm1847_vm2, %v6791_v47, %v6800_v44 }
  0x91   : > { %5604 = vmatprep.subr.bf16.mxu1 %v6101_v32  ;;  %5652 = vmatprep.subr.bf16.mxu0 %v6102_v59  ;;  %v1890_v16 = vor.u32 %v1889_v14, %v1888_v13  ;;  %v6842_v55 = vor.u32 %v1893_v15, %v1892_v54  ;;  %v8459_v25 = vshrl.u32 %v6627_v50, 16  ;;  %v1544_v60 = vsel %vm1539_vm1, %v1541_v63, %v6759_v37 }
  0x92   : > { %v1567_v63 = vrot.slane %v6678_v29, 4  ;;  %v1870_v13 = vor.u32 %v1869_v39, %v1868_v48  ;;  %v6889_v15 = vrot.slane %v6723_v7, 4  ;;  %v1547_v48 = vrot.slane %v6624_v49, 4 }
  0x93   : > { %5573 = vmatmul.mubr.bf16.gmra.mrb[12].mxu0 %v1175_v61  ;;  %v1555_v61 = vrot.slane %v6560_v8, 4  ;;  %5589 = vmatmul.mubr.bf16.gmra.mrb[12].mxu1 %v1247_v56  ;;  %v6847_v23 = vsel %vm1847_vm2, %v6811_v18, %v1890_v16  ;;  %v1900_v26 = vrot.slane %v8459_v25, 4  ;;  %v6862_v31 = vsel %vm1847_vm2, %v1890_v16, %v6842_v55  ;;  %v6109_v16 = vld [vmem:[#allocation6 + $0xd0] sm:$0xff]  }
  0x94   : > { %5605 = vmatpush3.bf16.msra.mxu1 %v6101_v32  ;;  %5653 = vmatpush3.bf16.msra.mxu0 %v6102_v59  ;;  %v1559_v32 = vrot.slane %v6576_v17, 4  ;;  %v1863_v59 = vsel %vm1847_vm2, %v1858_v36, %v6791_v47  ;;  %v8458_v17 = vshll.u32 %v6662_v20, 16  ;;  %v1563_v36 = vrot.slane %v6627_v50, 4 }
  0x95   : > { %5606 = vmatprep.subr.bf16.mxu1 %v6103_v12  ;;  %5654 = vmatprep.subr.bf16.mxu0 %v6104_v0  ;;  %v6823_v41 = vsel %vm1539_vm1, %v1555_v61, %v1557_v3  ;;  %v1571_v39 = vrot.slane %v6773_v10, 4  ;;  %v8462_v49 = vshll.u32 %v6675_v35, 16 }
  0x96   : > { %5608 = vmatprep.mubr.bf16.mxu1 %v1542_v27  ;;  %5656 = vmatprep.mubr.bf16.mxu0 %v1859_v57  ;;  %v6835_v33 = vsel %vm1539_vm1, %v1557_v3, %v1559_v32  ;;  %v1873_v34 = vrot.slane %v8458_v17, 5  ;;  %v6865_v56 = vsel %vm1539_vm1, %v1561_v6, %v1563_v36  ;;  %v6868_v57 = vrot.slane %v6665_v21, 4 }
  0x97   : > { %v6909_v10 = vsel %vm1539_vm1, %v6889_v15, %v1571_v39 }
  0x98   : > { %5607 = vmatpush3.bf16.msra.mxu1 %v6103_v12  ;;  %5655 = vmatpush3.bf16.msra.mxu0 %v6104_v0  ;;  %v6850_v12 = vsel %vm1539_vm1, %v1559_v32, %v1561_v6  ;;  %v8460_v0 = vshll.u32 %v6627_v50, 16  ;;  %v6874_v50 = vsel %vm1539_vm1, %v6759_v37, %v1545_v24  ;;  %v6882_v14 = vsel %vm1539_vm1, %v1563_v36, %v6868_v57 }
  0x99   : > { %5688 = vmatprep.subr.bf16.mxu1 %v6105_v52  ;;  %5736 = vmatprep.subr.bf16.mxu0 %v6106_v43  ;;  %v1874_v32 = vor.u32 %v1873_v34, %v1872_v30  ;;  %v6886_v54 = vsel %vm1539_vm1, %v6868_v57, %v1567_v63  ;;  %v6897_v6 = vsel %vm1539_vm1, %v1567_v63, %v6889_v15  ;;  %v1877_v34 = vrot.slane %v8462_v49, 5  ;;  %v6117_v49 = vld [vmem:[#allocation6 + $0xf0] sm:$0xff]  }
  0x9a   : > { %v1901_v27 = vrot.slane %v8460_v0, 5  ;;  %v6901_v30 = vsel %vm1847_vm2, %v6800_v44, %v1870_v13  ;;  %v8464_v36 = vshrl.u32 %v6714_v40, 16  ;;  %v8465_v44 = vshll.u32 %v6714_v40, 16 }
  0x9b   : > { %5657 = vmatmul.mubr.bf16.vlgmr.msra.gmra.mrb[16].mxu0 %v1863_v59  ;;  %5609 = vmatmul.mubr.bf16.vlgmr.msra.gmra.mrb[16].mxu1 %v1544_v60  ;;  %v6110_v59 = vld [vmem:[#allocation6 + $0x110] sm:$0xff]   ;;  %v6921_v0 = vsel %vm1539_vm1, %v1545_v24, %v1547_v48  ;;  %v6111_v60 = vld [vmem:[#allocation6 + $0xd8] sm:$0xff]   ;;  %v1551_v24 = vrot.slane %v6675_v35, 4 }
  0x9c   : > { %v6876_v3 = vor.u32 %v1901_v27, %v1900_v26  ;;  %5737 = vmatpush3.bf16.msra.mxu0 %v6106_v43  ;;  %5660 = vmatprep.mubr.bf16.mxu0 %v6832_v11  ;;  %v1549_v43 = vrot.slane %v6662_v20, 4  ;;  %v6912_v20 = vsel %vm1847_vm2, %v1870_v13, %v1874_v32  ;;  %v1880_v25 = vrot.slane %v8464_v36, 4  ;;  %v6112_v26 = vld [vmem:[#allocation6 + $0x118] sm:$0xff]  }
  0x9d   : > { %5738 = vmatprep.subr.bf16.mxu0 %v6108_v4  ;;  %5689 = vmatpush3.bf16.msra.mxu1 %v6105_v52  ;;  %v8461_v52 = vshrl.u32 %v6675_v35, 16  ;;  %8463 = vst [vmem:[#allocation16_spill] sm:$0xff] %v6912_v20  ;;  %v8371_v35 = vshrl.u32 %v6729_v58, 16 }
  0x9e   : > { %5612 = vmatprep.mubr.bf16.mxu1 %v6874_v50  ;;  %5690 = vmatprep.subr.bf16.mxu1 %v6107_v28  ;;  %v6925_v27 = vsel %vm1539_vm1, %v1547_v48, %v1549_v43  ;;  %v6113_v48 = vld [vmem:[#allocation6 + $0xe0] sm:$0xff]  }
  0x9f   : > { %v1876_v17 = vrot.slane %v8461_v52, 4  ;;  %v6116_v52 = vld [vmem:[#allocation6 + $0x128] sm:$0xff]  }
  0xa0   : > { %5739 = vmatpush3.bf16.msra.mxu0 %v6108_v4  ;;  %v1881_v4 = vrot.slane %v8465_v44, 5 }
  0xa1   : > { %5740 = vmatprep.subr.bf16.mxu0 %v6110_v59  ;;  %5691 = vmatpush3.bf16.msra.mxu1 %v6107_v28  ;;  %v1878_v63 = vor.u32 %v1877_v34, %v1876_v17  ;;  %v6934_v28 = vrot.slane %v6714_v40, 4  ;;  %v6944_v17 = vsel %vm1539_vm1, %v1549_v43, %v1551_v24  ;;  %v8370_v43 = vshll.u32 %v6729_v58, 16 }
  0xa2   : > { %5692 = vmatprep.subr.bf16.mxu1 %v6109_v16  ;;  %v6929_v13 = vor.u32 %v1881_v4, %v1880_v25  ;;  %v2384_v34 = vrot.slane %v8371_v35, 3  ;;  %v8468_v25 = vshrl.u32 %v6618_v46, 16  ;;  %v8469_v4 = vshll.u32 %v6618_v46, 16  ;;  %v2214_v35 = vld [vmem:[#allocation2 + $0x8] sm:$0xf8] }
  0xa3   : > { %5661 = vmatmul.mubr.bf16.gmra.mrb[20].mxu0 %v6901_v30  ;;  %5613 = vmatmul.mubr.bf16.gmra.mrb[20].mxu1 %v6921_v0  ;;  %v6937_v39 = vsel %vm1847_vm2, %v1874_v32, %v1878_v63  ;;  %v6950_v40 = vsel %vm1539_vm1, %v1551_v24, %v6934_v28  ;;  %v6115_v32 = vld [vmem:[#allocation6 + $0xe8] sm:$0xff]   ;;  %v1556_v24 = vsel %vm1539_vm1, %v6934_v28, %v1555_v61  ;;  %v6982_v61 = vld [vmem:[#allocation6 + $0x180] sm:$0xff]  }
  0xa4   : > { %5664 = vmatprep.mubr.bf16.mxu0 %v6912_v20  ;;  %5741 = vmatpush3.bf16.msra.mxu0 %v6110_v59  ;;  %8466 = vst [vmem:[#allocation17_spill] sm:$0xff] %v6937_v39  ;;  %v6941_v59 = vsel %vm1847_vm2, %v1878_v63, %v6929_v13  ;;  %v1887_v36 = vsel %vm1847_vm2, %v6929_v13, %v6811_v18  ;;  %v1896_v44 = vrot.slane %v8468_v25, 4  ;;  %v2387_v63 = vrot.slane %v8370_v43, 4  ;;  %v6135_v18 = vld [vmem:[%s6548_s9 + $0x7c] ss:$0 sps:$4 sm:$0xff]  }
  0xa5   : > { %5742 = vmatprep.subr.bf16.mxu0 %v6112_v26  ;;  %5616 = vmatprep.mubr.bf16.mxu1 %v6925_v27  ;;  %8467 = vst [vmem:[#allocation18_spill] sm:$0xff] %v6941_v59  ;;  %452 = vst [vmem:[#allocation2 + $0x88] sm:$0xf] %v6135_v18 }
  0xa6   : > { %5693 = vmatpush3.bf16.msra.mxu1 %v6109_v16  ;;  %v6118_v16 = vld [vmem:[#allocation6 + $0x130] sm:$0xff]   ;;  %v6973_v46 = vor.u32 %v2387_v63, %v2384_v34 }
  0xa7   : > { %5694 = vmatprep.subr.bf16.mxu1 %v6111_v60 }
  0xa8   : > { %5743 = vmatpush3.bf16.msra.mxu0 %v6112_v26  ;;  %v1897_v26 = vrot.slane %v8469_v4, 5 }
  0xa9   : > { %5744 = vmatprep.subr.bf16.mxu0 %v6114_v42 }
  0xaa   : > { %5695 = vmatpush3.bf16.msra.mxu1 %v6111_v60  ;;  %v6120_v60 = vld [vmem:[#allocation6 + $0x138] sm:$0xff]   ;;  %v1898_v8 = vor.u32 %v1897_v26, %v1896_v44  ;;  %v1830_v44 = vld [vmem:[#allocation2 + $0x80] sm:$0x1f] }
  0xab   : > { %5665 = vmatmul.mubr.bf16.gmra.mrb[24].mxu0 %v6937_v39  ;;  %5696 = vmatprep.subr.bf16.mxu1 %v6113_v48  ;;  %v7007_v26 = vld [vmem:[#allocation2 + $0x40] sm:$0xff]  ;;  %v1917_v18 = vshrl.u32 %v1830_v44, 16 }
  0xac   : > { %5668 = vmatprep.mubr.bf16.mxu0 %v6941_v59  ;;  %5745 = vmatpush3.bf16.msra.mxu0 %v6114_v42  ;;  %v8369_v42 = vrot.slane %v6729_v58, 4  ;;  %v1899_v25 = vsel %vm1847_vm2, %v6842_v55, %v1898_v8  ;;  %v8474_v55 = vshrl.u32 %v6723_v7, 16 }
  0xad   : > { %5617 = vmatmul.mubr.bf16.gmra.mrb[24].mxu1 %v6944_v17  ;;  %5746 = vmatprep.subr.bf16.mxu0 %v6116_v52 }
  0xae   : > { %5620 = vmatprep.mubr.bf16.mxu1 %v6950_v40  ;;  %5697 = vmatpush3.bf16.msra.mxu1 %v6113_v48  ;;  %v6119_v48 = vld [vmem:[#allocation6 + $0xf8] sm:$0xff]   ;;  %v1912_v63 = vrot.slane %v8474_v55, 4 }
  0xaf   : > { %5698 = vmatprep.subr.bf16.mxu1 %v6115_v32 }
  0xb0   : > { %5747 = vmatpush3.bf16.msra.mxu0 %v6116_v52  ;;  %v6979_v52 = vsel %vm1539_vm1, %v6889_v15, %v8369_v42  ;;  %v8470_v15 = vshrl.u32 %v6665_v21, 16 }
  0xb1   : > { %5748 = vmatprep.subr.bf16.mxu0 %v6118_v16 }
  0xb2   : > { %5699 = vmatpush3.bf16.msra.mxu1 %v6115_v32  ;;  %v6987_v32 = vsel %vm1095_vm0, %v6753_v53, %v6973_v46  ;;  %v1904_v34 = vrot.slane %v8470_v15, 4  ;;  %v7018_v15 = vld [vmem:[#allocation2 + $0x58] sm:$0xff] }
  0xb3   : > { %5669 = vmatmul.mubr.bf16.gmra.mrb[28].mxu0 %v1887_v36  ;;  %5700 = vmatprep.subr.bf16.mxu1 %v6117_v49  ;;  %v6994_v36 = vld [vmem:[#allocation6 + $0x140] sm:$0xff]   ;;  %v8477_v42 = vshrl.u32 %v7018_v15, 16 }
  0xb4   : > { %5672 = vmatprep.mubr.bf16.mxu0 %v6847_v23  ;;  %5749 = vmatpush3.bf16.msra.mxu0 %v6118_v16  ;;  %v8471_v23 = vshll.u32 %v6665_v21, 16  ;;  %v8473_v21 = vshll.u32 %v6678_v29, 16 }
  0xb5   : > { %5621 = vmatmul.mubr.bf16.gmra.mrb[28].mxu1 %v1556_v24  ;;  %5750 = vmatprep.subr.bf16.mxu0 %v6120_v60  ;;  %v3073_v39 = vrot.slane %v8477_v42, 4 }
  0xb6   : > { %5624 = vmatprep.mubr.bf16.mxu1 %v6823_v41  ;;  %5701 = vmatpush3.bf16.msra.mxu1 %v6117_v49  ;;  %v1905_v16 = vrot.slane %v8471_v23, 5  ;;  %v8472_v41 = vshrl.u32 %v6678_v29, 16  ;;  %v1909_v4 = vrot.slane %v8473_v21, 5  ;;  %v1920_v29 = vshll.u32 %v1830_v44, 16 }
  0xb7   : > { %5702 = vmatprep.subr.bf16.mxu1 %v6119_v48  ;;  %v8374_v23 = vshll.u32 %v7007_v26, 16 }
  0xb8   : > { %5751 = vmatpush3.bf16.msra.mxu0 %v6120_v60  ;;  %v7000_v53 = vor.u32 %v1905_v16, %v1904_v34  ;;  %v1908_v49 = vrot.slane %v8472_v41, 4  ;;  %v7009_v60 = vld [vmem:[#allocation2 + $0x48] sm:$0xff]  ;;  %v8372_v34 = vshrl.u32 %v7007_v26, 16 }
  0xb9   : > { %5832 = vmatprep.subr.bf16.mxu0 %v6982_v61  ;;  %v8376_v16 = vshrl.u32 %v7009_v60, 16  ;;  %v8378_v44 = vshll.u32 %v7009_v60, 16 }
  0xba   : > { %5703 = vmatpush3.bf16.msra.mxu1 %v6119_v48  ;;  %v7015_v48 = vld [vmem:[#allocation2 + $0x50] sm:$0xff]  ;;  %v3061_v55 = vrot.slane %v8372_v34, 4 }
  0xbb   : > { %5673 = vmatmul.mubr.bf16.gmra.mrb[32].mxu0 %v6862_v31  ;;  %5784 = vmatprep.subr.bf16.mxu1 %v6994_v36  ;;  %v8475_v31 = vshll.u32 %v6723_v7, 16  ;;  %v1903_v7 = vsel %vm1847_vm2, %v1898_v8, %v6876_v3  ;;  %v8386_v41 = vshrl.u32 %v7015_v48, 16  ;;  %v3066_v43 = vrot.slane %v8378_v44, 5 }
  0xbc   : > { %5676 = vmatprep.mubr.bf16.mxu0 %v1899_v25  ;;  %v7024_v25 = vld [vmem:[#allocation2 + $0x60] sm:$0xff]  ;;  %v8476_v34 = vshll.u32 %v7015_v48, 16 }
  0xbd   : > { %v1913_v24 = vrot.slane %v8475_v31, 5  ;;  %5625 = vmatmul.mubr.bf16.gmra.mrb[32].mxu1 %v6835_v33  ;;  %v1907_v33 = vsel %vm1847_vm2, %v6876_v3, %v7000_v53  ;;  %v3062_v31 = vrot.slane %v8374_v23, 5  ;;  %v3065_v3 = vrot.slane %v8376_v16, 4 }
  0xbe   : > { %5628 = vmatprep.mubr.bf16.mxu1 %v6850_v12  ;;  %v3069_v21 = vrot.slane %v8386_v41, 4  ;;  %v3070_v59 = vrot.slane %v8476_v34, 5  ;;  %v1910_v23 = vor.u32 %v1909_v4, %v1908_v49  ;;  %v8478_v16 = vshll.u32 %v7018_v15, 16 }
  0xbf   : > { %v7045_v12 = vor.u32 %v3062_v31, %v3061_v55  ;;  %v3067_v8 = vor.u32 %v3066_v43, %v3065_v3  ;;  %v8385_v44 = vshll.u32 %v7024_v25, 16  ;;  %v8479_v34 = vshrl.u32 %v7024_v25, 16 }
  0xc0   : > { %v3074_v20 = vrot.slane %v8478_v16, 5  ;;  %v3071_v31 = vor.u32 %v3070_v59, %v3069_v21  ;;  %v7064_v43 = vor.u32 %v1913_v24, %v1912_v63  ;;  %v2248_v59 = vshrl.u32 %v2214_v35, 16 }
  0xc1   : > { %v7059_v55 = vsel %vm1847_vm2, %v6929_v13, %v7045_v12  ;;  %v7068_v42 = vsel %vm1847_vm2, %v7045_v12, %v3067_v8  ;;  %v3078_v13 = vrot.slane %v8385_v44, 5  ;;  %v2251_v16 = vshll.u32 %v2214_v35, 16 }
  0xc2   : > { %v3075_v49 = vor.u32 %v3074_v20, %v3073_v39  ;;  %v7072_v4 = vsel %vm1847_vm2, %v3067_v8, %v3071_v31  ;;  %v1919_v63 = vrot.slane %v1917_v18, 4  ;;  %v1922_v24 = vrot.slane %v1920_v29, 5  ;;  %v7089_v39 = vld [vmem:[#allocation2 + $0x8] sm:$0xf0] }
  0xc3   : > { %5677 = vmatmul.mubr.bf16.gmra.mrb[36].mxu0 %v1903_v7  ;;  %v3077_v7 = vrot.slane %v8479_v34, 4  ;;  %v2250_v21 = vrot.slane %v2248_v59, 3  ;;  %v2253_v8 = vrot.slane %v2251_v16, 4  ;;  %v2722_v29 = vrot.slane %v7089_v39, 4 }
  0xc4   : > { %5680 = vmatprep.mubr.bf16.mxu0 %v1907_v33  ;;  %v7077_v33 = vsel %vm1847_vm2, %v3071_v31, %v3075_v49  ;;  %v1923_v18 = vor.u32 %v1922_v24, %v1919_v63  ;;  %v8480_v3 = vshrl.u32 %v6729_v58, 16  ;;  %v6124_v63 = vld [vmem:[#allocation6 + $0x188] sm:$0xff]   ;;  %v7113_v24 = vld [vmem:[#allocation2 + $0x18] sm:$0xff] }
  0xc5   : > { %5629 = vmatmul.mubr.bf16.gmra.mrb[36].mxu1 %v6865_v56  ;;  %v7081_v56 = vsel %vm1847_vm2, %v7000_v53, %v1910_v23  ;;  %v7083_v20 = vor.u32 %v3078_v13, %v3077_v7  ;;  %v8481_v7 = vshll.u32 %v6729_v58, 16  ;;  %v2724_v13 = vsel %vm1539_vm1, %v2722_v29, %v6759_v37  ;;  %v7130_v29 = vld [vmem:[#allocation2 + $0x28] sm:$0xff] }
  0xc6   : > { %5632 = vmatprep.mubr.bf16.mxu1 %v6882_v14  ;;  %v7087_v14 = vsel %vm1847_vm2, %v1910_v23, %v7064_v43  ;;  %v2254_v23 = vor.u32 %v2253_v8, %v2250_v21  ;;  %v3093_v31 = vrot.slane %v8480_v3, 4  ;;  %v1924_v34 = vsel %vm1847_vm2, %v7064_v43, %v1923_v18  ;;  %v6123_v21 = vld [vmem:[#allocation6 + $0x148] sm:$0xff]  }
  0xc7   : > { %v7093_v35 = vsel %vm1847_vm2, %v3075_v49, %v7083_v20  ;;  %v3094_v49 = vrot.slane %v8481_v7, 5  ;;  %v7116_v8 = vld [vmem:[#allocation2 + $0x20] sm:$0xff]  ;;  %v8383_v37 = vshrl.u32 %v7113_v24, 16 }
  0xc8   : > { %v2263_v59 = vsel %vm1095_vm0, %v2254_v23, %v6647_v62  ;;  %v6126_v62 = vld [vmem:[#allocation6 + $0x190] sm:$0xff]   ;;  %v8379_v18 = vshll.u32 %v7116_v8, 16 }
  0xc9   : > { %v7110_v16 = vor.u32 %v3094_v49, %v3093_v31  ;;  %v6128_v31 = vld [vmem:[#allocation6 + $0x198] sm:$0xff]  }
  0xca   : > { %v4223_v3 = vrot.slane %v8379_v18, 5 }
  0xcb   : > { %5681 = vmatmul.mubr.bf16.gmra.mrb[40].mxu0 %v7081_v56 }
  0xcc   : > { %5684 = vmatprep.mubr.bf16.mxu0 %v7087_v14 }
  0xcd   : > { %5633 = vmatmul.mubr.bf16.gmra.mrb[40].mxu1 %v6886_v54 }
  0xce   : > { %5636 = vmatprep.mubr.bf16.mxu1 %v6897_v6 }
  0xd3   : > { %5685 = vmatmul.mubr.bf16.gmra.mrb[44].mxu0 %v1924_v34 }
  0xd4   : > { %5752 = vmatprep.mubr.bf16.mxu0 %v2724_v13  ;;  %v8484_v13 = vshrl.u32 %v7007_v26, 16 }
  0xd5   : > { %5637 = vmatmul.mubr.bf16.gmra.mrb[44].mxu1 %v6909_v10  ;;  %v8382_v10 = vshll.u32 %v7113_v24, 16 }
  0xd6   : > { %5704 = vmatprep.mubr.bf16.mxu1 %v2263_v59  ;;  %v2312_v59 = vrot.slane %v8484_v13, 3  ;;  %v8387_v13 = vshll.u32 %v7130_v29, 16 }
  0xdb   : > { %5753 = vmatmul.mubr.bf16.vlgmr.msra.gmra.mrb[48].mxu0 %v6874_v50  ;;  %v8380_v50 = vshrl.u32 %v7116_v8, 16 }
  0xdc   : > { %5833 = vmatpush3.bf16.msra.mxu0 %v6982_v61  ;;  %5756 = vmatprep.mubr.bf16.mxu0 %v6921_v0  ;;  %v8381_v61 = vrot.slane %v7113_v24, 4  ;;  %v6125_v0 = vld [vmem:[#allocation6 + $0x150] sm:$0xff]  }
  0xdd   : > { %5705 = vmatmul.mubr.bf16.vlgmr.msra.gmra.mrb[48].mxu1 %v6669_v22  ;;  %5834 = vmatprep.subr.bf16.mxu0 %v6124_v63  ;;  %v4218_v22 = vrot.slane %v8383_v37, 4  ;;  %v4222_v23 = vrot.slane %v8380_v50, 4  ;;  %v6127_v50 = vld [vmem:[#allocation6 + $0x158] sm:$0xff]   ;;  %v4227_v37 = vrot.slane %v8387_v13, 5  ;;  %v6132_v13 = vld [vmem:[#allocation6 + $0x1a8] sm:$0xff]  }
  0xde   : > { %5785 = vmatpush3.bf16.msra.mxu1 %v6994_v36  ;;  %5708 = vmatprep.mubr.bf16.mxu1 %v6706_v9  ;;  %v4219_v36 = vrot.slane %v8382_v10, 5  ;;  %v3906_v9 = vrot.slane %v7116_v8, 4  ;;  %v7170_v10 = vld [vmem:[#allocation2 + $0x38] sm:$0xff] }
  0xdf   : > { %5786 = vmatprep.subr.bf16.mxu1 %v6123_v21  ;;  %v4224_v49 = vor.u32 %v4223_v3, %v4222_v23  ;;  %v3908_v23 = vrot.slane %v7130_v29, 4  ;;  %v6130_v3 = vld [vmem:[#allocation6 + $0x1a0] sm:$0xff]  }
  0xe0   : > { %5835 = vmatpush3.bf16.msra.mxu0 %v6124_v63  ;;  %v7139_v34 = vor.u32 %v4219_v36, %v4218_v22  ;;  %v7144_v7 = vsel %vm1539_vm1, %v8381_v61, %v3906_v9  ;;  %v8485_v63 = vshll.u32 %v7007_v26, 16  ;;  %v7152_v22 = vld [vmem:[#allocation2 + $0x30] sm:$0xff]  ;;  %v2735_v36 = vrot.slane %v7007_v26, 4  ;;  %v6129_v61 = vld [vmem:[#allocation6 + $0x160] sm:$0xff]  }
  0xe1   : > { %5836 = vmatprep.subr.bf16.mxu0 %v6126_v62  ;;  %8483 = vst [vmem:[#allocation20_spill] sm:$0xff] %v7144_v7  ;;  %v8389_v26 = vshll.u32 %v7152_v22, 16 }
  0xe2   : > { %5787 = vmatpush3.bf16.msra.mxu1 %v6123_v21  ;;  %8482 = vst [vmem:[#allocation19_spill] sm:$0xff] %v7139_v34  ;;  %v2315_v18 = vrot.slane %v8485_v63, 4  ;;  %v8384_v21 = vshrl.u32 %v7130_v29, 16 }
  0xe3   : > { %5757 = vmatmul.mubr.bf16.gmra.mrb[52].mxu0 %v6925_v27  ;;  %5788 = vmatprep.subr.bf16.mxu1 %v6125_v0  ;;  %v7158_v27 = vsel %vm1847_vm2, %v7139_v34, %v4224_v49 }
  0xe4   : > { %5760 = vmatprep.mubr.bf16.mxu0 %v6944_v17  ;;  %5837 = vmatpush3.bf16.msra.mxu0 %v6126_v62  ;;  %8486 = vst [vmem:[#allocation21_spill] sm:$0xff] %v7158_v27  ;;  %v4226_v63 = vrot.slane %v8384_v21, 4  ;;  %v8388_v17 = vshrl.u32 %v7152_v22, 16  ;;  %v7168_v62 = vor.u32 %v2315_v18, %v2312_v59  ;;  %v3910_v21 = vrot.slane %v7152_v22, 4 }
  0xe5   : > { %5709 = vmatmul.mubr.bf16.gmra.mrb[52].mxu1 %v6718_v2  ;;  %5838 = vmatprep.subr.bf16.mxu0 %v6128_v31  ;;  %v7173_v2 = vsel %vm1539_vm1, %v3906_v9, %v3908_v23  ;;  %v8488_v59 = vshrl.u32 %v7009_v60, 16  ;;  %v8489_v9 = vshll.u32 %v7009_v60, 16 }
  0xe6   : > { %5712 = vmatprep.mubr.bf16.mxu1 %v6745_v19  ;;  %5789 = vmatpush3.bf16.msra.mxu1 %v6125_v0  ;;  %8487 = vst [vmem:[#allocation22_spill] sm:$0xff] %v7173_v2  ;;  %v2736_v19 = vsel %vm1539_vm1, %v6934_v28, %v2735_v36  ;;  %v4230_v18 = vrot.slane %v8388_v17, 4  ;;  %v4231_v0 = vrot.slane %v8389_v26, 5  ;;  %v4228_v2 = vor.u32 %v4227_v37, %v4226_v63 }
  0xe7   : > { %5790 = vmatprep.subr.bf16.mxu1 %v6127_v50  ;;  %v2321_v44 = vrot.slane %v8488_v59, 3  ;;  %v2324_v41 = vrot.slane %v8489_v9, 4  ;;  %v7189_v7 = vsel %vm1539_vm1, %v3908_v23, %v3910_v21  ;;  %v2737_v28 = vrot.slane %v7009_v60, 4  ;;  %v6131_v60 = vld [vmem:[#allocation6 + $0x168] sm:$0xff]  }
  0xe8   : > { %5839 = vmatpush3.bf16.msra.mxu0 %v6128_v31  ;;  %8490 = vst [vmem:[#allocation23_spill] sm:$0xff] %v7189_v7  ;;  %v8396_v31 = vshrl.u32 %v7170_v10, 16  ;;  %v4232_v17 = vor.u32 %v4231_v0, %v4230_v18  ;;  %v8390_v26 = vrot.slane %v7170_v10, 4  ;;  %v2317_v59 = vsel %vm1095_vm0, %v6751_v38, %v7168_v62 }
  0xe9   : > { %5840 = vmatprep.subr.bf16.mxu0 %v6130_v3  ;;  %v8491_v9 = vshrl.u32 %v7015_v48, 16  ;;  %v8492_v23 = vshll.u32 %v7015_v48, 16  ;;  %v8393_v18 = vshll.u32 %v7170_v10, 16 }
  0xea   : > { %5791 = vmatpush3.bf16.msra.mxu1 %v6127_v50  ;;  %v7203_v50 = vsel %vm1847_vm2, %v4224_v49, %v4228_v2  ;;  %v7212_v38 = vsel %vm1539_vm1, %v3910_v21, %v8390_v26  ;;  %v4234_v0 = vrot.slane %v8396_v31, 4  ;;  %v2739_v49 = vrot.slane %v7015_v48, 4 }
  0xeb   : > { %5761 = vmatmul.mubr.bf16.gmra.mrb[56].mxu0 %v6950_v40  ;;  %v2330_v37 = vrot.slane %v8491_v9, 3  ;;  %v2333_v63 = vrot.slane %v8492_v23, 4  ;;  %5792 = vmatprep.subr.bf16.mxu1 %v6129_v61  ;;  %8493 = vst [vmem:[#allocation24_spill] sm:$0xff] %v7203_v50  ;;  %v7207_v40 = vsel %vm1847_vm2, %v4228_v2, %v4232_v17  ;;  %8495 = vst [vmem:[#allocation26_spill] sm:$0xff] %v7212_v38  ;;  %v4235_v2 = vrot.slane %v8393_v18, 5  ;;  %v6133_v23 = vld [vmem:[#allocation6 + $0x170] sm:$0xff]  }
  0xec   : > { %5764 = vmatprep.mubr.bf16.mxu0 %v2736_v19  ;;  %5841 = vmatpush3.bf16.msra.mxu0 %v6130_v3  ;;  %8494 = vst [vmem:[#allocation25_spill] sm:$0xff] %v7207_v40  ;;  %v2325_v9 = vor.u32 %v2324_v41, %v2321_v44  ;;  %v6134_v3 = vld [vmem:[#allocation6 + $0x1b0] sm:$0xff]   ;;  %v2738_v21 = vsel %vm1539_vm1, %v2735_v36, %v2737_v28  ;;  %v6137_v44 = vld [vmem:[#allocation6 + $0x1b8] sm:$0xff]   ;;  %v8496_v41 = vshrl.u32 %v7018_v15, 16  ;;  %v8505_v38 = vshrl.u32 %v7113_v24, 16 }
  0xed   : > { %5713 = vmatmul.mubr.bf16.gmra.mrb[56].mxu1 %v6765_v45  ;;  %5842 = vmatprep.subr.bf16.mxu0 %v6132_v13  ;;  %v2334_v19 = vor.u32 %v2333_v63, %v2330_v37  ;;  %v4236_v26 = vor.u32 %v4235_v2, %v4234_v0  ;;  %v2740_v48 = vsel %vm1539_vm1, %v2737_v28, %v2739_v49  ;;  %v8500_v28 = vshrl.u32 %v7024_v25, 16 }
  0xee   : > { %5716 = vmatprep.mubr.bf16.mxu1 %v2317_v59  ;;  %5793 = vmatpush3.bf16.msra.mxu1 %v6129_v61  ;;  %v7223_v45 = vsel %vm1095_vm0, %v7168_v62, %v2325_v9  ;;  %v2339_v61 = vrot.slane %v8496_v41, 3  ;;  %v8497_v59 = vshll.u32 %v7018_v15, 16  ;;  %v8501_v2 = vshll.u32 %v7024_v25, 16 }
  0xef   : > { %5794 = vmatprep.subr.bf16.mxu1 %v6131_v60  ;;  %v7231_v63 = vsel %vm1847_vm2, %v4232_v17, %v4236_v26  ;;  %v7235_v36 = vsel %vm1847_vm2, %v4236_v26, %v7045_v12  ;;  %v2348_v0 = vrot.slane %v8500_v28, 3  ;;  %v2741_v17 = vrot.slane %v7018_v15, 4  ;;  %v7247_v26 = vld [vmem:[#allocation6 + $0x200] sm:$0xff]  }
  0xf0   : > { %5843 = vmatpush3.bf16.msra.mxu0 %v6132_v13  ;;  %v2342_v37 = vrot.slane %v8497_v59, 4  ;;  %8498 = vst [vmem:[#allocation27_spill] sm:$0xff] %v7231_v63  ;;  %8499 = vst [vmem:[#allocation28_spill] sm:$0xff] %v7235_v36  ;;  %v7238_v13 = vsel %vm1095_vm0, %v2325_v9, %v2334_v19  ;;  %v2351_v41 = vrot.slane %v8501_v2, 4  ;;  %v6136_v59 = vld [vmem:[#allocation6 + $0x178] sm:$0xff]   ;;  %v2743_v12 = vrot.slane %v7024_v25, 4 }
  0xf1   : > { %5844 = vmatprep.subr.bf16.mxu0 %v6134_v3  ;;  %v3439_v7 = vrot.slane %v8505_v38, 3  ;;  %v8506_v63 = vshll.u32 %v7113_v24, 16 }
  0xf2   : > { %5795 = vmatpush3.bf16.msra.mxu1 %v6131_v60  ;;  %v2343_v60 = vor.u32 %v2342_v37, %v2339_v61  ;;  %v7250_v9 = vor.u32 %v2351_v41, %v2348_v0  ;;  %v2744_v15 = vsel %vm1539_vm1, %v2741_v17, %v2743_v12  ;;  %v7267_v61 = vld [vmem:[#allocation2 + $0x70] sm:$0xff]  ;;  %v2746_v2 = vsel %vm1539_vm1, %v2743_v12, %v6868_v57  ;;  %v2230_v57 = vld [vmem:[#allocation2 + $0x88] sm:$0xf]  ;;  %v7292_v12 = vld [vmem:[#allocation2 + $0x80] sm:$0xff] }
  0xf3   : > { %5765 = vmatmul.mubr.bf16.gmra.mrb[60].mxu0 %v2738_v21  ;;  %5796 = vmatprep.subr.bf16.mxu1 %v6133_v23  ;;  %v7252_v21 = vld [vmem:[#allocation6 + $0x1c0] sm:$0xff]   ;;  %v8394_v37 = vshll.u32 %v7267_v61, 16  ;;  %v2394_v31 = vshll.u32 %v2230_v57, 16 }
  0xf4   : > { %5768 = vmatprep.mubr.bf16.mxu0 %v2740_v48  ;;  %5845 = vmatpush3.bf16.msra.mxu0 %v6134_v3  ;;  %v2742_v48 = vsel %vm1539_vm1, %v2739_v49, %v2741_v17  ;;  %v7258_v25 = vsel %vm1095_vm0, %v2334_v19, %v2343_v60  ;;  %v7260_v3 = vld [vmem:[#allocation2 + $0x68] sm:$0xff]  ;;  %v3395_v17 = vld [vmem:[#allocation2 + $0x10] sm:$0xf8] }
  0xf5   : > { %5717 = vmatmul.mubr.bf16.gmra.mrb[60].mxu1 %v7223_v45  ;;  %5846 = vmatprep.subr.bf16.mxu0 %v6137_v44  ;;  %v8391_v49 = vshrl.u32 %v7260_v3, 16  ;;  %v8392_v19 = vshll.u32 %v7260_v3, 16  ;;  %v2396_v27 = vrot.slane %v2394_v31, 4 }
  0xf6   : > { %5720 = vmatprep.mubr.bf16.mxu1 %v7238_v13  ;;  %5797 = vmatpush3.bf16.msra.mxu1 %v6133_v23  ;;  %v7264_v23 = vsel %vm1095_vm0, %v2343_v60, %v7250_v9  ;;  %v8397_v60 = vrot.slane %v7260_v3, 4 }
  0xf7   : > { %5798 = vmatprep.subr.bf16.mxu1 %v6136_v59  ;;  %v4258_v28 = vrot.slane %v8391_v49, 4  ;;  %v4259_v0 = vrot.slane %v8392_v19, 5  ;;  %v7289_v49 = vld [vmem:[#allocation2 + $0x78] sm:$0xff]  ;;  %v3926_v19 = vrot.slane %v7267_v61, 4 }
  0xf8   : > { %5847 = vmatpush3.bf16.msra.mxu0 %v6137_v44  ;;  %v8395_v44 = vshrl.u32 %v7267_v61, 16  ;;  %v3928_v40 = vrot.slane %v7289_v49, 4 }
  0xf9   : > { %5928 = vmatprep.subr.bf16.mxu0 %v7247_v26 }
  0xfa   : > { %5799 = vmatpush3.bf16.msra.mxu1 %v6136_v59  ;;  %v4262_v41 = vrot.slane %v8395_v44, 4  ;;  %v4263_v59 = vrot.slane %v8394_v37, 5  ;;  %v7332_v34 = vsel %vm1539_vm1, %v3926_v19, %v3928_v40 }
  0xfb   : > { %5769 = vmatmul.mubr.bf16.gmra.mrb[64].mxu0 %v2742_v48  ;;  %5880 = vmatprep.subr.bf16.mxu1 %v7252_v21  ;;  %v4260_v48 = vor.u32 %v4259_v0, %v4258_v28  ;;  %v3429_v28 = vshrl.u32 %v3395_v17, 16  ;;  %v3432_v0 = vshll.u32 %v3395_v17, 16  ;;  %v8401_v17 = vshll.u32 %v7292_v12, 16 }
  0xfc   : > { %5772 = vmatprep.mubr.bf16.mxu0 %v2744_v15  ;;  %v2362_v15 = vsel %vm1095_vm0, %v7250_v9, %v6699_v1  ;;  %v4264_v18 = vor.u32 %v4263_v59, %v4262_v41  ;;  %v7302_v1 = vsel %vm1539_vm1, %v8397_v60, %v3926_v19  ;;  %v8399_v41 = vshll.u32 %v7289_v49, 16 }
  0xfd   : > { %5721 = vmatmul.mubr.bf16.gmra.mrb[64].mxu1 %v7258_v25  ;;  %v7296_v37 = vsel %vm1847_vm2, %v7083_v20, %v4260_v48  ;;  %8503 = vst [vmem:[#allocation30_spill] sm:$0xff] %v7302_v1  ;;  %v2391_v59 = vshrl.u32 %v2230_v57, 16  ;;  %v3033_v60 = vshll.u32 %v7089_v39, 16  ;;  %v3431_v1 = vrot.slane %v3429_v28, 3 }
  0xfe   : > { %5724 = vmatprep.mubr.bf16.mxu1 %v7264_v23  ;;  %8502 = vst [vmem:[#allocation29_spill] sm:$0xff] %v7296_v37  ;;  %v7305_v44 = vsel %vm1847_vm2, %v4260_v48, %v4264_v18  ;;  %v3030_v37 = vshrl.u32 %v7089_v39, 16  ;;  %v4271_v36 = vrot.slane %v8401_v17, 5  ;;  %v3442_v39 = vrot.slane %v8506_v63, 4 }
  0xff   : > { %8504 = vst [vmem:[#allocation31_spill] sm:$0xff] %v7305_v44  ;;  %v3434_v44 = vrot.slane %v3432_v0, 4  ;;  %v2393_v50 = vrot.slane %v2391_v59, 3  ;;  %v8403_v28 = vrot.slane %v7292_v12, 4  ;;  %v3035_v17 = vrot.slane %v3033_v60, 5 }
 0x100   : > { %v2753_v63 = vrot.slane %v2230_v57, 4 }
 0x101   : > { %v7341_v31 = vsel %vm1539_vm1, %v3928_v40, %v8403_v28 }
 0x103   : > { %5773 = vmatmul.mubr.bf16.gmra.mrb[68].mxu0 %v2746_v2  ;;  %v8398_v2 = vshrl.u32 %v7289_v49, 16 }
 0x104   : > { %5776 = vmatprep.mubr.bf16.mxu0 %v6886_v54  ;;  %v8400_v54 = vshrl.u32 %v7292_v12, 16 }
 0x105   : > { %5725 = vmatmul.mubr.bf16.gmra.mrb[68].mxu1 %v2362_v15  ;;  %v4266_v48 = vrot.slane %v8398_v2, 4  ;;  %v4267_v15 = vrot.slane %v8399_v41, 5  ;;  %v7327_v41 = vld [vmem:[#allocation2 + $0x88] sm:$0xff] }
 0x106   : > { %5728 = vmatprep.mubr.bf16.mxu1 %v6749_v5  ;;  %v4270_v5 = vrot.slane %v8400_v54, 4  ;;  %v3032_v54 = vrot.slane %v3030_v37, 4  ;;  %v3443_v37 = vor.u32 %v3442_v39, %v3439_v7  ;;  %v3563_v19 = vshrl.u32 %v7327_v41, 16 }
 0x107   : > { %v4268_v2 = vor.u32 %v4267_v15, %v4266_v48  ;;  %v8508_v7 = vshrl.u32 %v7116_v8, 16 }
 0x108   : > { %v4272_v0 = vor.u32 %v4271_v36, %v4270_v5  ;;  %v3036_v60 = vor.u32 %v3035_v17, %v3032_v54  ;;  %v4274_v57 = vrot.slane %v3563_v19, 4  ;;  %v8511_v54 = vshll.u32 %v7130_v29, 16 }
 0x109   : > { %v7335_v38 = vsel %vm1847_vm2, %v4264_v18, %v4268_v2  ;;  %v3566_v18 = vshll.u32 %v7327_v41, 16 }
 0x10a   : > { %v7344_v36 = vsel %vm1847_vm2, %v4268_v2, %v4272_v0  ;;  %v8507_v2 = vrot.slane %v6729_v58, 4  ;;  %v3460_v17 = vrot.slane %v8511_v54, 4  ;;  %v3040_v15 = vsel %vm1847_vm2, %v3036_v60, %v6791_v47  ;;  %v6141_v47 = vld [vmem:[#allocation6 + $0x208] sm:$0xff]  }
 0x10b   : > { %5777 = vmatmul.mubr.bf16.gmra.mrb[72].mxu0 %v6897_v6  ;;  %v3435_v6 = vor.u32 %v3434_v44, %v3431_v1  ;;  %v4275_v40 = vrot.slane %v3566_v18, 5  ;;  %v3448_v44 = vrot.slane %v8508_v7, 3  ;;  %v8509_v1 = vshll.u32 %v7116_v8, 16  ;;  %v6143_v7 = vld [vmem:[#allocation6 + $0x210] sm:$0xff]   ;;  %v6149_v54 = vld [vmem:[#allocation6 + $0x228] sm:$0xff]  }
 0x10c   : > { %5780 = vmatprep.mubr.bf16.mxu0 %v6979_v52  ;;  %v2397_v52 = vor.u32 %v2396_v27, %v2393_v50  ;;  %v8510_v27 = vshrl.u32 %v7130_v29, 16  ;;  %v8514_v60 = vshrl.u32 %v7170_v10, 16 }
 0x10d   : > { %5729 = vmatmul.mubr.bf16.gmra.mrb[72].mxu1 %v6769_v51  ;;  %v2754_v51 = vsel %vm1539_vm1, %v8507_v2, %v2753_v63  ;;  %v3451_v59 = vrot.slane %v8509_v1, 4  ;;  %v7366_v48 = vor.u32 %v4275_v40, %v4274_v57  ;;  %v8512_v63 = vshrl.u32 %v7152_v22, 16 }
 0x10e   : > { %5732 = vmatprep.mubr.bf16.mxu1 %v6987_v32  ;;  %v3444_v32 = vsel %vm1095_vm0, %v3435_v6, %v3443_v37  ;;  %v3457_v50 = vrot.slane %v8510_v27, 3  ;;  %v2398_v58 = vsel %vm1095_vm0, %v6973_v46, %v2397_v52  ;;  %v8513_v46 = vshll.u32 %v7152_v22, 16  ;;  %v6146_v27 = vld [vmem:[#allocation6 + $0x1e0] sm:$0xff]  }
 0x10f   : > { %v7374_v8 = vsel %vm1847_vm2, %v4272_v0, %v7366_v48  ;;  %v3452_v5 = vor.u32 %v3451_v59, %v3448_v44  ;;  %v3466_v6 = vrot.slane %v8512_v63, 3  ;;  %v3475_v0 = vrot.slane %v8514_v60, 3  ;;  %v6142_v44 = vld [vmem:[#allocation6 + $0x1d0] sm:$0xff]  }
 0x110   : > { %v3461_v39 = vor.u32 %v3460_v17, %v3457_v50  ;;  %v3469_v52 = vrot.slane %v8513_v46, 4  ;;  %v8515_v40 = vshll.u32 %v7170_v10, 16  ;;  %v6148_v17 = vld [vmem:[#allocation6 + $0x1e8] sm:$0xff]   ;;  %v8521_v46 = vshrl.u32 %v7267_v61, 16 }
 0x111   : > { %v3453_v29 = vsel %vm1095_vm0, %v3443_v37, %v3452_v5 }
 0x112   : > { %v3462_v57 = vsel %vm1095_vm0, %v3452_v5, %v3461_v39  ;;  %v3478_v2 = vrot.slane %v8515_v40, 4  ;;  %v3470_v37 = vor.u32 %v3469_v52, %v3466_v6  ;;  %v6150_v5 = vld [vmem:[#allocation6 + $0x1f0] sm:$0xff]   ;;  %v6153_v6 = vld [vmem:[#allocation6 + $0x238] sm:$0xff]   ;;  %v3538_v52 = vrot.slane %v8521_v46, 3 }
 0x113   : > { %5781 = vmatmul.mubr.bf16.gmra.mrb[76].mxu0 %v2754_v51  ;;  %v6140_v51 = vld [vmem:[#allocation6 + $0x1c8] sm:$0xff]  }
 0x114   : > { %5848 = vmatprep.mubr.bf16.mxu0 %v3444_v32  ;;  %v3479_v22 = vor.u32 %v3478_v2, %v3475_v0  ;;  %v3471_v1 = vsel %vm1095_vm0, %v3461_v39, %v3470_v37  ;;  %v8516_v32 = vld [vmem:[#allocation16_spill] sm:$0xff]  ;;  %v8524_v0 = vshll.u32 %v7289_v49, 16 }
 0x115   : > { %5733 = vmatmul.mubr.bf16.gmra.mrb[76].mxu1 %v2398_v58  ;;  %v8518_v58 = vld [vmem:[#allocation18_spill] sm:$0xff] }
 0x116   : > { %5800 = vmatprep.mubr.bf16.mxu1 %v3040_v15  ;;  %v3480_v59 = vsel %vm1095_vm0, %v3470_v37, %v3479_v22  ;;  %v3489_v50 = vsel %vm1095_vm0, %v3479_v22, %v7168_v62  ;;  %v6151_v15 = vld [vmem:[#allocation6 + $0x230] sm:$0xff]   ;;  %v8519_v62 = vshrl.u32 %v7260_v3, 16  ;;  %v3550_v40 = vrot.slane %v8524_v0, 4 }
 0x117   : > { %v8526_v22 = vshll.u32 %v7292_v12, 16 }
 0x118   : > { %v3529_v39 = vrot.slane %v8519_v62, 3 }
 0x11b   : > { %5849 = vmatmul.mubr.bf16.vlgmr.msra.gmra.mrb[80].mxu0 %v3453_v29  ;;  %v8520_v29 = vshll.u32 %v7260_v3, 16 }
 0x11c   : > { %5929 = vmatpush3.bf16.msra.mxu0 %v7247_v26  ;;  %5852 = vmatprep.mubr.bf16.mxu0 %v3462_v57  ;;  %v6145_v26 = vld [vmem:[#allocation6 + $0x218] sm:$0xff]   ;;  %v8522_v57 = vshll.u32 %v7267_v61, 16 }
 0x11d   : > { %5801 = vmatmul.mubr.bf16.vlgmr.msra.gmra.mrb[80].mxu1 %v6832_v11  ;;  %5930 = vmatprep.subr.bf16.mxu0 %v6141_v47  ;;  %v6144_v11 = vld [vmem:[#allocation6 + $0x1d8] sm:$0xff]   ;;  %v3532_v63 = vrot.slane %v8520_v29, 4  ;;  %v3096_v29 = vsel %vm1847_vm2, %v7064_v43, %v7110_v16 }
 0x11e   : > { %5881 = vmatpush3.bf16.msra.mxu1 %v7252_v21  ;;  %5804 = vmatprep.mubr.bf16.mxu1 %v6901_v30  ;;  %v6147_v21 = vld [vmem:[#allocation6 + $0x220] sm:$0xff]   ;;  %v8517_v30 = vld [vmem:[#allocation17_spill] sm:$0xff] }
 0x11f   : > { %5882 = vmatprep.subr.bf16.mxu1 %v6140_v51 }
 0x120   : > { %5931 = vmatpush3.bf16.msra.mxu0 %v6141_v47  ;;  %v3541_v47 = vrot.slane %v8522_v57, 4 }
 0x121   : > { %5932 = vmatprep.subr.bf16.mxu0 %v6143_v7 }
 0x122   : > { %5883 = vmatpush3.bf16.msra.mxu1 %v6140_v51  ;;  %v3542_v2 = vor.u32 %v3541_v47, %v3538_v52 }
 0x123   : > { %5853 = vmatmul.mubr.bf16.gmra.mrb[84].mxu0 %v3471_v1  ;;  %5884 = vmatprep.subr.bf16.mxu1 %v6142_v44  ;;  %v7430_v1 = vld [vmem:[#allocation2 + $0x90] sm:$0xf] }
 0x124   : > { %5856 = vmatprep.mubr.bf16.mxu0 %v3480_v59  ;;  %5933 = vmatpush3.bf16.msra.mxu0 %v6143_v7  ;;  %v3559_v7 = vrot.slane %v8526_v22, 4  ;;  %v3084_v59 = vsel %vm1847_vm2, %v7083_v20, %v7000_v53 }
 0x125   : > { %5805 = vmatmul.mubr.bf16.gmra.mrb[84].mxu1 %v8516_v32  ;;  %5934 = vmatprep.subr.bf16.mxu0 %v6145_v26 }
 0x126   : > { %5808 = vmatprep.mubr.bf16.mxu1 %v8517_v30  ;;  %5885 = vmatpush3.bf16.msra.mxu1 %v6142_v44  ;;  %v3568_v44 = vrot.slane %v3566_v18, 4  ;;  %v3575_v30 = vshll.u32 %v7430_v1, 16 }
 0x127   : > { %5886 = vmatprep.subr.bf16.mxu1 %v6144_v11 }
 0x128   : > { %5935 = vmatpush3.bf16.msra.mxu0 %v6145_v26  ;;  %v3869_v26 = vld [vmem:[#allocation2 + $0x10] sm:$0xf0]  ;;  %v3577_v20 = vrot.slane %v3575_v30, 4  ;;  %v8537_v30 = vld [vmem:[#allocation22_spill] sm:$0xff] }
 0x129   : > { %5936 = vmatprep.subr.bf16.mxu0 %v6147_v21  ;;  %v3903_v57 = vrot.slane %v3869_v26, 4 }
 0x12a   : > { %5887 = vmatpush3.bf16.msra.mxu1 %v6144_v11  ;;  %v3012_v11 = vld [vmem:[#allocation2 + $0x88] sm:$0x1f] }
 0x12b   : > { %5857 = vmatmul.mubr.bf16.gmra.mrb[88].mxu0 %v3489_v50  ;;  %5888 = vmatprep.subr.bf16.mxu1 %v6146_v27  ;;  %v4214_v50 = vshll.u32 %v3869_v26, 16  ;;  %v3098_v18 = vshrl.u32 %v3012_v11, 16 }
 0x12c   : > { %5860 = vmatprep.mubr.bf16.mxu0 %v7223_v45  ;;  %5937 = vmatpush3.bf16.msra.mxu0 %v6147_v21  ;;  %v6152_v45 = vld [vmem:[#allocation6 + $0x1f8] sm:$0xff]   ;;  %v3572_v21 = vshrl.u32 %v7430_v1, 16 }
 0x12d   : > { %5809 = vmatmul.mubr.bf16.gmra.mrb[88].mxu1 %v8518_v58  ;;  %5938 = vmatprep.subr.bf16.mxu0 %v6149_v54  ;;  %v3100_v62 = vrot.slane %v3098_v18, 4 }
 0x12e   : > { %5812 = vmatprep.mubr.bf16.mxu1 %v7059_v55  ;;  %5889 = vmatpush3.bf16.msra.mxu1 %v6146_v27  ;;  %v3533_v55 = vor.u32 %v3532_v63, %v3529_v39  ;;  %v4211_v27 = vshrl.u32 %v3869_v26, 16  ;;  %v3574_v53 = vrot.slane %v3572_v21, 3 }
 0x12f   : > { %5890 = vmatprep.subr.bf16.mxu1 %v6148_v17 }
 0x130   : > { %5939 = vmatpush3.bf16.msra.mxu0 %v6149_v54  ;;  %v3543_v61 = vsel %vm1095_vm0, %v3533_v55, %v3542_v2  ;;  %v3101_v54 = vshll.u32 %v3012_v11, 16  ;;  %v3578_v63 = vor.u32 %v3577_v20, %v3574_v53  ;;  %v8535_v11 = vld [vmem:[#allocation20_spill] sm:$0xff]  ;;  %v8541_v20 = vld [vmem:[#allocation25_spill] sm:$0xff] }
 0x131   : > { %5940 = vmatprep.subr.bf16.mxu0 %v6151_v15 }
 0x132   : > { %5891 = vmatpush3.bf16.msra.mxu1 %v6148_v17  ;;  %v3103_v39 = vrot.slane %v3101_v54, 5 }
 0x133   : > { %5861 = vmatmul.mubr.bf16.gmra.mrb[92].mxu0 %v7238_v13  ;;  %5892 = vmatprep.subr.bf16.mxu1 %v6150_v5  ;;  %v3534_v13 = vsel %vm1095_vm0, %v7250_v9, %v3533_v55  ;;  %v8525_v9 = vshrl.u32 %v7292_v12, 16 }
 0x134   : > { %5864 = vmatprep.mubr.bf16.mxu0 %v7258_v25  ;;  %5941 = vmatpush3.bf16.msra.mxu0 %v6151_v15  ;;  %v8523_v25 = vshrl.u32 %v7289_v49, 16  ;;  %v4213_v15 = vrot.slane %v4211_v27, 4  ;;  %v3104_v55 = vor.u32 %v3103_v39, %v3100_v62 }
 0x135   : > { %5813 = vmatmul.mubr.bf16.gmra.mrb[92].mxu1 %v7068_v42  ;;  %5942 = vmatprep.subr.bf16.mxu0 %v6153_v6  ;;  %v3556_v37 = vrot.slane %v8525_v9, 3 }
 0x136   : > { %5816 = vmatprep.mubr.bf16.mxu1 %v7072_v4  ;;  %5893 = vmatpush3.bf16.msra.mxu1 %v6150_v5  ;;  %v3547_v60 = vrot.slane %v8523_v25, 3  ;;  %v4216_v5 = vrot.slane %v4214_v50, 5 }
 0x137   : > { %5894 = vmatprep.subr.bf16.mxu1 %v6152_v45  ;;  %v3560_v32 = vor.u32 %v3559_v7, %v3556_v37 }
 0x138   : > { %5943 = vmatpush3.bf16.msra.mxu0 %v6153_v6  ;;  %v3551_v51 = vor.u32 %v3550_v40, %v3547_v60  ;;  %v8527_v60 = vld [vmem:[#allocation19_spill] sm:$0xff]  ;;  %v3105_v40 = vsel %vm1847_vm2, %v7110_v16, %v3104_v55  ;;  %v453_v16 = vlaneseq  ;;  %v8544_v55 = vld [vmem:[#allocation26_spill] sm:$0xff] }
 0x13a   : > { %5895 = vmatpush3.bf16.msra.mxu1 %v6152_v45  ;;  %v3552_v49 = vsel %vm1095_vm0, %v3542_v2, %v3551_v51  ;;  %v3561_v17 = vsel %vm1095_vm0, %v3551_v51, %v3560_v32  ;;  %v8528_v2 = vrot.slane %v7113_v24, 4  ;;  %v7486_v26 = vshrl.u32 %v453_v16, 7 }
 0x13b   : > { %5865 = vmatmul.mubr.bf16.gmra.mrb[96].mxu0 %v7264_v23  ;;  %v3565_v23 = vrot.slane %v3563_v19, 3 }
 0x13c   : > { %5868 = vmatprep.mubr.bf16.mxu0 %v3534_v13  ;;  %v3905_v51 = vsel %vm1539_vm1, %v3903_v57, %v8528_v2  ;;  %v456_v54 = vadd.s32 16, %v7486_v26  ;;  %v460_v39 = vadd.s32 48, %v7486_v26  ;;  %v6154_v57 = vld [vmem:[#allocation2 + $0x40] sm:$0xff]  ;;  %v462_v28 = vadd.s32 64, %v7486_v26 }
 0x13d   : > { %5817 = vmatmul.mubr.bf16.gmra.mrb[96].mxu1 %v7077_v33  ;;  %v3569_v19 = vor.u32 %v3568_v44, %v3565_v23  ;;  %v8533_v44 = vld [vmem:[#allocation21_spill] sm:$0xff] }
 0x13e   : > { %5820 = vmatprep.mubr.bf16.mxu1 %v7093_v35  ;;  %v504_v62 = vand.u32 15, %v456_v54 }
 0x13f   : > { %v3570_v58 = vsel %vm1095_vm0, %v3560_v32, %v3569_v19  ;;  %v3579_v43 = vsel %vm1095_vm0, %v3569_v19, %v3578_v63  ;;  %v490_v63 = vand.u32 15, %v7486_v26 }
 0x140   : > { %vm872_vm3 = vcmp.ge.s32.totalorder %v504_v62, 1  ;;  %v461_v62 = vadd.s32 56, %v7486_v26 }
 0x141   : > { %vm870_vm4 = vcmp.ge.s32.totalorder %v490_v63, 1 }
 0x143   : > { %5869 = vmatmul.mubr.bf16.gmra.mrb[100].mxu0 %v3543_v61 }
 0x144   : > { %5872 = vmatprep.mubr.bf16.mxu0 %v3552_v49 }
 0x145   : > { %5821 = vmatmul.mubr.bf16.gmra.mrb[100].mxu1 %v3084_v59  ;;  %v8534_v59 = vld [vmem:[#allocation24_spill] sm:$0xff] }
 0x146   : > { %5824 = vmatprep.mubr.bf16.mxu1 %v7081_v56  ;;  %v4217_v56 = vor.u32 %v4216_v5, %v4213_v15  ;;  %v8542_v15 = vld [vmem:[#allocation27_spill] sm:$0xff]  ;;  %v455_v5 = vadd.s32 8, %v7486_v26 }
 0x148   : > { %v4221_v0 = vsel %vm1847_vm2, %v4217_v56, %v8527_v60 }
 0x14b   : > { %5873 = vmatmul.mubr.bf16.gmra.mrb[104].mxu0 %v3561_v17 }
 0x14c   : > { %5876 = vmatprep.mubr.bf16.mxu0 %v3570_v58  ;;  %v457_v58 = vadd.s32 24, %v7486_v26 }
 0x14d   : > { %5825 = vmatmul.mubr.bf16.gmra.mrb[104].mxu1 %v7087_v14 }
 0x14e   : > { %v7444_v6 = vpop.f32.mrb[0].mxu0  ;;  %v7446_v45 = vpop.f32.mrb[0].mxu1  ;;  %5828 = vmatprep.mubr.bf16.mxu1 %v3096_v29  ;;  %v8543_v29 = vld [vmem:[#allocation23_spill] sm:$0xff] }
 0x14f   : > { %v7448_v46 = vpop.f32.mrb[1].mxu0  ;;  %v7450_v52 = vpop.f32.mrb[1].mxu1 }
 0x150   : > { %v7452_v47 = vpop.f32.mrb[2].mxu0  ;;  %v7454_v13 = vpop.f32.mrb[2].mxu1 }
 0x151   : > { %v7457_v25 = vpop.f32.mrb[3].mxu0  ;;  %v7459_v14 = vpop.f32.mrb[3].mxu1 }
 0x153   : > { %5877 = vmatmul.mubr.bf16.gmra.mrb[108].mxu0 %v3579_v43  ;;  %v3914_v43 = vrot.slane %v6154_v57, 4 }
 0x154   : > { %5944 = vmatprep.mubr.bf16.mxu0 %v4221_v0  ;;  %v511_v0 = vand.u32 15, %v457_v58  ;;  %v8548_v58 = vrot.slane %v7170_v10, 4 }
 0x155   : > { %5829 = vmatmul.mubr.bf16.gmra.mrb[108].mxu1 %v3105_v40  ;;  %v6155_v40 = vld [vmem:[#allocation2 + $0x48] sm:$0xff] }
 0x156   : > { %v7468_v61 = vpop.f32.mrb[4].mxu0  ;;  %v7470_v9 = vpop.f32.mrb[4].mxu1  ;;  %5896 = vmatprep.mubr.bf16.mxu1 %v3905_v51  ;;  %v3916_v2 = vrot.slane %v6155_v40, 4  ;;  %v458_v51 = vadd.s32 32, %v7486_v26  ;;  %vm7536_vm5 = vcmp.le.s32.totalorder %v511_v0, 14  ;;  %v459_v0 = vadd.s32 40, %v7486_v26 }
 0x157   : > { %8529 = vst [vmem:[#allocation16_spill] sm:$0xff] %v7470_v9  ;;  %v7472_v37 = vpop.f32.mrb[5].mxu0  ;;  %v7474_v22 = vpop.f32.mrb[5].mxu1 }
 0x158   : > { %8530 = vst [vmem:[#allocation17_spill] sm:$0xff] %v7474_v22  ;;  %v7476_v7 = vpop.f32.mrb[6].mxu0  ;;  %v7478_v49 = vpop.f32.mrb[6].mxu1  ;;  %v518_v40 = vand.u32 15, %v458_v51  ;;  %v7561_v51 = vadd.s32 144, %v7486_v26  ;;  %v525_v10 = vand.u32 15, %v459_v0 }
 0x159   : > { %8531 = vst [vmem:[#allocation18_spill] sm:$0xff] %v7478_v49  ;;  %v7480_v23 = vpop.f32.mrb[7].mxu0  ;;  %v7482_v24 = vpop.f32.mrb[7].mxu1 }
 0x15a   : > { %8532 = vst [vmem:[#allocation19_spill] sm:$0xff] %v7482_v24  ;;  %vm7582_vm8 = vcmp.ge.s32.totalorder %v518_v40, 1  ;;  %v465_v40 = vadd.s32 88, %v7486_v26  ;;  %vm7598_vm10 = vcmp.le.s32.totalorder %v525_v10, 14 }
 0x15b   : > { %5945 = vmatmul.mubr.bf16.vlgmr.msra.gmra.mrb[112].mxu0 %v8533_v44 }
 0x15c   : > { %5948 = vmatprep.mubr.bf16.mxu0 %v8534_v59  ;;  %v497_v59 = vand.u32 15, %v455_v5  ;;  %v3917_v5 = vsel %vm1539_vm1, %v3914_v43, %v3916_v2 }
 0x15d   : > { %5897 = vmatmul.mubr.bf16.vlgmr.msra.gmra.mrb[112].mxu1 %v8535_v11  ;;  %v532_v11 = vand.u32 15, %v460_v39  ;;  %v8408_v39 = vmov 0.0  }
 0x15e   : > { %v7489_v32 = vpop.f32.mrb[8].mxu0  ;;  %v7491_v21 = vpop.f32.mrb[8].mxu1  ;;  %5900 = vmatprep.mubr.bf16.mxu1 %v8537_v30  ;;  %v7543_v63 = vsel %vm872_vm3, 1.0, %v8408_v39  ;;  %vm7545_vm6 = vcmp.le.s32.totalorder %v497_v59, 14 }
 0x15f   : > { %8536 = vst [vmem:[#allocation21_spill] sm:$0xff] %v7491_v21  ;;  %v7494_v19 = vpop.f32.mrb[9].mxu0  ;;  %v7496_v27 = vpop.f32.mrb[9].mxu1  ;;  %vm7554_vm7 = vcmp.ge.s32.totalorder %v532_v11, 1  ;;  %v546_v21 = vand.u32 15, %v462_v28 }
 0x160   : > { %8538 = vst [vmem:[#allocation24_spill] sm:$0xff] %v7496_v27  ;;  %v7498_v50 = vpop.f32.mrb[10].mxu0  ;;  %v7500_v18 = vpop.f32.mrb[10].mxu1 }
 0x161   : > { %8539 = vst [vmem:[#allocation20_spill] sm:$0xff] %v7500_v18  ;;  %v7503_v17 = vpop.f32.mrb[11].mxu0  ;;  %v7505_v53 = vpop.f32.mrb[11].mxu1  ;;  %vm7634_vm12 = vcmp.ge.s32.totalorder %v546_v21, 1 }
 0x162   : > { %8540 = vst [vmem:[#allocation22_spill] sm:$0xff] %v7505_v53  ;;  %v6157_v53 = vld [vmem:[#allocation2 + $0x58] sm:$0xff] }
 0x163   : > { %5949 = vmatmul.mubr.bf16.gmra.mrb[116].mxu0 %v8541_v20  ;;  %v3920_v18 = vrot.slane %v6157_v53, 4 }
 0x164   : > { %5952 = vmatprep.mubr.bf16.mxu0 %v8542_v15  ;;  %v3915_v15 = vsel %vm1539_vm1, %v8548_v58, %v3914_v43  ;;  %v7552_v58 = vsel %vm870_vm4, 1.0, %v8408_v39 }
 0x165   : > { %5901 = vmatmul.mubr.bf16.gmra.mrb[116].mxu1 %v8543_v29  ;;  %8556 = vst [vmem:[#allocation32_spill] sm:$0xff] %v7552_v58  ;;  %v1473_v57 = vmul.f32 %v7552_v58, %v7448_v46 }
 0x166   : > { %v7514_v56 = vpop.f32.mrb[12].mxu0  ;;  %5904 = vmatprep.mubr.bf16.mxu1 %v8544_v55  ;;  %v7520_v16 = vpop.f32.mrb[12].mxu1  ;;  %v8550_v55 = vld [vmem:[#allocation28_spill] sm:$0xff] }
 0x167   : > { %v7517_v60 = vpop.f32.mrb[13].mxu0  ;;  %8545 = vst [vmem:[#allocation25_spill] sm:$0xff] %v7520_v16  ;;  %v7524_v30 = vpop.f32.mrb[13].mxu1  ;;  %8553 = vst [vmem:[#allocation28_spill] sm:$0xff] %v7543_v63  ;;  %v539_v16 = vand.u32 15, %v461_v62 }
 0x168   : > { %v7522_v44 = vpop.f32.mrb[14].mxu0  ;;  %8546 = vst [vmem:[#allocation27_spill] sm:$0xff] %v7524_v30  ;;  %v7528_v20 = vpop.f32.mrb[14].mxu1 }
 0x169   : > { %v7526_v54 = vpop.f32.mrb[15].mxu0  ;;  %8547 = vst [vmem:[#allocation23_spill] sm:$0xff] %v7528_v20  ;;  %v7533_v29 = vpop.f32.mrb[15].mxu1  ;;  %v1475_v20 = vmul.f32 %v7444_v6, %v7543_v63  ;;  %vm973_vm9 = vcmp.le.s32.totalorder %v539_v16, 14  ;;  %v6158_v16 = vld [vmem:[#allocation2 + $0x60] sm:$0xff] }
 0x16a   : > { %8549 = vst [vmem:[#allocation26_spill] sm:$0xff] %v7533_v29  ;;  %v6156_v29 = vld [vmem:[#allocation2 + $0x50] sm:$0xff] }
 0x16b   : > { %5953 = vmatmul.mubr.bf16.gmra.mrb[120].mxu0 %v8550_v55  ;;  %v464_v55 = vadd.s32 80, %v7486_v26  ;;  %v3918_v11 = vrot.slane %v6156_v29, 4 }
 0x16c   : > { %5956 = vmatprep.mubr.bf16.mxu0 %v7068_v42  ;;  %v7566_v42 = vsel %vm7536_vm5, 1.0, %v8408_v39 }
 0x16d   : > { %5905 = vmatmul.mubr.bf16.gmra.mrb[120].mxu1 %v3915_v15  ;;  %8559 = vst [vmem:[#allocation33_spill] sm:$0xff] %v7566_v42  ;;  %v7573_v15 = vsel %vm7545_vm6, 1.0, %v8408_v39  ;;  %v560_v27 = vand.u32 15, %v464_v55  ;;  %v3921_v28 = vsel %vm1539_vm1, %v3918_v11, %v3920_v18 }
 0x16e   : > { %v5658_v59 = vpop.f32.mrb[16].mxu0  ;;  %5908 = vmatprep.mubr.bf16.mxu1 %v3917_v5  ;;  %8560 = vst [vmem:[#allocation34_spill] sm:$0xff] %v7573_v15  ;;  %v7580_v5 = vsel %vm7554_vm7, 1.0, %v8408_v39  ;;  %v5610_v6 = vpop.f32.mrb[16].mxu1  ;;  %v3919_v39 = vsel %vm1539_vm1, %v3916_v2, %v3918_v11  ;;  %v463_v2 = vadd.s32 72, %v7486_v26 }
 0x16f   : > { %v2023_v30 = vpop.f32.mrb[17].mxu0  ;;  %v1800_v62 = vadd.f32 %v5610_v6, %v1475_v20  ;;  %v1671_v24 = vpop.f32.mrb[17].mxu1  ;;  %vm7623_vm11 = vcmp.ge.s32.totalorder %v560_v27, 1 }
 0x170   : > { %v5659_v63 = vpop.f32.mrb[18].mxu0  ;;  %v1798_v46 = vadd.f32 %v1671_v24, %v1473_v57  ;;  %v5611_v58 = vpop.f32.mrb[18].mxu1  ;;  %v616_v57 = vand.u32 15, %v7561_v51  ;;  %v466_v51 = vadd.s32 96, %v7486_v26 }
 0x171   : > { %v2153_v53 = vmul.f32 %v5659_v63, %v7566_v42  ;;  %v2026_v49 = vpop.f32.mrb[19].mxu0  ;;  %v7590_v22 = vadd.f32 %v5658_v59, %v1800_v62  ;;  %v1801_v9 = vadd.f32 %v5611_v58, %v7452_v47  ;;  %v1674_v0 = vpop.f32.mrb[19].mxu1  ;;  %v8565_v63 = vmov 0.0   ;;  %v8621_v42 = vld [vmem:[#allocation26_spill] sm:$0xff] }
 0x172   : > { %v2151_v43 = vmul.f32 %v7573_v15, %v2026_v49  ;;  %v7595_v20 = vadd.f32 %v2023_v30, %v1798_v46  ;;  %v1799_v24 = vadd.f32 %v1674_v0, %v7457_v25  ;;  %v7607_v47 = vsel %vm7582_vm8, 1.0, %v8565_v63 }
 0x173   : > { %5957 = vmatmul.mubr.bf16.gmra.mrb[124].mxu0 %v7072_v4  ;;  %v468_v4 = vadd.s32 112, %v7486_v26  ;;  %v3922_v30 = vrot.slane %v6158_v16, 4  ;;  %v7610_v58 = vadd.f32 %v2153_v53, %v1801_v9  ;;  %v7613_v25 = vadd.s32 128, %v7486_v26 }
 0x174   : > { %5960 = vmatprep.mubr.bf16.mxu0 %v7077_v33  ;;  %v7616_v33 = vsel %vm973_vm9, 1.0, %v8565_v63  ;;  %v567_v59 = vand.u32 15, %v465_v40  ;;  %v7618_v11 = vadd.f32 %v2151_v43, %v1799_v24  ;;  %v7630_v6 = vsel %vm7598_vm10, 1.0, %v8565_v63 }
 0x175   : > { %5909 = vmatmul.mubr.bf16.gmra.mrb[124].mxu1 %v3919_v39  ;;  %8566 = vst [vmem:[#allocation35_spill] sm:$0xff] %v7616_v33  ;;  %v1479_v39 = vmul.f32 %v7468_v61, %v7580_v5  ;;  %8569 = vst [vmem:[#allocation36_spill] sm:$0xff] %v7630_v6  ;;  %v1477_v10 = vmul.f32 %v7607_v47, %v7472_v37  ;;  %v553_v53 = vand.u32 15, %v463_v2  ;;  %v588_v46 = vand.u32 15, %v468_v4 }
 0x176   : > { %v5662_v55 = vpop.f32.mrb[20].mxu0  ;;  %5912 = vmatprep.mubr.bf16.mxu1 %v3921_v28  ;;  %v5614_v61 = vpop.f32.mrb[20].mxu1  ;;  %v3923_v24 = vsel %vm1539_vm1, %v3920_v18, %v3922_v30  ;;  %vm7642_vm13 = vcmp.le.s32.totalorder %v567_v59, 14  ;;  %v8574_v15 = vrot.slane %v7260_v3, 4  ;;  %v469_v18 = vadd.s32 120, %v7486_v26 }
 0x177   : > { %v2039_v9 = vpop.f32.mrb[21].mxu0  ;;  %v1804_v43 = vadd.f32 %v5614_v61, %v1479_v39  ;;  %v1687_v40 = vpop.f32.mrb[21].mxu1  ;;  %v7658_v59 = vsel %vm7623_vm11, 1.0, %v8565_v63  ;;  %vm975_vm14 = vcmp.le.s32.totalorder %v553_v53, 14  ;;  %vm884_vm15 = vcmp.ge.s32.totalorder %v588_v46, 1 }
 0x178   : > { %v5663_v27 = vpop.f32.mrb[22].mxu0  ;;  %v1802_v49 = vadd.f32 %v1687_v40, %v1477_v10  ;;  %v5615_v16 = vpop.f32.mrb[22].mxu1  ;;  %v3925_v2 = vsel %vm1539_vm1, %v3922_v30, %v8574_v15  ;;  %v467_v10 = vadd.s32 104, %v7486_v26  ;;  %v8575_v15 = vld [vmem:[#allocation29_spill] sm:$0xff]  ;;  %v7674_v29 = vsel %vm7642_vm13, 1.0, %v8565_v63 }
 0x179   : > { %v2157_v0 = vmul.f32 %v5663_v27, %v7616_v33  ;;  %v2042_v28 = vpop.f32.mrb[23].mxu0  ;;  %v7649_v4 = vadd.f32 %v5662_v55, %v1804_v43  ;;  %v1805_v39 = vadd.f32 %v5615_v16, %v7476_v7  ;;  %v1690_v61 = vpop.f32.mrb[23].mxu1  ;;  %v574_v7 = vand.u32 15, %v466_v51  ;;  %8576 = vst [vmem:[#allocation29_spill] sm:$0xff] %v7674_v29 }
 0x17a   : > { %v2155_v37 = vmul.f32 %v7630_v6, %v2042_v28  ;;  %v7660_v27 = vadd.f32 %v2039_v9, %v1802_v49  ;;  %v1803_v3 = vadd.f32 %v1690_v61, %v7480_v23  ;;  %v1483_v9 = vmul.f32 %v7489_v32, %v7658_v59 }
 0x17b   : > { %5961 = vmatmul.mubr.bf16.gmra.mrb[128].mxu0 %v7093_v35  ;;  %v7667_v35 = vsel %vm7634_vm12, 1.0, %v8565_v63  ;;  %v7669_v30 = vadd.f32 %v2157_v0, %v1805_v39  ;;  %v7681_v53 = vsel %vm975_vm14, 1.0, %v8565_v63  ;;  %v595_v51 = vand.u32 15, %v469_v18 }
 0x17c   : > { %5964 = vmatprep.mubr.bf16.mxu0 %v8575_v15  ;;  %v7676_v23 = vadd.f32 %v2155_v37, %v1803_v3  ;;  %8577 = vst [vmem:[#allocation37_spill] sm:$0xff] %v7681_v53  ;;  %v581_v43 = vand.u32 15, %v467_v10  ;;  %vm7683_vm0 = vcmp.ge.s32.totalorder %v616_v57, 1  ;;  %v602_v40 = vand.u32 15, %v7613_v25 }
 0x17d   : > { %5913 = vmatmul.mubr.bf16.gmra.mrb[128].mxu1 %v3923_v24  ;;  %v1481_v0 = vmul.f32 %v7667_v35, %v7494_v19  ;;  %v7691_v49 = vsel %vm884_vm15, 1.0, %v8565_v63  ;;  %vm7693_vm3 = vcmp.ge.s32.totalorder %v574_v7, 1  ;;  %v473_v19 = vadd.s32 152, %v7486_v26  ;;  %v8582_v7 = vld [vmem:[#allocation31_spill] sm:$0xff] }
 0x17e   : > { %v5666_v55 = vpop.f32.mrb[24].mxu0  ;;  %5916 = vmatprep.mubr.bf16.mxu1 %v3925_v2  ;;  %v4193_v2 = vld [vmem:[#allocation2 + $0x90] sm:$0x1f]  ;;  %v471_v18 = vadd.s32 136, %v7486_v26  ;;  %vm981_vm4 = vcmp.le.s32.totalorder %v595_v51, 14  ;;  %vm7705_vm5 = vcmp.le.s32.totalorder %v581_v43, 14  ;;  %v1487_v32 = vmul.f32 %v7514_v56, %v7691_v49 }
 0x17f   : > { %v2055_v62 = vpop.f32.mrb[25].mxu0  ;;  %v7718_v51 = vsel %vm7693_vm3, 1.0, %v8565_v63  ;;  %v8585_v43 = vld [vmem:[#allocation30_spill] sm:$0xff]  ;;  %vm7729_vm6 = vcmp.ge.s32.totalorder %v602_v40, 1 }
 0x180   : > { %v5618_v28 = vpop.f32.mrb[24].mxu1  ;;  %v5667_v24 = vpop.f32.mrb[26].mxu0  ;;  %v1485_v40 = vmul.f32 %v7718_v51, %v7517_v60 }
 0x181   : > { %v1808_v16 = vadd.f32 %v5618_v28, %v1483_v9  ;;  %v1703_v37 = vpop.f32.mrb[25].mxu1  ;;  %v2161_v57 = vmul.f32 %v5667_v24, %v7674_v29  ;;  %v2058_v21 = vpop.f32.mrb[27].mxu0  ;;  %v4279_v24 = vshrl.u32 %v4193_v2, 16 }
 0x182   : > { %v1806_v39 = vadd.f32 %v1703_v37, %v1481_v0  ;;  %v5619_v25 = vpop.f32.mrb[26].mxu1  ;;  %v2159_v61 = vmul.f32 %v7681_v53, %v2058_v21  ;;  %v4282_v37 = vshll.u32 %v4193_v2, 16  ;;  %v609_v21 = vand.u32 15, %v471_v18 }
 0x183   : > { %v7701_v10 = vadd.f32 %v5666_v55, %v1808_v16  ;;  %v1809_v3 = vadd.f32 %v5619_v25, %v7498_v50  ;;  %v1706_v15 = vpop.f32.mrb[27].mxu1  ;;  %5965 = vmatmul.mubr.bf16.gmra.mrb[132].mxu0 %v8582_v7  ;;  %v476_v55 = vadd.s32 176, %v7486_v26  ;;  %v474_v50 = vadd.s32 160, %v7486_v26 }
 0x184   : > { %v7709_v0 = vadd.f32 %v2055_v62, %v1806_v39  ;;  %v1807_v28 = vadd.f32 %v1706_v15, %v7503_v17  ;;  %5968 = vmatprep.mubr.bf16.mxu0 %v7335_v38  ;;  %v7724_v17 = vsel %vm981_vm4, 1.0, %v8565_v63  ;;  %v623_v38 = vand.u32 15, %v473_v19 }
 0x185   : > { %5917 = vmatmul.mubr.bf16.gmra.mrb[132].mxu1 %v8585_v43  ;;  %v7721_v16 = vadd.f32 %v2161_v57, %v1809_v3  ;;  %8586 = vst [vmem:[#allocation31_spill] sm:$0xff] %v7724_v17  ;;  %v7738_v57 = vsel %vm7705_vm5, 1.0, %v8565_v63  ;;  %v3932_v3 = vrot.slane %v7327_v41, 4  ;;  %v4281_v18 = vrot.slane %v4279_v24, 4 }
 0x186   : > { %v5670_v62 = vpop.f32.mrb[28].mxu0  ;;  %5920 = vmatprep.mubr.bf16.mxu1 %v7332_v34  ;;  %v7727_v2 = vadd.f32 %v2159_v61, %v1807_v28  ;;  %8589 = vst [vmem:[#allocation30_spill] sm:$0xff] %v7738_v57  ;;  %v7744_v34 = vsel %vm7683_vm0, 1.0, %v8565_v63  ;;  %v4284_v56 = vrot.slane %v4282_v37, 5  ;;  %v644_v15 = vand.u32 15, %v476_v55 }
 0x187   : > { %v2071_v25 = vpop.f32.mrb[29].mxu0  ;;  %v630_v7 = vand.u32 15, %v474_v50  ;;  %vm7750_vm7 = vcmp.le.s32.totalorder %v623_v38, 14  ;;  %vm7754_vm8 = vcmp.le.s32.totalorder %v609_v21, 14  ;;  %v8594_v50 = vrot.slane %v7292_v12, 4 }
 0x188   : > { %v5622_v61 = vpop.f32.mrb[28].mxu1  ;;  %v5671_v19 = vpop.f32.mrb[30].mxu0  ;;  %vm7776_vm9 = vcmp.ge.s32.totalorder %v644_v15, 1  ;;  %v3934_v39 = vrot.slane %v7430_v1, 4 }
 0x189   : > { %v1812_v28 = vadd.f32 %v5622_v61, %v1487_v32  ;;  %v1719_v9 = vpop.f32.mrb[29].mxu1  ;;  %v2165_v43 = vmul.f32 %v5671_v19, %v7724_v17  ;;  %v2074_v53 = vpop.f32.mrb[31].mxu0  ;;  %v3933_v32 = vsel %vm1539_vm1, %v8594_v50, %v3932_v3  ;;  %v1491_v61 = vmul.f32 %v7446_v45, %v7744_v34 }
 0x18a   : > { %v1810_v41 = vadd.f32 %v1719_v9, %v1485_v40  ;;  %v5623_v29 = vpop.f32.mrb[30].mxu1  ;;  %v2163_v46 = vmul.f32 %v7738_v57, %v2074_v53  ;;  %v477_v53 = vadd.s32 184, %v7486_v26  ;;  %v4285_v40 = vor.u32 %v4284_v56, %v4281_v18 }
 0x18b   : > { %v7758_v24 = vadd.f32 %v5670_v62, %v1812_v28  ;;  %v1813_v37 = vadd.f32 %v5623_v29, %v7522_v44  ;;  %v1722_v55 = vpop.f32.mrb[31].mxu1  ;;  %5969 = vmatmul.mubr.bf16.gmra.mrb[136].mxu0 %v7344_v36  ;;  %v475_v62 = vadd.s32 168, %v7486_v26  ;;  %v7774_v44 = vsel %vm7729_vm6, 1.0, %v8565_v63 }
 0x18c   : > { %v7766_v38 = vadd.f32 %v2071_v25, %v1810_v41  ;;  %v1811_v21 = vadd.f32 %v1722_v55, %v7526_v54  ;;  %5972 = vmatprep.mubr.bf16.mxu0 %v7374_v8  ;;  %v480_v54 = vadd.s32 208, %v7486_v26  ;;  %v7787_v8 = vsel %vm7750_vm7, 1.0, %v8565_v63 }
 0x18d   : > { %5921 = vmatmul.mubr.bf16.gmra.mrb[136].mxu1 %v7341_v31  ;;  %v7781_v36 = vadd.f32 %v2165_v43, %v1813_v37  ;;  %8597 = vst [vmem:[#allocation38_spill] sm:$0xff] %v7787_v8  ;;  %v7797_v31 = vsel %vm7754_vm8, 1.0, %v8565_v63  ;;  %v651_v18 = vand.u32 15, %v477_v53  ;;  %v1489_v6 = vmul.f32 %v7774_v44, %v7450_v52 }
 0x18e   : > { %v5674_v29 = vpop.f32.mrb[32].mxu0  ;;  %5924 = vmatprep.mubr.bf16.mxu1 %v3933_v32  ;;  %v7790_v25 = vadd.f32 %v2163_v46, %v1811_v21  ;;  %8598 = vst [vmem:[#allocation39_spill] sm:$0xff] %v7797_v31  ;;  %vm7801_vm10 = vcmp.ge.s32.totalorder %v630_v7, 1  ;;  %v4286_v28 = vsel %vm1847_vm2, %v7366_v48, %v4285_v40  ;;  %v637_v45 = vand.u32 15, %v475_v62 }
 0x18f   : > { %v2087_v19 = vpop.f32.mrb[33].mxu0  ;;  %v7810_v9 = vsel %vm7776_vm9, 1.0, %v8565_v63  ;;  %v478_v43 = vadd.s32 192, %v7486_v26  ;;  %v672_v60 = vand.u32 15, %v480_v54  ;;  %v3935_v48 = vsel %vm1539_vm1, %v3932_v3, %v3934_v39 }
 0x190   : > { %v5626_v1 = vpop.f32.mrb[32].mxu1  ;;  %v5675_v15 = vpop.f32.mrb[34].mxu0  ;;  %vm989_vm2 = vcmp.le.s32.totalorder %v651_v18, 14  ;;  %v481_v40 = vadd.s32 216, %v7486_v26  ;;  %vm987_vm11 = vcmp.le.s32.totalorder %v637_v45, 14  ;;  %v479_v54 = vadd.s32 200, %v7486_v26 }
 0x191   : > { %v1816_v41 = vadd.f32 %v5626_v1, %v1491_v61  ;;  %v1735_v46 = vpop.f32.mrb[33].mxu1  ;;  %v2169_v52 = vmul.f32 %v5675_v15, %v7787_v8  ;;  %v2090_v7 = vpop.f32.mrb[35].mxu0  ;;  %v7827_v3 = vsel %vm7801_vm10, 1.0, %v8565_v63  ;;  %vm896_vm1 = vcmp.ge.s32.totalorder %v672_v60, 1  ;;  %v8604_v15 = vld [vmem:[#allocation17_spill] sm:$0xff] }
 0x192   : > { %v1814_v37 = vadd.f32 %v1735_v46, %v1489_v6  ;;  %v5627_v55 = vpop.f32.mrb[34].mxu1  ;;  %v2167_v50 = vmul.f32 %v7797_v31, %v2090_v7  ;;  %v7832_v61 = vsel %vm989_vm2, 1.0, %v8565_v63  ;;  %v7839_v1 = vsel %vm987_vm11, 1.0, %v8565_v63 }
 0x193   : > { %v7816_v32 = vadd.f32 %v5674_v29, %v1816_v41  ;;  %v1817_v53 = vadd.f32 %v5627_v55, %v7454_v13  ;;  %v1738_v21 = vpop.f32.mrb[35].mxu1  ;;  %5973 = vmatmul.mubr.bf16.gmra.mrb[140].mxu0 %v4286_v28  ;;  %v658_v13 = vand.u32 15, %v478_v43  ;;  %8601 = vst [vmem:[#allocation40_spill] sm:$0xff] %v7832_v61  ;;  %v679_v56 = vand.u32 15, %v481_v40 }
 0x194   : > { %v7820_v62 = vadd.f32 %v2087_v19, %v1814_v37  ;;  %v1815_v12 = vadd.f32 %v1738_v21, %v7459_v14  ;;  %v8602_v14 = vld [vmem:[#allocation16_spill] sm:$0xff]  ;;  %v1493_v28 = vmul.f32 %v7827_v3, %v8604_v15  ;;  %v665_v43 = vand.u32 15, %v479_v54 }
 0x195   : > { %5925 = vmatmul.mubr.bf16.gmra.mrb[140].mxu1 %v3935_v48  ;;  %v7829_v29 = vadd.f32 %v2169_v52, %v1817_v53  ;;  %v1495_v18 = vmul.f32 %v8602_v14, %v7810_v9  ;;  %8603 = vst [vmem:[#allocation16_spill] sm:$0xff] %v7839_v1  ;;  %v7844_v46 = vsel %vm896_vm1, 1.0, %v8565_v63  ;;  %v484_v52 = vadd.s32 240, %v7486_v26 }
 0x196   : > { %v5678_v39 = vpop.f32.mrb[36].mxu0  ;;  %v7834_v19 = vadd.f32 %v2167_v50, %v1815_v12  ;;  %vm894_vm12 = vcmp.ge.s32.totalorder %v658_v13, 1  ;;  %v482_v50 = vadd.s32 224, %v7486_v26  ;;  %v8605_v12 = vld [vmem:[#allocation18_spill] sm:$0xff]  ;;  %vm993_vm13 = vcmp.le.s32.totalorder %v679_v56, 14 }
 0x197   : > { %v2103_v6 = vpop.f32.mrb[37].mxu0  ;;  %v485_v15 = vadd.s32 248, %v7486_v26  ;;  %vm991_vm14 = vcmp.le.s32.totalorder %v665_v43, 14  ;;  %v483_v13 = vadd.s32 232, %v7486_v26 }
 0x198   : > { %v5630_v45 = vpop.f32.mrb[36].mxu1  ;;  %v5679_v41 = vpop.f32.mrb[38].mxu0  ;;  %v7871_v43 = vsel %vm991_vm14, 1.0, %v8565_v63 }
 0x199   : > { %v1820_v7 = vadd.f32 %v5630_v45, %v1495_v18  ;;  %v1751_v60 = vpop.f32.mrb[37].mxu1  ;;  %v2173_v37 = vmul.f32 %v5679_v41, %v7832_v61  ;;  %v2106_v55 = vpop.f32.mrb[39].mxu0  ;;  %v8606_v45 = vld [vmem:[#allocation19_spill] sm:$0xff]  ;;  %v707_v26 = vand.u32 15, %v485_v15  ;;  %v8612_v15 = vld [vmem:[#allocation20_spill] sm:$0xff] }
 0x19a   : > { %v1818_v48 = vadd.f32 %v1751_v60, %v1493_v28  ;;  %v5631_v53 = vpop.f32.mrb[38].mxu1  ;;  %v2171_v21 = vmul.f32 %v7839_v1, %v2106_v55  ;;  %v7859_v28 = vsel %vm894_vm12, 1.0, %v8565_v63  ;;  %v700_v60 = vand.u32 15, %v484_v52  ;;  %8610 = vst [vmem:[#allocation19_spill] sm:$0xff] %v7871_v43 }
 0x19b   : > { %v7850_v40 = vadd.f32 %v5678_v39, %v1820_v7  ;;  %v1821_v54 = vadd.f32 %v5631_v53, %v8605_v12  ;;  %v1754_v14 = vpop.f32.mrb[39].mxu1  ;;  %8607 = vst [vmem:[#allocation17_spill] sm:$0xff] %v7859_v28  ;;  %v686_v39 = vand.u32 15, %v482_v50  ;;  %v7864_v53 = vsel %vm993_vm13, 1.0, %v8565_v63 }
 0x19c   : > { %v7854_v18 = vadd.f32 %v2103_v6, %v1818_v48  ;;  %v1819_v41 = vadd.f32 %v1754_v14, %v8606_v45  ;;  %8608 = vst [vmem:[#allocation18_spill] sm:$0xff] %v7864_v53  ;;  %v8609_v6 = vld [vmem:[#allocation21_spill] sm:$0xff]  ;;  %v8611_v14 = vld [vmem:[#allocation24_spill] sm:$0xff]  ;;  %v693_v50 = vand.u32 15, %v483_v13  ;;  %vm900_vm15 = vcmp.ge.s32.totalorder %v700_v60, 1  ;;  %v8614_v60 = vld [vmem:[#allocation22_spill] sm:$0xff] }
 0x19d   : > { %v7861_v55 = vadd.f32 %v2173_v37, %v1821_v54  ;;  %v1499_v48 = vmul.f32 %v8609_v6, %v7844_v46  ;;  %v1497_v52 = vmul.f32 %v7859_v28, %v8611_v14  ;;  %vm898_vm0 = vcmp.ge.s32.totalorder %v686_v39, 1 }
 0x19e   : > { %v5682_v7 = vpop.f32.mrb[40].mxu0  ;;  %v7866_v56 = vadd.f32 %v2171_v21, %v1819_v41  ;;  %vm997_vm3 = vcmp.le.s32.totalorder %v707_v26, 14  ;;  %v7881_v14 = vsel %vm900_vm15, 1.0, %v8565_v63  ;;  %vm995_vm4 = vcmp.le.s32.totalorder %v693_v50, 14  ;;  %v8617_v26 = vld [vmem:[#allocation25_spill] sm:$0xff] }
 0x19f   : > { %v2119_v12 = vpop.f32.mrb[41].mxu0  ;;  %8613 = vst [vmem:[#allocation21_spill] sm:$0xff] %v7881_v14  ;;  %v7887_v39 = vsel %vm898_vm0, 1.0, %v8565_v63 }
 0x1a0   : > { %v5634_v37 = vpop.f32.mrb[40].mxu1  ;;  %v5683_v54 = vpop.f32.mrb[42].mxu0  ;;  %8615 = vst [vmem:[#allocation24_spill] sm:$0xff] %v7887_v39 }
 0x1a1   : > { %v1824_v45 = vadd.f32 %v5634_v37, %v1499_v48  ;;  %v1767_v1 = vpop.f32.mrb[41].mxu1  ;;  %v2177_v21 = vmul.f32 %v5683_v54, %v7864_v53  ;;  %v2122_v41 = vpop.f32.mrb[43].mxu0  ;;  %v1503_v54 = vmul.f32 %v8617_v26, %v7881_v14  ;;  %v8620_v26 = vld [vmem:[#allocation23_spill] sm:$0xff] }
 0x1a2   : > { %v1822_v61 = vadd.f32 %v1767_v1, %v1497_v52  ;;  %v5635_v6 = vpop.f32.mrb[42].mxu1  ;;  %v2175_v31 = vmul.f32 %v7871_v43, %v2122_v41 }
 0x1a3   : > { %v7877_v8 = vadd.f32 %v5682_v7, %v1824_v45  ;;  %v1825_v57 = vadd.f32 %v5635_v6, %v8612_v15  ;;  %v1770_v17 = vpop.f32.mrb[43].mxu1  ;;  %v7892_v7 = vsel %vm997_vm3, 1.0, %v8565_v63 }
 0x1a4   : > { %v7883_v13 = vadd.f32 %v2119_v12, %v1822_v61  ;;  %v1823_v48 = vadd.f32 %v1770_v17, %v8614_v60  ;;  %8616 = vst [vmem:[#allocation20_spill] sm:$0xff] %v7892_v7  ;;  %v7899_v61 = vsel %vm995_vm4, 1.0, %v8565_v63  ;;  %v8619_v17 = vld [vmem:[#allocation27_spill] sm:$0xff] }
 0x1a5   : > { %v7889_v1 = vadd.f32 %v2177_v21, %v1825_v57  ;;  %8618 = vst [vmem:[#allocation22_spill] sm:$0xff] %v7899_v61  ;;  %v1501_v12 = vmul.f32 %v7887_v39, %v8619_v17 }
 0x1a6   : > { %v5686_v52 = vpop.f32.mrb[44].mxu0  ;;  %v7894_v37 = vadd.f32 %v2175_v31, %v1823_v48 }
 0x1a7   : > { %v2135_v45 = vpop.f32.mrb[45].mxu0 }
 0x1a8   : > { %v5638_v50 = vpop.f32.mrb[44].mxu1  ;;  %v5687_v41 = vpop.f32.mrb[46].mxu0 }
 0x1a9   : > { %v1828_v57 = vadd.f32 %v5638_v50, %v1503_v54  ;;  %v1783_v21 = vpop.f32.mrb[45].mxu1  ;;  %v2181_v6 = vmul.f32 %v5687_v41, %v7892_v7  ;;  %v2138_v15 = vpop.f32.mrb[47].mxu0 }
 0x1aa   : > { %v1826_v60 = vadd.f32 %v1783_v21, %v1501_v12  ;;  %v5639_v31 = vpop.f32.mrb[46].mxu1  ;;  %v2179_v48 = vmul.f32 %v7899_v61, %v2138_v15  ;;  %v8622_v21 = vld [vmem:[#allocation28_spill] sm:$0xff] }
 0x1ab   : > { %v7905_v43 = vadd.f32 %v5686_v52, %v1828_v57  ;;  %v1829_v53 = vadd.f32 %v5639_v31, %v8620_v26  ;;  %v1786_v63 = vpop.f32.mrb[47].mxu1  ;;  %v8623_v57 = vld [vmem:[#allocation32_spill] sm:$0xff] }
 0x1ac   : > { %v7908_v33 = vadd.f32 %v2135_v45, %v1826_v60  ;;  %v1827_v17 = vadd.f32 %v1786_v63, %v8621_v42 }
 0x1ad   : > { %v7911_v39 = vadd.f32 %v2181_v6, %v1829_v53 }
 0x1ae   : > { %v5754_v54 = vpop.f32.mrb[48].mxu0  ;;  %v7913_v50 = vadd.f32 %v2179_v48, %v1827_v17 }
 0x1af   : > { %v2853_v41 = vpop.f32.mrb[49].mxu0 }
 0x1b0   : > { %v5706_v7 = vpop.f32.mrb[48].mxu1  ;;  %v5755_v12 = vpop.f32.mrb[50].mxu0 }
 0x1b1   : > { %v2626_v14 = vmul.f32 %v5706_v7, %v8622_v21  ;;  %v2497_v15 = vpop.f32.mrb[49].mxu1  ;;  %v2856_v52 = vpop.f32.mrb[51].mxu0 }
 0x1b2   : > { %v2624_v61 = vmul.f32 %v8623_v57, %v2497_v15  ;;  %v5707_v31 = vpop.f32.mrb[50].mxu1 }
 0x1b3   : > { %v2658_v45 = vadd.f32 %v2626_v14, %v7590_v22  ;;  %v2659_v60 = vadd.f32 %v5707_v31, %v7610_v58  ;;  %v2500_v42 = vpop.f32.mrb[51].mxu1 }
 0x1b4   : > { %v2656_v53 = vadd.f32 %v2624_v61, %v7595_v20  ;;  %v2657_v6 = vadd.f32 %v2500_v42, %v7618_v11 }
 0x1b5   : > { %v7921_v48 = vadd.f32 %v5754_v54, %v2658_v45  ;;  %v7923_v26 = vadd.f32 %v5755_v12, %v2659_v60 }
 0x1b6   : > { %v7925_v63 = vadd.f32 %v2853_v41, %v2656_v53  ;;  %v7927_v7 = vadd.f32 %v2856_v52, %v2657_v6  ;;  %v5758_v17 = vpop.f32.mrb[52].mxu0 }
 0x1b7   : > { %v2869_v15 = vpop.f32.mrb[53].mxu0 }
 0x1b8   : > { %v5710_v57 = vpop.f32.mrb[52].mxu1  ;;  %v5759_v21 = vpop.f32.mrb[54].mxu0 }
 0x1b9   : > { %v2630_v22 = vmul.f32 %v5710_v57, %v7580_v5  ;;  %v2513_v58 = vpop.f32.mrb[53].mxu1  ;;  %v2872_v14 = vpop.f32.mrb[55].mxu0 }
 0x1ba   : > { %v2628_v20 = vmul.f32 %v7607_v47, %v2513_v58  ;;  %v5711_v61 = vpop.f32.mrb[54].mxu1 }
 0x1bb   : > { %v2662_v11 = vadd.f32 %v2630_v22, %v7649_v4  ;;  %v2663_v54 = vadd.f32 %v5711_v61, %v7669_v30  ;;  %v2516_v12 = vpop.f32.mrb[55].mxu1 }
 0x1bc   : > { %v2660_v41 = vadd.f32 %v2628_v20, %v7660_v27  ;;  %v2661_v52 = vadd.f32 %v2516_v12, %v7676_v23 }
 0x1bd   : > { %v7935_v31 = vadd.f32 %v5758_v17, %v2662_v11  ;;  %v7937_v45 = vadd.f32 %v5759_v21, %v2663_v54 }
 0x1be   : > { %v7939_v60 = vadd.f32 %v2869_v15, %v2660_v41  ;;  %v7941_v57 = vadd.f32 %v2872_v14, %v2661_v52  ;;  %v5762_v42 = vpop.f32.mrb[56].mxu0 }
 0x1bf   : > { %v2885_v53 = vpop.f32.mrb[57].mxu0 }
 0x1c0   : > { %v5714_v6 = vpop.f32.mrb[56].mxu1  ;;  %v5763_v58 = vpop.f32.mrb[58].mxu0 }
 0x1c1   : > { %v2634_v4 = vmul.f32 %v5714_v6, %v7658_v59  ;;  %v2529_v30 = vpop.f32.mrb[57].mxu1  ;;  %v2888_v22 = vpop.f32.mrb[59].mxu0 }
 0x1c2   : > { %v2632_v27 = vmul.f32 %v7667_v35, %v2529_v30  ;;  %v5715_v20 = vpop.f32.mrb[58].mxu1 }
 0x1c3   : > { %v2666_v23 = vadd.f32 %v2634_v4, %v7701_v10  ;;  %v2667_v21 = vadd.f32 %v5715_v20, %v7721_v16  ;;  %v2532_v17 = vpop.f32.mrb[59].mxu1 }
 0x1c4   : > { %v2664_v15 = vadd.f32 %v2632_v27, %v7709_v0  ;;  %v2665_v14 = vadd.f32 %v2532_v17, %v7727_v2 }
 0x1c5   : > { %v7949_v61 = vadd.f32 %v5762_v42, %v2666_v23  ;;  %v7951_v11 = vadd.f32 %v5763_v58, %v2667_v21 }
 0x1c6   : > { %v7953_v54 = vadd.f32 %v2885_v53, %v2664_v15  ;;  %v7955_v12 = vadd.f32 %v2888_v22, %v2665_v14  ;;  %v5766_v41 = vpop.f32.mrb[60].mxu0 }
 0x1c7   : > { %v2901_v52 = vpop.f32.mrb[61].mxu0 }
 0x1c8   : > { %v5718_v6 = vpop.f32.mrb[60].mxu1  ;;  %v5767_v30 = vpop.f32.mrb[62].mxu0 }
 0x1c9   : > { %v2638_v10 = vmul.f32 %v5718_v6, %v7691_v49  ;;  %v2545_v16 = vpop.f32.mrb[61].mxu1  ;;  %v2904_v4 = vpop.f32.mrb[63].mxu0 }
 0x1ca   : > { %v2636_v0 = vmul.f32 %v7718_v51, %v2545_v16  ;;  %v5719_v27 = vpop.f32.mrb[62].mxu1 }
 0x1cb   : > { %v2670_v2 = vadd.f32 %v2638_v10, %v7758_v24  ;;  %v2671_v42 = vadd.f32 %v5719_v27, %v7781_v36  ;;  %v2548_v58 = vpop.f32.mrb[63].mxu1 }
 0x1cc   : > { %v2668_v53 = vadd.f32 %v2636_v0, %v7766_v38  ;;  %v2669_v22 = vadd.f32 %v2548_v58, %v7790_v25 }
 0x1cd   : > { %v7963_v20 = vadd.f32 %v5766_v41, %v2670_v2  ;;  %v7965_v23 = vadd.f32 %v5767_v30, %v2671_v42 }
 0x1ce   : > { %v7967_v21 = vadd.f32 %v2901_v52, %v2668_v53  ;;  %v7969_v17 = vadd.f32 %v2904_v4, %v2669_v22  ;;  %v5770_v15 = vpop.f32.mrb[64].mxu0 }
 0x1cf   : > { %v2917_v14 = vpop.f32.mrb[65].mxu0 }
 0x1d0   : > { %v5722_v6 = vpop.f32.mrb[64].mxu1  ;;  %v5771_v16 = vpop.f32.mrb[66].mxu0 }
 0x1d1   : > { %v2642_v24 = vmul.f32 %v5722_v6, %v7744_v34  ;;  %v2561_v36 = vpop.f32.mrb[65].mxu1  ;;  %v2920_v10 = vpop.f32.mrb[67].mxu0 }
 0x1d2   : > { %v2640_v38 = vmul.f32 %v7774_v44, %v2561_v36  ;;  %v5723_v0 = vpop.f32.mrb[66].mxu1 }
 0x1d3   : > { %v2674_v25 = vadd.f32 %v2642_v24, %v7816_v32  ;;  %v2675_v41 = vadd.f32 %v5723_v0, %v7829_v29  ;;  %v2564_v30 = vpop.f32.mrb[67].mxu1 }
 0x1d4   : > { %v2672_v52 = vadd.f32 %v2640_v38, %v7820_v62  ;;  %v2673_v4 = vadd.f32 %v2564_v30, %v7834_v19 }
 0x1d5   : > { %v7977_v27 = vadd.f32 %v5770_v15, %v2674_v25  ;;  %v7979_v2 = vadd.f32 %v5771_v16, %v2675_v41 }
 0x1d6   : > { %v7981_v42 = vadd.f32 %v2917_v14, %v2672_v52  ;;  %v7983_v58 = vadd.f32 %v2920_v10, %v2673_v4  ;;  %v5774_v53 = vpop.f32.mrb[68].mxu0 }
 0x1d7   : > { %v2933_v22 = vpop.f32.mrb[69].mxu0 }
 0x1d8   : > { %v5726_v6 = vpop.f32.mrb[68].mxu1  ;;  %v5775_v36 = vpop.f32.mrb[70].mxu0 }
 0x1d9   : > { %v2646_v32 = vmul.f32 %v5726_v6, %v7810_v9  ;;  %v2577_v29 = vpop.f32.mrb[69].mxu1  ;;  %v2936_v24 = vpop.f32.mrb[71].mxu0 }
 0x1da   : > { %v2644_v62 = vmul.f32 %v7827_v3, %v2577_v29  ;;  %v5727_v38 = vpop.f32.mrb[70].mxu1 }
 0x1db   : > { %v2678_v19 = vadd.f32 %v2646_v32, %v7850_v40  ;;  %v2679_v15 = vadd.f32 %v5727_v38, %v7861_v55  ;;  %v2580_v16 = vpop.f32.mrb[71].mxu1 }
 0x1dc   : > { %v2676_v14 = vadd.f32 %v2644_v62, %v7854_v18  ;;  %v2677_v10 = vadd.f32 %v2580_v16, %v7866_v56 }
 0x1dd   : > { %v7991_v0 = vadd.f32 %v5774_v53, %v2678_v19  ;;  %v7993_v25 = vadd.f32 %v5775_v36, %v2679_v15 }
 0x1de   : > { %v7995_v41 = vadd.f32 %v2933_v22, %v2676_v14  ;;  %v7997_v30 = vadd.f32 %v2936_v24, %v2677_v10  ;;  %v5778_v52 = vpop.f32.mrb[72].mxu0 }
 0x1df   : > { %v2949_v4 = vpop.f32.mrb[73].mxu0 }
 0x1e0   : > { %v5730_v6 = vpop.f32.mrb[72].mxu1  ;;  %v5779_v29 = vpop.f32.mrb[74].mxu0 }
 0x1e1   : > { %v2650_v40 = vmul.f32 %v5730_v6, %v7844_v46  ;;  %v2593_v55 = vpop.f32.mrb[73].mxu1  ;;  %v2952_v32 = vpop.f32.mrb[75].mxu0 }
 0x1e2   : > { %v2648_v18 = vmul.f32 %v7859_v28, %v2593_v55  ;;  %v5731_v62 = vpop.f32.mrb[74].mxu1  ;;  %v8625_v28 = vld [vmem:[#allocation24_spill] sm:$0xff] }
 0x1e3   : > { %v2682_v56 = vadd.f32 %v2650_v40, %v7877_v8  ;;  %v2683_v53 = vadd.f32 %v5731_v62, %v7889_v1  ;;  %v2596_v36 = vpop.f32.mrb[75].mxu1  ;;  %v8624_v8 = vld [vmem:[#allocation21_spill] sm:$0xff] }
 0x1e4   : > { %v2680_v22 = vadd.f32 %v2648_v18, %v7883_v13  ;;  %v2681_v24 = vadd.f32 %v2596_v36, %v7894_v37 }
 0x1e5   : > { %v8005_v38 = vadd.f32 %v5778_v52, %v2682_v56  ;;  %v8007_v19 = vadd.f32 %v5779_v29, %v2683_v53 }
 0x1e6   : > { %v8009_v15 = vadd.f32 %v2949_v4, %v2680_v22  ;;  %v8011_v16 = vadd.f32 %v2952_v32, %v2681_v24  ;;  %v5782_v14 = vpop.f32.mrb[76].mxu0 }
 0x1e7   : > { %v2965_v10 = vpop.f32.mrb[77].mxu0 }
 0x1e8   : > { %v5734_v6 = vpop.f32.mrb[76].mxu1  ;;  %v5783_v55 = vpop.f32.mrb[78].mxu0 }
 0x1e9   : > { %v2654_v40 = vmul.f32 %v5734_v6, %v8624_v8  ;;  %v2609_v1 = vpop.f32.mrb[77].mxu1  ;;  %v2968_v62 = vpop.f32.mrb[79].mxu0  ;;  %v8626_v6 = vld [vmem:[#allocation28_spill] sm:$0xff] }
 0x1ea   : > { %v2652_v13 = vmul.f32 %v8625_v28, %v2609_v1  ;;  %v5735_v18 = vpop.f32.mrb[78].mxu1 }
 0x1eb   : > { %v2686_v37 = vadd.f32 %v2654_v40, %v7905_v43  ;;  %v2687_v52 = vadd.f32 %v5735_v18, %v7911_v39  ;;  %v2612_v29 = vpop.f32.mrb[79].mxu1  ;;  %v8627_v40 = vld [vmem:[#allocation32_spill] sm:$0xff] }
 0x1ec   : > { %v2684_v4 = vadd.f32 %v2652_v13, %v7908_v33  ;;  %v2685_v32 = vadd.f32 %v2612_v29, %v7913_v50  ;;  %v8629_v29 = vld [vmem:[#allocation34_spill] sm:$0xff] }
 0x1ed   : > { %v8019_v56 = vadd.f32 %v5782_v14, %v2686_v37  ;;  %v8021_v53 = vadd.f32 %v5783_v55, %v2687_v52  ;;  %v8628_v37 = vld [vmem:[#allocation33_spill] sm:$0xff] }
 0x1ee   : > { %v8023_v36 = vadd.f32 %v2965_v10, %v2684_v4  ;;  %v8025_v22 = vadd.f32 %v2968_v62, %v2685_v32  ;;  %v5850_v24 = vpop.f32.mrb[80].mxu0 }
 0x1ef   : > { %v3807_v1 = vmul.f32 %v5850_v24, %v8626_v6  ;;  %v3678_v28 = vpop.f32.mrb[81].mxu0 }
 0x1f0   : > { %v5802_v43 = vpop.f32.mrb[80].mxu1  ;;  %v3805_v39 = vmul.f32 %v8627_v40, %v3678_v28  ;;  %v5851_v18 = vpop.f32.mrb[82].mxu0 }
 0x1f1   : > { %v3365_v33 = vadd.f32 %v5802_v43, %v7921_v48  ;;  %v3204_v13 = vpop.f32.mrb[81].mxu1  ;;  %v3681_v50 = vpop.f32.mrb[83].mxu0 }
 0x1f2   : > { %v3363_v14 = vadd.f32 %v3204_v13, %v7925_v63  ;;  %v5803_v55 = vpop.f32.mrb[82].mxu1 }
 0x1f3   : > { %v3334_v10 = vmul.f32 %v5803_v55, %v8628_v37  ;;  %v3207_v52 = vpop.f32.mrb[83].mxu1  ;;  %v8032_v62 = vadd.f32 %v3807_v1, %v3365_v33 }
 0x1f4   : > { %v3332_v4 = vmul.f32 %v8629_v29, %v3207_v52  ;;  %v8035_v32 = vadd.f32 %v3805_v39, %v3363_v14 }
 0x1f5   : > { %v3366_v24 = vadd.f32 %v3334_v10, %v7923_v26 }
 0x1f6   : > { %v3364_v28 = vadd.f32 %v3332_v4, %v7927_v7  ;;  %v5854_v6 = vpop.f32.mrb[84].mxu0  ;;  %v8630_v7 = vld [vmem:[#allocation35_spill] sm:$0xff] }
 0x1f7   : > { %v8039_v48 = vadd.f32 %v5851_v18, %v3366_v24  ;;  %v3811_v43 = vmul.f32 %v5854_v6, %v7580_v5  ;;  %v3694_v63 = vpop.f32.mrb[85].mxu0  ;;  %v8631_v5 = vld [vmem:[#allocation36_spill] sm:$0xff] }
 0x1f8   : > { %v8042_v40 = vadd.f32 %v3681_v50, %v3364_v28  ;;  %v5806_v13 = vpop.f32.mrb[84].mxu1  ;;  %v3809_v1 = vmul.f32 %v7607_v47, %v3694_v63  ;;  %v5855_v33 = vpop.f32.mrb[86].mxu0 }
 0x1f9   : > { %v3369_v55 = vadd.f32 %v5806_v13, %v7935_v31  ;;  %v3220_v39 = vpop.f32.mrb[85].mxu1  ;;  %v3697_v14 = vpop.f32.mrb[87].mxu0 }
 0x1fa   : > { %v3367_v26 = vadd.f32 %v3220_v39, %v7939_v60  ;;  %v5807_v10 = vpop.f32.mrb[86].mxu1 }
 0x1fb   : > { %v3338_v52 = vmul.f32 %v5807_v10, %v8630_v7  ;;  %v3223_v18 = vpop.f32.mrb[87].mxu1  ;;  %v8048_v4 = vadd.f32 %v3811_v43, %v3369_v55 }
 0x1fc   : > { %v3336_v24 = vmul.f32 %v8631_v5, %v3223_v18  ;;  %v8051_v50 = vadd.f32 %v3809_v1, %v3367_v26 }
 0x1fd   : > { %v3370_v28 = vadd.f32 %v3338_v52, %v7937_v45 }
 0x1fe   : > { %v3368_v47 = vadd.f32 %v3336_v24, %v7941_v57  ;;  %v5858_v6 = vpop.f32.mrb[88].mxu0  ;;  %v8632_v57 = vld [vmem:[#allocation29_spill] sm:$0xff] }
 0x1ff   : > { %v8055_v31 = vadd.f32 %v5855_v33, %v3370_v28  ;;  %v3815_v63 = vmul.f32 %v5858_v6, %v7658_v59  ;;  %v3710_v60 = vpop.f32.mrb[89].mxu0  ;;  %v8633_v59 = vld [vmem:[#allocation37_spill] sm:$0xff] }
 0x200   : > { %v8058_v13 = vadd.f32 %v3697_v14, %v3368_v47  ;;  %v5810_v39 = vpop.f32.mrb[88].mxu1  ;;  %v3813_v43 = vmul.f32 %v7667_v35, %v3710_v60  ;;  %v5859_v55 = vpop.f32.mrb[90].mxu0 }
 0x201   : > { %v3373_v10 = vadd.f32 %v5810_v39, %v7949_v61  ;;  %v3236_v1 = vpop.f32.mrb[89].mxu1  ;;  %v3713_v26 = vpop.f32.mrb[91].mxu0 }
 0x202   : > { %v3371_v45 = vadd.f32 %v3236_v1, %v7953_v54  ;;  %v5811_v52 = vpop.f32.mrb[90].mxu1 }
 0x203   : > { %v3342_v18 = vmul.f32 %v5811_v52, %v8632_v57  ;;  %v3239_v33 = vpop.f32.mrb[91].mxu1  ;;  %v8064_v24 = vadd.f32 %v3815_v63, %v3373_v10 }
 0x204   : > { %v3340_v28 = vmul.f32 %v8633_v59, %v3239_v33  ;;  %v8067_v14 = vadd.f32 %v3813_v43, %v3371_v45 }
 0x205   : > { %v3374_v47 = vadd.f32 %v3342_v18, %v7951_v11 }
 0x206   : > { %v3372_v35 = vadd.f32 %v3340_v28, %v7955_v12  ;;  %v5862_v6 = vpop.f32.mrb[92].mxu0  ;;  %v8634_v12 = vld [vmem:[#allocation31_spill] sm:$0xff] }
 0x207   : > { %v8071_v61 = vadd.f32 %v5859_v55, %v3374_v47  ;;  %v3819_v60 = vmul.f32 %v5862_v6, %v7691_v49  ;;  %v3726_v54 = vpop.f32.mrb[93].mxu0  ;;  %v8635_v49 = vld [vmem:[#allocation30_spill] sm:$0xff] }
 0x208   : > { %v8074_v39 = vadd.f32 %v3713_v26, %v3372_v35  ;;  %v5814_v1 = vpop.f32.mrb[92].mxu1  ;;  %v3817_v63 = vmul.f32 %v7718_v51, %v3726_v54  ;;  %v5863_v10 = vpop.f32.mrb[94].mxu0 }
 0x209   : > { %v3377_v52 = vadd.f32 %v5814_v1, %v7963_v20  ;;  %v3252_v43 = vpop.f32.mrb[93].mxu1  ;;  %v3729_v45 = vpop.f32.mrb[95].mxu0 }
 0x20a   : > { %v3375_v11 = vadd.f32 %v3252_v43, %v7967_v21  ;;  %v5815_v18 = vpop.f32.mrb[94].mxu1 }
 0x20b   : > { %v3346_v33 = vmul.f32 %v5815_v18, %v8634_v12  ;;  %v3255_v55 = vpop.f32.mrb[95].mxu1  ;;  %v8080_v28 = vadd.f32 %v3819_v60, %v3377_v52 }
 0x20c   : > { %v3344_v47 = vmul.f32 %v8635_v49, %v3255_v55  ;;  %v8083_v26 = vadd.f32 %v3817_v63, %v3375_v11 }
 0x20d   : > { %v3378_v35 = vadd.f32 %v3346_v33, %v7965_v23 }
 0x20e   : > { %v3376_v51 = vadd.f32 %v3344_v47, %v7969_v17  ;;  %v5866_v6 = vpop.f32.mrb[96].mxu0  ;;  %v8636_v17 = vld [vmem:[#allocation38_spill] sm:$0xff] }
 0x20f   : > { %v8087_v20 = vadd.f32 %v5863_v10, %v3378_v35  ;;  %v3823_v54 = vmul.f32 %v5866_v6, %v7744_v34  ;;  %v3742_v21 = vpop.f32.mrb[97].mxu0  ;;  %v8637_v34 = vld [vmem:[#allocation39_spill] sm:$0xff] }
 0x210   : > { %v8090_v1 = vadd.f32 %v3729_v45, %v3376_v51  ;;  %v5818_v43 = vpop.f32.mrb[96].mxu1  ;;  %v3821_v60 = vmul.f32 %v7774_v44, %v3742_v21  ;;  %v5867_v52 = vpop.f32.mrb[98].mxu0 }
 0x211   : > { %v3381_v18 = vadd.f32 %v5818_v43, %v7977_v27  ;;  %v3268_v63 = vpop.f32.mrb[97].mxu1  ;;  %v3745_v11 = vpop.f32.mrb[99].mxu0 }
 0x212   : > { %v3379_v23 = vadd.f32 %v3268_v63, %v7981_v42  ;;  %v5819_v33 = vpop.f32.mrb[98].mxu1 }
 0x213   : > { %v3350_v55 = vmul.f32 %v5819_v33, %v8636_v17  ;;  %v3271_v10 = vpop.f32.mrb[99].mxu1  ;;  %v8096_v47 = vadd.f32 %v3823_v54, %v3381_v18 }
 0x214   : > { %v3348_v35 = vmul.f32 %v8637_v34, %v3271_v10  ;;  %v8099_v45 = vadd.f32 %v3821_v60, %v3379_v23 }
 0x215   : > { %v3382_v51 = vadd.f32 %v3350_v55, %v7979_v2 }
 0x216   : > { %v3380_v44 = vadd.f32 %v3348_v35, %v7983_v58  ;;  %v5870_v6 = vpop.f32.mrb[100].mxu0  ;;  %v8638_v58 = vld [vmem:[#allocation40_spill] sm:$0xff] }
 0x217   : > { %v8103_v27 = vadd.f32 %v5867_v52, %v3382_v51  ;;  %v3827_v21 = vmul.f32 %v5870_v6, %v7810_v9  ;;  %v3758_v42 = vpop.f32.mrb[101].mxu0  ;;  %v8639_v9 = vld [vmem:[#allocation16_spill] sm:$0xff] }
 0x218   : > { %v8106_v43 = vadd.f32 %v3745_v11, %v3380_v44  ;;  %v5822_v63 = vpop.f32.mrb[100].mxu1  ;;  %v3825_v54 = vmul.f32 %v7827_v3, %v3758_v42  ;;  %v5871_v18 = vpop.f32.mrb[102].mxu0 }
 0x219   : > { %v3385_v33 = vadd.f32 %v5822_v63, %v7991_v0  ;;  %v3284_v60 = vpop.f32.mrb[101].mxu1  ;;  %v3761_v23 = vpop.f32.mrb[103].mxu0 }
 0x21a   : > { %v3383_v2 = vadd.f32 %v3284_v60, %v7995_v41  ;;  %v5823_v55 = vpop.f32.mrb[102].mxu1 }
 0x21b   : > { %v3354_v10 = vmul.f32 %v5823_v55, %v8638_v58  ;;  %v3287_v52 = vpop.f32.mrb[103].mxu1  ;;  %v8112_v35 = vadd.f32 %v3827_v21, %v3385_v33  ;;  %v8640_v55 = vld [vmem:[#allocation17_spill] sm:$0xff] }
 0x21c   : > { %v3352_v51 = vmul.f32 %v8639_v9, %v3287_v52  ;;  %v8115_v11 = vadd.f32 %v3825_v54, %v3383_v2 }
 0x21d   : > { %v3386_v44 = vadd.f32 %v3354_v10, %v7993_v25 }
 0x21e   : > { %v3384_v3 = vadd.f32 %v3352_v51, %v7997_v30  ;;  %v5874_v6 = vpop.f32.mrb[104].mxu0  ;;  %v8641_v30 = vld [vmem:[#allocation18_spill] sm:$0xff] }
 0x21f   : > { %v8119_v0 = vadd.f32 %v5871_v18, %v3386_v44  ;;  %v3831_v42 = vmul.f32 %v5874_v6, %v7844_v46  ;;  %v3774_v41 = vpop.f32.mrb[105].mxu0  ;;  %v8642_v46 = vld [vmem:[#allocation19_spill] sm:$0xff] }
 0x220   : > { %v8122_v63 = vadd.f32 %v3761_v23, %v3384_v3  ;;  %v5826_v60 = vpop.f32.mrb[104].mxu1  ;;  %v3829_v21 = vmul.f32 %v8640_v55, %v3774_v41  ;;  %v5875_v33 = vpop.f32.mrb[106].mxu0 }
 0x221   : > { %v3389_v52 = vadd.f32 %v5826_v60, %v8005_v38  ;;  %v3300_v54 = vpop.f32.mrb[105].mxu1  ;;  %v3777_v2 = vpop.f32.mrb[107].mxu0 }
 0x222   : > { %v3387_v25 = vadd.f32 %v3300_v54, %v8009_v15  ;;  %v5827_v10 = vpop.f32.mrb[106].mxu1 }
 0x223   : > { %v3358_v51 = vmul.f32 %v5827_v10, %v8641_v30  ;;  %v3303_v18 = vpop.f32.mrb[107].mxu1  ;;  %v8128_v44 = vadd.f32 %v3831_v42, %v3389_v52  ;;  %v8644_v30 = vld [vmem:[#allocation24_spill] sm:$0xff] }
 0x224   : > { %v3356_v6 = vmul.f32 %v8642_v46, %v3303_v18  ;;  %v8131_v23 = vadd.f32 %v3829_v21, %v3387_v25 }
 0x225   : > { %v3390_v3 = vadd.f32 %v3358_v51, %v8007_v19 }
 0x226   : > { %v3388_v41 = vadd.f32 %v3356_v6, %v8011_v16  ;;  %v5878_v55 = vpop.f32.mrb[108].mxu0  ;;  %v8645_v16 = vld [vmem:[#allocation20_spill] sm:$0xff] }
 0x227   : > { %v8135_v38 = vadd.f32 %v5875_v33, %v3390_v3  ;;  %v3835_v60 = vmul.f32 %v5878_v55, %v8624_v8  ;;  %v3790_v15 = vpop.f32.mrb[109].mxu0  ;;  %v8646_v8 = vld [vmem:[#allocation22_spill] sm:$0xff] }
 0x228   : > { %v8138_v54 = vadd.f32 %v3777_v2, %v3388_v41  ;;  %v5830_v10 = vpop.f32.mrb[108].mxu1  ;;  %v3833_v42 = vmul.f32 %v8644_v30, %v3790_v15  ;;  %v5879_v52 = vpop.f32.mrb[110].mxu0 }
 0x229   : > { %v3393_v18 = vadd.f32 %v5830_v10, %v8019_v56  ;;  %v3316_v21 = vpop.f32.mrb[109].mxu1  ;;  %v3793_v25 = vpop.f32.mrb[111].mxu0 }
 0x22a   : > { %8643 = vst [vmem:[#allocation25_spill] sm:$0xff] %v8138_v54  ;;  %v3391_v19 = vadd.f32 %v3316_v21, %v8023_v36  ;;  %v5831_v51 = vpop.f32.mrb[110].mxu1 }
 0x22b   : > { %v3362_v6 = vmul.f32 %v5831_v51, %v8645_v16  ;;  %v3319_v33 = vpop.f32.mrb[111].mxu1  ;;  %v8144_v3 = vadd.f32 %v3835_v60, %v3393_v18 }
 0x22c   : > { %v3360_v55 = vmul.f32 %v8646_v8, %v3319_v33  ;;  %v8147_v2 = vadd.f32 %v3833_v42, %v3391_v19 }
 0x22d   : > { %v3394_v41 = vadd.f32 %v3362_v6, %v8021_v53 }
 0x22e   : > { %v3392_v30 = vadd.f32 %v3360_v55, %v8025_v22  ;;  %v5946_v15 = vpop.f32.mrb[112].mxu0 }
 0x22f   : > { %v8151_v56 = vadd.f32 %v5879_v52, %v3394_v41  ;;  %v4385_v10 = vpop.f32.mrb[113].mxu0 }
 0x230   : > { %v8153_v54 = vadd.f32 %v3793_v25, %v3392_v30  ;;  %v5898_v36 = vpop.f32.mrb[112].mxu1  ;;  %v5947_v21 = vpop.f32.mrb[114].mxu0 }
 0x231   : > { %8647 = vst [vmem:[#allocation27_spill] sm:$0xff] %v8151_v56  ;;  %v4163_v51 = vadd.f32 %v5898_v36, %v8032_v62  ;;  %v4034_v60 = vpop.f32.mrb[113].mxu1  ;;  %v4515_v18 = vmul.f32 %v5947_v21, %v8628_v37  ;;  %v4388_v33 = vpop.f32.mrb[115].mxu0 }
 0x232   : > { %8648 = vst [vmem:[#allocation23_spill] sm:$0xff] %v8153_v54  ;;  %v4161_v42 = vadd.f32 %v4034_v60, %v8035_v32  ;;  %v5899_v19 = vpop.f32.mrb[114].mxu1  ;;  %v4513_v53 = vmul.f32 %v8629_v29, %v4388_v33 }
 0x233   : > { %v4546_v22 = vadd.f32 %v5946_v15, %v4163_v51  ;;  %v4164_v52 = vadd.f32 %v5899_v19, %v8039_v48  ;;  %v4037_v6 = vpop.f32.mrb[115].mxu1 }
 0x234   : > { %v4544_v25 = vadd.f32 %v4385_v10, %v4161_v42  ;;  %v4162_v55 = vadd.f32 %v4037_v6, %v8042_v40 }
 0x235   : > { %v4547_v41 = vadd.f32 %v4515_v18, %v4164_v52  ;;  %v4776_v29 = vmul.f32 %v4546_v22, %v4546_v22 }
 0x236   : > { %v4545_v30 = vadd.f32 %v4513_v53, %v4162_v55  ;;  %v5950_v62 = vpop.f32.mrb[116].mxu0  ;;  %v4774_v37 = vmul.f32 %v4544_v25, %v4544_v25 }
 0x237   : > { %v5241_v36 = vpack.c.bf16 %v4547_v41, %v4546_v22  ;;  %v4401_v54 = vpop.f32.mrb[117].mxu0  ;;  %v4777_v53 = vmul.f32 %v4547_v41, %v4547_v41 }
 0x238   : > { %v5236_v21 = vpack.c.bf16 %v4545_v30, %v4544_v25  ;;  %v4736_v56 = vadd.f32 %v4545_v30, %v4544_v25  ;;  %v4775_v32 = vmul.f32 %v4545_v30, %v4545_v30  ;;  %v5902_v60 = vpop.f32.mrb[116].mxu1  ;;  %v5951_v8 = vpop.f32.mrb[118].mxu0 }
 0x239   : > { %5313 = vst [vmem:[%s8163_s25 + $0x8] sm:$0xff] %v5241_v36   ;;  %v4167_v48 = vadd.f32 %v5902_v60, %v8048_v4  ;;  %v4050_v40 = vpop.f32.mrb[117].mxu1  ;;  %v4519_v15 = vmul.f32 %v5951_v8, %v8630_v7  ;;  %v4404_v10 = vpop.f32.mrb[119].mxu0 }
 0x23a   : > { %5237 = vst [vmem:[%s8163_s25] sm:$0xff] %v5236_v21   ;;  %v4806_v51 = vadd.f32 %v4775_v32, %v4774_v37  ;;  %v4165_v18 = vadd.f32 %v4050_v40, %v8051_v50  ;;  %v4737_v33 = vadd.f32 %v4736_v56, %v4546_v22  ;;  %v5903_v42 = vpop.f32.mrb[118].mxu1  ;;  %v4517_v19 = vmul.f32 %v8631_v5, %v4404_v10 }
 0x23b   : > { %v4550_v52 = vadd.f32 %v5950_v62, %v4167_v48  ;;  %v4168_v6 = vadd.f32 %v5903_v42, %v8055_v31  ;;  %v4053_v25 = vpop.f32.mrb[119].mxu1 }
 0x23c   : > { %v4548_v55 = vadd.f32 %v4401_v54, %v4165_v18  ;;  %v4738_v30 = vadd.f32 %v4737_v33, %v4547_v41  ;;  %v4807_v4 = vadd.f32 %v4806_v51, %v4776_v29  ;;  %v4166_v36 = vadd.f32 %v4053_v25, %v8058_v13 }
 0x23d   : > { %v4551_v7 = vadd.f32 %v4519_v15, %v4168_v6  ;;  %v4780_v41 = vmul.f32 %v4550_v52, %v4550_v52 }
 0x23e   : > { %v4739_v8 = vadd.f32 %v4738_v30, %v4548_v55  ;;  %v4778_v37 = vmul.f32 %v4548_v55, %v4548_v55  ;;  %v4808_v21 = vadd.f32 %v4807_v4, %v4777_v53  ;;  %v4549_v50 = vadd.f32 %v4517_v19, %v4166_v36  ;;  %v5954_v56 = vpop.f32.mrb[120].mxu0 }
 0x23f   : > { %v5251_v22 = vpack.c.bf16 %v4551_v7, %v4550_v52  ;;  %v4417_v5 = vpop.f32.mrb[121].mxu0  ;;  %v4781_v19 = vmul.f32 %v4551_v7, %v4551_v7 }
 0x240   : > { %v4809_v32 = vadd.f32 %v4808_v21, %v4778_v37  ;;  %v5246_v62 = vpack.c.bf16 %v4549_v50, %v4548_v55  ;;  %v4740_v60 = vadd.f32 %v4739_v8, %v4549_v50  ;;  %v4779_v31 = vmul.f32 %v4549_v50, %v4549_v50  ;;  %v5906_v48 = vpop.f32.mrb[120].mxu1  ;;  %v5955_v54 = vpop.f32.mrb[122].mxu0 }
 0x241   : > { %5315 = vst [vmem:[%s8163_s25 + $0x18] sm:$0xff] %v5251_v22   ;;  %v4171_v13 = vadd.f32 %v5906_v48, %v8064_v24  ;;  %v4066_v29 = vpop.f32.mrb[121].mxu1  ;;  %v4523_v40 = vmul.f32 %v5955_v54, %v8632_v57  ;;  %v4420_v15 = vpop.f32.mrb[123].mxu0 }
 0x242   : > { %5314 = vst [vmem:[%s8163_s25 + $0x10] sm:$0xff] %v5246_v62   ;;  %v4810_v10 = vadd.f32 %v4809_v32, %v4779_v31  ;;  %v4169_v51 = vadd.f32 %v4066_v29, %v8067_v14  ;;  %v4741_v18 = vadd.f32 %v4740_v60, %v4550_v52  ;;  %v5907_v33 = vpop.f32.mrb[122].mxu1  ;;  %v4521_v42 = vmul.f32 %v8633_v59, %v4420_v15 }
 0x243   : > { %v4554_v53 = vadd.f32 %v5954_v56, %v4171_v13  ;;  %v4172_v6 = vadd.f32 %v5907_v33, %v8071_v61  ;;  %v4069_v25 = vpop.f32.mrb[123].mxu1 }
 0x244   : > { %v4552_v55 = vadd.f32 %v4417_v5, %v4169_v51  ;;  %v4742_v30 = vadd.f32 %v4741_v18, %v4551_v7  ;;  %v4811_v24 = vadd.f32 %v4810_v10, %v4780_v41  ;;  %v4170_v4 = vadd.f32 %v4069_v25, %v8074_v39 }
 0x245   : > { %v4555_v57 = vadd.f32 %v4523_v40, %v4172_v6  ;;  %v4784_v7 = vmul.f32 %v4554_v53, %v4554_v53 }
 0x246   : > { %v4743_v36 = vadd.f32 %v4742_v30, %v4552_v55  ;;  %v4782_v8 = vmul.f32 %v4552_v55, %v4552_v55  ;;  %v4812_v37 = vadd.f32 %v4811_v24, %v4781_v19  ;;  %v4553_v14 = vadd.f32 %v4521_v42, %v4170_v4  ;;  %v5958_v52 = vpop.f32.mrb[124].mxu0 }
 0x247   : > { %v5261_v21 = vpack.c.bf16 %v4555_v57, %v4554_v53  ;;  %v4433_v59 = vpop.f32.mrb[125].mxu0  ;;  %v4785_v40 = vmul.f32 %v4555_v57, %v4555_v57 }
 0x248   : > { %v4813_v50 = vadd.f32 %v4812_v37, %v4782_v8  ;;  %v5256_v56 = vpack.c.bf16 %v4553_v14, %v4552_v55  ;;  %v4744_v22 = vadd.f32 %v4743_v36, %v4553_v14  ;;  %v4783_v61 = vmul.f32 %v4553_v14, %v4553_v14  ;;  %v5910_v32 = vpop.f32.mrb[124].mxu1  ;;  %v5959_v5 = vpop.f32.mrb[126].mxu0 }
 0x249   : > { %5317 = vst [vmem:[%s8163_s25 + $0x28] sm:$0xff] %v5261_v21   ;;  %v4175_v39 = vadd.f32 %v5910_v32, %v8080_v28  ;;  %v4082_v62 = vpop.f32.mrb[125].mxu1  ;;  %v4527_v60 = vmul.f32 %v5959_v5, %v8634_v12  ;;  %v4436_v31 = vpop.f32.mrb[127].mxu0 }
 0x24a   : > { %5316 = vst [vmem:[%s8163_s25 + $0x20] sm:$0xff] %v5256_v56   ;;  %v4814_v48 = vadd.f32 %v4813_v50, %v4783_v61  ;;  %v4173_v54 = vadd.f32 %v4082_v62, %v8083_v26  ;;  %v4745_v41 = vadd.f32 %v4744_v22, %v4554_v53  ;;  %v5911_v13 = vpop.f32.mrb[126].mxu1  ;;  %v4525_v29 = vmul.f32 %v8635_v49, %v4436_v31 }
 0x24b   : > { %v4558_v15 = vadd.f32 %v5958_v52, %v4175_v39  ;;  %v4176_v10 = vadd.f32 %v5911_v13, %v8087_v20  ;;  %v4085_v51 = vpop.f32.mrb[127].mxu1 }
 0x24c   : > { %v4556_v18 = vadd.f32 %v4433_v59, %v4173_v54  ;;  %v4746_v33 = vadd.f32 %v4745_v41, %v4555_v57  ;;  %v4815_v28 = vadd.f32 %v4814_v48, %v4784_v7  ;;  %v4174_v42 = vadd.f32 %v4085_v51, %v8090_v1 }
 0x24d   : > { %v4559_v12 = vadd.f32 %v4527_v60, %v4176_v10  ;;  %v4788_v57 = vmul.f32 %v4558_v15, %v4558_v15 }
 0x24e   : > { %v4747_v19 = vadd.f32 %v4746_v33, %v4556_v18  ;;  %v4786_v6 = vmul.f32 %v4556_v18, %v4556_v18  ;;  %v4816_v25 = vadd.f32 %v4815_v28, %v4785_v40  ;;  %v4557_v26 = vadd.f32 %v4525_v29, %v4174_v42  ;;  %v5962_v53 = vpop.f32.mrb[128].mxu0 }
 0x24f   : > { %v5271_v55 = vpack.c.bf16 %v4559_v12, %v4558_v15  ;;  %v4449_v49 = vpop.f32.mrb[129].mxu0  ;;  %v4789_v61 = vmul.f32 %v4559_v12, %v4559_v12 }
 0x250   : > { %v4817_v30 = vadd.f32 %v4816_v25, %v4786_v6  ;;  %v5266_v24 = vpack.c.bf16 %v4557_v26, %v4556_v18  ;;  %v4748_v4 = vadd.f32 %v4747_v19, %v4557_v26  ;;  %v4787_v20 = vmul.f32 %v4557_v26, %v4557_v26  ;;  %v5914_v36 = vpop.f32.mrb[128].mxu1  ;;  %v5963_v8 = vpop.f32.mrb[130].mxu0 }
 0x251   : > { %5319 = vst [vmem:[%s8163_s25 + $0x38] sm:$0xff] %v5271_v55   ;;  %v4179_v1 = vadd.f32 %v5914_v36, %v8096_v47  ;;  %v4098_v37 = vpop.f32.mrb[129].mxu1  ;;  %v4531_v14 = vmul.f32 %v5963_v8, %v8636_v17  ;;  %v4452_v52 = vpop.f32.mrb[131].mxu0 }
 0x252   : > { %5318 = vst [vmem:[%s8163_s25 + $0x30] sm:$0xff] %v5266_v24   ;;  %v4818_v21 = vadd.f32 %v4817_v30, %v4787_v20  ;;  %v4177_v59 = vadd.f32 %v4098_v37, %v8099_v45  ;;  %v4749_v50 = vadd.f32 %v4748_v4, %v4558_v15  ;;  %v5915_v56 = vpop.f32.mrb[130].mxu1  ;;  %v4529_v22 = vmul.f32 %v8637_v34, %v4452_v52 }
 0x253   : > { %v4562_v32 = vadd.f32 %v5962_v53, %v4179_v1  ;;  %v4180_v5 = vadd.f32 %v5915_v56, %v8103_v27  ;;  %v4101_v7 = vpop.f32.mrb[131].mxu1 }
 0x254   : > { %v4560_v39 = vadd.f32 %v4449_v49, %v4177_v59  ;;  %v4750_v62 = vadd.f32 %v4749_v50, %v4559_v12  ;;  %v4819_v47 = vadd.f32 %v4818_v21, %v4788_v57  ;;  %v4178_v60 = vadd.f32 %v4101_v7, %v8106_v43 }
 0x255   : > { %v4563_v17 = vadd.f32 %v4531_v14, %v4180_v5  ;;  %v4792_v18 = vmul.f32 %v4562_v32, %v4562_v32 }
 0x256   : > { %v4751_v31 = vadd.f32 %v4750_v62, %v4560_v39  ;;  %v4790_v48 = vmul.f32 %v4560_v39, %v4560_v39  ;;  %v4820_v54 = vadd.f32 %v4819_v47, %v4789_v61  ;;  %v4561_v45 = vadd.f32 %v4529_v22, %v4178_v60  ;;  %v5966_v41 = vpop.f32.mrb[132].mxu0  ;;  %v8649_v61 = vld [vmem:[#allocation18_spill] sm:$0xff] }
 0x257   : > { %v5281_v13 = vpack.c.bf16 %v4563_v17, %v4562_v32  ;;  %v4465_v34 = vpop.f32.mrb[133].mxu0  ;;  %v4793_v53 = vmul.f32 %v4563_v17, %v4563_v17 }
 0x258   : > { %v4821_v29 = vadd.f32 %v4820_v54, %v4790_v48  ;;  %v5276_v40 = vpack.c.bf16 %v4561_v45, %v4560_v39  ;;  %v4752_v15 = vadd.f32 %v4751_v31, %v4561_v45  ;;  %v4791_v27 = vmul.f32 %v4561_v45, %v4561_v45  ;;  %v5918_v10 = vpop.f32.mrb[132].mxu1  ;;  %v5967_v51 = vpop.f32.mrb[134].mxu0 }
 0x259   : > { %5321 = vst [vmem:[%s8163_s25 + $0x48] sm:$0xff] %v5281_v13   ;;  %v4183_v43 = vadd.f32 %v5918_v10, %v8112_v35  ;;  %v4114_v33 = vpop.f32.mrb[133].mxu1  ;;  %v4535_v28 = vmul.f32 %v5967_v51, %v8638_v58  ;;  %v4468_v42 = vpop.f32.mrb[135].mxu0  ;;  %v8650_v13 = vld [vmem:[#allocation25_spill] sm:$0xff] }
 0x25a   : > { %5320 = vst [vmem:[%s8163_s25 + $0x40] sm:$0xff] %v5276_v40   ;;  %v4822_v12 = vadd.f32 %v4821_v29, %v4791_v27  ;;  %v4181_v19 = vadd.f32 %v4114_v33, %v8115_v11  ;;  %v4753_v6 = vadd.f32 %v4752_v15, %v4562_v32  ;;  %v5919_v25 = vpop.f32.mrb[134].mxu1  ;;  %v4533_v26 = vmul.f32 %v8639_v9, %v4468_v42 }
 0x25b   : > { %v4566_v55 = vadd.f32 %v5966_v41, %v4183_v43  ;;  %v4184_v49 = vadd.f32 %v5919_v25, %v8119_v0  ;;  %v4117_v30 = vpop.f32.mrb[135].mxu1 }
 0x25c   : > { %v4564_v24 = vadd.f32 %v4465_v34, %v4181_v19  ;;  %v4754_v4 = vadd.f32 %v4753_v6, %v4563_v17  ;;  %v4823_v35 = vadd.f32 %v4822_v12, %v4792_v18  ;;  %v4182_v20 = vadd.f32 %v4117_v30, %v8122_v63 }
 0x25d   : > { %v4567_v58 = vadd.f32 %v4535_v28, %v4184_v49  ;;  %v4796_v56 = vmul.f32 %v4566_v55, %v4566_v55 }
 0x25e   : > { %v4755_v36 = vadd.f32 %v4754_v4, %v4564_v24  ;;  %v4794_v8 = vmul.f32 %v4564_v24, %v4564_v24  ;;  %v4824_v57 = vadd.f32 %v4823_v35, %v4793_v53  ;;  %v4565_v11 = vadd.f32 %v4533_v26, %v4182_v20  ;;  %v5970_v1 = vpop.f32.mrb[136].mxu0 }
 0x25f   : > { %v5291_v37 = vpack.c.bf16 %v4567_v58, %v4566_v55  ;;  %v4481_v9 = vpop.f32.mrb[137].mxu0  ;;  %v4797_v17 = vmul.f32 %v4567_v58, %v4567_v58 }
 0x260   : > { %v4825_v14 = vadd.f32 %v4824_v57, %v4794_v8  ;;  %v5286_v52 = vpack.c.bf16 %v4565_v11, %v4564_v24  ;;  %v4756_v21 = vadd.f32 %v4755_v36, %v4565_v11  ;;  %v4795_v0 = vmul.f32 %v4565_v11, %v4565_v11  ;;  %v5922_v59 = vpop.f32.mrb[136].mxu1  ;;  %v5971_v50 = vpop.f32.mrb[138].mxu0  ;;  %v8651_v24 = vld [vmem:[#allocation22_spill] sm:$0xff] }
 0x261   : > { %5323 = vst [vmem:[%s8163_s25 + $0x58] sm:$0xff] %v5291_v37   ;;  %v4187_v63 = vadd.f32 %v5922_v59, %v8128_v44  ;;  %v4130_v22 = vpop.f32.mrb[137].mxu1  ;;  %v4539_v32 = vmul.f32 %v5971_v50, %v8649_v61  ;;  %v4484_v5 = vpop.f32.mrb[139].mxu0 }
 0x262   : > { %5322 = vst [vmem:[%s8163_s25 + $0x50] sm:$0xff] %v5286_v52   ;;  %v4826_v7 = vadd.f32 %v4825_v14, %v4795_v0  ;;  %v4185_v39 = vadd.f32 %v4130_v22, %v8131_v23  ;;  %v4757_v62 = vadd.f32 %v4756_v21, %v4566_v55  ;;  %v5923_v47 = vpop.f32.mrb[138].mxu1  ;;  %v4537_v60 = vmul.f32 %v8642_v46, %v4484_v5 }
 0x263   : > { %v4570_v31 = vadd.f32 %v5970_v1, %v4187_v63  ;;  %v4188_v48 = vadd.f32 %v5923_v47, %v8135_v38  ;;  %v4133_v54 = vpop.f32.mrb[139].mxu1 }
 0x264   : > { %v4568_v45 = vadd.f32 %v4481_v9, %v4185_v39  ;;  %v4758_v41 = vadd.f32 %v4757_v62, %v4567_v58  ;;  %v4827_v44 = vadd.f32 %v4826_v7, %v4796_v56  ;;  %v4186_v34 = vadd.f32 %v4133_v54, %v8650_v13  ;;  %v8652_v58 = vld [vmem:[#allocation27_spill] sm:$0xff] }
 0x265   : > { %v4571_v29 = vadd.f32 %v4539_v32, %v4188_v48  ;;  %v4800_v12 = vmul.f32 %v4570_v31, %v4570_v31 }
 0x266   : > { %v4759_v40 = vadd.f32 %v4758_v41, %v4568_v45  ;;  %v4798_v15 = vmul.f32 %v4568_v45, %v4568_v45  ;;  %v4828_v27 = vadd.f32 %v4827_v44, %v4797_v17  ;;  %v4569_v23 = vadd.f32 %v4537_v60, %v4186_v34  ;;  %v5974_v10 = vpop.f32.mrb[140].mxu0 }
 0x267   : > { %v5301_v51 = vpack.c.bf16 %v4571_v29, %v4570_v31  ;;  %v4497_v46 = vpop.f32.mrb[141].mxu0  ;;  %v4801_v35 = vmul.f32 %v4571_v29, %v4571_v29 }
 0x268   : > { %v4829_v18 = vadd.f32 %v4828_v27, %v4798_v15  ;;  %v5296_v43 = vpack.c.bf16 %v4569_v23, %v4568_v45  ;;  %v4760_v33 = vadd.f32 %v4759_v40, %v4569_v23  ;;  %v4799_v38 = vmul.f32 %v4569_v23, %v4569_v23  ;;  %v5926_v28 = vpop.f32.mrb[140].mxu1  ;;  %v5975_v42 = vpop.f32.mrb[142].mxu0 }
 0x269   : > { %5325 = vst [vmem:[%s8163_s25 + $0x68] sm:$0xff] %v5301_v51   ;;  %v4191_v19 = vadd.f32 %v5926_v28, %v8144_v3  ;;  %v4146_v6 = vpop.f32.mrb[141].mxu1  ;;  %v4543_v25 = vmul.f32 %v5975_v42, %v8645_v16  ;;  %v4500_v26 = vpop.f32.mrb[143].mxu0  ;;  %v8653_v16 = vld [vmem:[#allocation23_spill] sm:$0xff] }
 0x26a   : > { %5324 = vst [vmem:[%s8163_s25 + $0x60] sm:$0xff] %v5296_v43   ;;  %v4830_v53 = vadd.f32 %v4829_v18, %v4799_v38  ;;  %v4189_v55 = vadd.f32 %v4146_v6, %v8147_v2  ;;  %v4761_v49 = vadd.f32 %v4760_v33, %v4570_v31  ;;  %v5927_v30 = vpop.f32.mrb[142].mxu1  ;;  %v4541_v4 = vmul.f32 %v8651_v24, %v4500_v26 }
 0x26b   : > { %v4574_v20 = vadd.f32 %v5974_v10, %v4191_v19  ;;  %v4192_v36 = vadd.f32 %v5927_v30, %v8652_v58  ;;  %v4149_v8 = vpop.f32.mrb[143].mxu1 }
 0x26c   : > { %v4572_v3 = vadd.f32 %v4497_v46, %v4189_v55  ;;  %v4762_v57 = vadd.f32 %v4761_v49, %v4571_v29  ;;  %v4831_v11 = vadd.f32 %v4830_v53, %v4800_v12  ;;  %v4190_v1 = vadd.f32 %v4149_v8, %v8653_v16 }
 0x26d   : > { %v4575_v37 = vadd.f32 %v4543_v25, %v4192_v36  ;;  %v4804_v63 = vmul.f32 %v4574_v20, %v4574_v20 }
 0x26e   : > { %v4763_v2 = vadd.f32 %v4762_v57, %v4572_v3  ;;  %v4802_v9 = vmul.f32 %v4572_v3, %v4572_v3  ;;  %v4832_v14 = vadd.f32 %v4831_v11, %v4801_v35  ;;  %v4573_v52 = vadd.f32 %v4541_v4, %v4190_v1 }
 0x26f   : > { %v5311_v21 = vpack.c.bf16 %v4575_v37, %v4574_v20 }
 0x270   : > { %v4833_v0 = vadd.f32 %v4832_v14, %v4802_v9  ;;  %v5306_v59 = vpack.c.bf16 %v4573_v52, %v4572_v3  ;;  %v4764_v50 = vadd.f32 %v4763_v2, %v4573_v52  ;;  %v4803_v56 = vmul.f32 %v4573_v52, %v4573_v52 }
 0x271   : > { %5327 = vst [vmem:[%s8163_s25 + $0x78] sm:$0xff] %v5311_v21  }
 0x272   : > { %5326 = vst [vmem:[%s8163_s25 + $0x70] sm:$0xff] %v5306_v59   ;;  %v4765_v22 = vadd.f32 %v4764_v50, %v4574_v20  ;;  %v4834_v61 = vadd.f32 %v4833_v0, %v4803_v56 }
 0x273   : > { %6230 = shalt.err (!%p6227_p7)
}
 0x274   : > { %s6231_s12 = scalar_lea.hbm %s8226_s8, 2048  ;;  %s6235_s9 = scalar_lea.hbm %s8348_s4, 4096 }
 0x275   : > { %p6232_p9 = scmp.ne.s32.totalorder %s8226_s8, %s6231_s12  ;;  %p6236_p5 = scmp.lt.u32.totalorder %s8226_s8, %s8348_s4 }
 0x276   : > { %p6237_p11 = scmp.lt.u32.totalorder %s6235_s9, %s6231_s12  ;;  %p6239_p4 = scmp.lt.u32.totalorder %s6231_s12, %s8226_s8 }
 0x277   : > { %p6233_p1 = pnand %p6232_p9, %p6491_p12 }
 0x278   : > { %p6238_p2 = por %p6237_p11, %p6236_p5 }
 0x279   : > { %p6234_p0 = pneg %p6233_p1 }
 0x27a   : > { %p6240_p6 = por %p6239_p4, %p6238_p2 }
 0x27c   : > { %p6241_p8 = pnand %p6240_p6, %p6234_p0 }
 0x27e   : > { %6244 = shalt.err (!%p6241_p8)
}
 0x27f   : > { %s6356_s19 = smov 64   ;;  %s6357_s16 = smov 4   ;;  %v4805_v32 = vmul.f32 %v4575_v37, %v4575_v37  ;;  %v4766_v5 = vadd.f32 %v4765_v22, %v4575_v37  ;;  %v4835_v7 = vadd.f32 %v4834_v61, %v4804_v63 }
 0x280   : > { %5998 = dma.vmem_to_hbm [thread:$0]  (%p6491_p12), %s8228_s18, 2048, %s8226_s8, %s4845_s17, %s6356_s19, %s6356_s19, %s6357_s16  }
 0x281   : > { %v4767_v39 = vrot.slane %v4766_v5, 4  ;;  %v4836_v62 = vadd.f32 %v4835_v7, %v4805_v32  ;;  %s4849_s15 = sand.u32 1, %s6416_s23   ;;  %s5195_s30 = sshll.u32 %s6416_s23, 4 }
 0x282   : > { %s294_s29 = scalar_lea.vmem [#allocation9], %s6542_s20  ;;  %s300_s18 = scalar_lea.vmem [#allocation11], %s6542_s20 }
 0x283   : > { %v4768_v47 = vadd.f32 %v4767_v39, %v4766_v5  ;;  %v4837_v60 = vrot.slane %v4836_v62, 4  ;;  %s4882_s28 = sshll.u32 %s294_s29, 4  ;;  %s4895_s8 = sshll.u32 %s300_s18, 4  ;;  %s8267_s28 = int_to_ptr.vmem [resolvable:$true] %s4882_s28  ;;  %s8274_s8 = int_to_ptr.vmem [resolvable:$true] %s4895_s8 }
 0x284   : > { %s8265_s13 = scalar_lea.hbm %s8349_s5, %s5195_s30  ;;  %s8272_s9 = scalar_lea.hbm %s8350_s6, %s5195_s30 }
 0x285   : > { %v4838_v17 = vadd.f32 %v4837_v60, %v4836_v62  ;;  %v4769_v31 = vrot.slane %v4768_v47, 2  ;;  %s8276_s25 = scalar_lea.sflag [#allocation10], %s4849_s15  ;;  %s6245_s27 = scalar_lea.vmem %s8267_s28, 16 }
 0x286   : > { %p6246_p10 = scmp.ne.s32.totalorder %s8267_s28, %s6245_s27  ;;  %s6358_s19 = smov [#allocation9]  }
 0x287   : > { %v4770_v48 = vadd.f32 %v4769_v31, %v4768_v47  ;;  %v4839_v54 = vrot.slane %v4838_v17, 2  ;;  %s6249_s16 = sshll.u32 %s6358_s19, 4  ;;  %s6250_s16 = int_to_ptr.vmem [resolvable:$false] %s6249_s16 }
 0x288   : > { %p6247_p13 = pnand %p6246_p10, %p6491_p12  ;;  %s6251_s17 = scalar_lea.vmem %s6250_s16, 32 }
 0x289   : > { %v4771_v45 = vrot.slane %v4770_v48, 1  ;;  %v4840_v41 = vadd.f32 %v4839_v54, %v4838_v17  ;;  %p6252_p7 = scmp.lt.s32.totalorder %s8267_s28, %s6250_s16  ;;  %p6253_p9 = scmp.lt.s32.totalorder %s6251_s17, %s6245_s27 }
 0x28a   : > { %p6248_p3 = pneg %p6247_p13 }
 0x28b   : > { %v4772_v44 = vadd.f32 %v4771_v45, %v4770_v48  ;;  %v4841_v13 = vrot.slane %v4840_v41, 1  ;;  %p6254_p1 = por %p6253_p9, %p6252_p7 }
 0x28d   : > { %4773 = vst [vmem:[%s294_s29] sm:$0x1] %v4772_v44  ;;  %v4842_v34 = vadd.f32 %v4841_v13, %v4840_v41  ;;  %p6255_p0 = pnand %p6254_p1, %p6248_p3 }
 0x28f   : > { %6258 = shalt.err (!%p6255_p0)
}
 0x290   : > { %s6259_s15 = scalar_lea.hbm %s8265_s13, 16  ;;  %s6263_s12 = scalar_lea.hbm %s8349_s5, 32 }
 0x291   : > { %p6260_p5 = scmp.ne.s32.totalorder %s8265_s13, %s6259_s15  ;;  %p6264_p4 = scmp.lt.u32.totalorder %s8265_s13, %s8349_s5 }
 0x292   : > { %p6265_p6 = scmp.lt.u32.totalorder %s6263_s12, %s6259_s15  ;;  %p6267_p10 = scmp.lt.u32.totalorder %s6259_s15, %s8265_s13 }
 0x293   : > { %p6261_p11 = pnand %p6260_p5, %p6491_p12 }
 0x294   : > { %p6266_p8 = por %p6265_p6, %p6264_p4 }
 0x295   : > { %p6262_p2 = pneg %p6261_p11 }
 0x296   : > { %p6268_p13 = por %p6267_p10, %p6266_p8 }
 0x298   : > { %p6269_p3 = pnand %p6268_p13, %p6262_p2 }
 0x29a   : > { %6272 = shalt.err (!%p6269_p3)
}
 0x29b   : > { %5999 = dma.vmem_to_hbm [thread:$0]  (%p6491_p12), %s8267_s28, 16, %s8265_s13, %s8276_s25   ;;  %4843 = vst [vmem:[%s300_s18] sm:$0x1] %v4842_v34 }
 0x29c   : > { %s6273_s27 = scalar_lea.vmem %s8274_s8, 16  ;;  %s6359_s19 = smov [#allocation11]  }
 0x29d   : > { %p6274_p7 = scmp.ne.s32.totalorder %s8274_s8, %s6273_s27  ;;  %s6277_s16 = sshll.u32 %s6359_s19, 4  ;;  %s6278_s16 = int_to_ptr.vmem [resolvable:$false] %s6277_s16 }
 0x29e   : > { %s6279_s17 = scalar_lea.vmem %s6278_s16, 32  ;;  %p6280_p0 = scmp.lt.s32.totalorder %s8274_s8, %s6278_s16 }
 0x29f   : > { %p6275_p9 = pnand %p6274_p7, %p6491_p12  ;;  %p6281_p5 = scmp.lt.s32.totalorder %s6279_s17, %s6273_s27 }
 0x2a1   : > { %p6276_p1 = pneg %p6275_p9  ;;  %p6282_p11 = por %p6281_p5, %p6280_p0 }
 0x2a3   : > { %p6283_p2 = pnand %p6282_p11, %p6276_p1 }
 0x2a5   : > { %6286 = shalt.err (!%p6283_p2)
}
 0x2a6   : > { %s6287_s20 = scalar_lea.hbm %s8272_s9, 16  ;;  %s6291_s13 = scalar_lea.hbm %s8350_s6, 32 }
 0x2a7   : > { %p6288_p4 = scmp.ne.s32.totalorder %s8272_s9, %s6287_s20  ;;  %p6292_p10 = scmp.lt.u32.totalorder %s8272_s9, %s8350_s6 }
 0x2a8   : > { %p6293_p13 = scmp.lt.u32.totalorder %s6291_s13, %s6287_s20  ;;  %p6295_p7 = scmp.lt.u32.totalorder %s6287_s20, %s8272_s9 }
 0x2a9   : > { %p6289_p6 = pnand %p6288_p4, %p6491_p12 }
 0x2aa   : > { %p6294_p3 = por %p6293_p13, %p6292_p10 }
 0x2ab   : > { %p6290_p8 = pneg %p6289_p6 }
 0x2ac   : > { %p6296_p9 = por %p6295_p7, %p6294_p3 }
 0x2ae   : > { %p6297_p1 = pnand %p6296_p9, %p6290_p8 }
 0x2b0   : > { %6300 = shalt.err (!%p6297_p1)
}
 0x2b1   : > { %6000 = dma.vmem_to_hbm [thread:$0]  (%p6491_p12), %s8274_s8, 16, %s8272_s9, %s8276_s25  }
 0x2b2 PF: > { %s4907_s29 = sand.u32 1, %s6335_s2   ;;  %p8654_p0 = scmp.ne.s32.totalorder %s8448_s26, 0 }
 0x2b3   : > { %p8655_p5 = scmp.ge.s32.totalorder %s6347_s22, 2  ;;  %s4908_s12 = scalar_lea.sflag [#allocation5], %s4907_s29 }
 0x2b5   : > { %p6013_p11 = pnand %p8655_p5, %p8654_p0 }
 0x2b7   : > { %6326 = dma.done.wait (!%p6013_p11), %s4908_s12, 2048  }
 0x2b8   : > { %6328 = vsyncadd (!%p6013_p11), %s4908_s12, 4294965248  ;;  %s4916_s23 = sand.u32 1, %s5028_s24  }
 0x2b9   : > { %s4917_s14 = scalar_lea.sflag [#allocation10], %s4916_s23 }
 0x2ba   : > { %6330 = dma.done.wait (!%p6013_p11), %s4917_s14, 32  }
 0x2bb   : > { %6332 = vsyncadd (!%p6013_p11), %s4917_s14, 4294967264  ;;  %p24_p12 = scmp.ge.s32.totalorder %s6453_s7, 4   ;;  %s8656_s2 = smov %s6339_s21 }
 0x2bc   : > { %s8657_s21 = smov %s6343_s3  ;;  %s8658_s3 = smov %s6487_s10 }
 0x2bd   : > { %s8659_s22 = smov %s6453_s7  ;;  %26 = sbr.rel (!%p24_p12) target bundleno = 8 (0x8), region = 117 }
 0x2c4   :  { %4929 = vsyncpa [#allocation4], 1 }
 0x2c5   :  { %4931 = vsyncpa [#allocation4 + $0x1], 1 }
 0x2c6   :  { %4932 = vsyncpa [#allocation7], 1 }
 0x2c7   :  { %4933 = vsyncpa [#allocation5], 1 }
 0x2c8   :  { %4935 = vsyncpa [#allocation5 + $0x1], 1 }
 0x2c9   :  { %4936 = vsyncpa [#allocation10], 1 }
 0x2ca   :  { %4938 = vsyncpa [#allocation10 + $0x1], 1 }

</bundles_post_ra>
